<compile_context>
chip_gen: v5e
topology: v5e:2x2
jax: 0.10.0
libtpu: 0.0.40
codegen_flags: <defaults>
</compile_context>

<pallas_src>
import functools

import jax
import jax.numpy as jnp
import numpy as np
from jax import lax
from jax.experimental import pallas as pl
from jax.experimental.pallas import tpu as pltpu


def _round_up(x, m):
    return ((x + m - 1) // m) * m


# ----------------------------------------------------------------------------
# Pallas kernel: fused 3x3 conv (pad=1) + folded BatchNorm + ReLU,
# with optional input gating (g*x or (1-g)*x) and residual adds in the epilogue.
# ----------------------------------------------------------------------------
def _conv3x3_bn_relu_kernel(*refs, H, W, cin, cout, gate_mode, num_residual,
                            compute_dtype):
    # ref order: x, [gate], [residual]*num_residual, w(3, 3*cin, cout),
    #            scale(1,cout), bias(1,cout), out(H,W,cout), pad_scratch.
    it = iter(refs)
    x_ref = next(it)
    g_ref = next(it) if gate_mode is not None else None
    res_refs = [next(it) for _ in range(num_residual)]
    w_ref = next(it)
    s_ref = next(it)
    b_ref = next(it)
    o_ref = next(it)
    pad_ref = next(it)

    cd = compute_dtype
    WP = pad_ref.shape[1]          # W rounded up to a sublane multiple (>= W)
    HF = H * WP                    # rows of the flat accumulator

    xg = x_ref[...]
    if gate_mode == "mul":                         # conv(g * x)
        xg = xg * g_ref[...]
    elif gate_mode == "one_minus":                 # conv((1 - g) * x)
        xg = xg * (1.0 - g_ref[...]).astype(xg.dtype)
    xg = xg.astype(cd)

    # Halo-only zeroing (rows 0 and H+1); the image rows [1, H+1) x [0, W) are
    # fully overwritten by the store below.  Re-zeroed every step: with
    # "parallel" grid axes the scratch is per-core and there is no reliable
    # "first" iteration.  Junk columns [W, WP) are never read by valid output
    # rows but are kept deterministic when they exist.
    zrow = jnp.zeros((1, WP, 3 * cin), cd)
    pad_ref[0:1, :, :] = zrow
    pad_ref[H + 1:H + 2, :, :] = zrow
    if W < WP:
        pad_ref[1:H + 1, W:WP, :] = jnp.zeros((H, WP - W, 3 * cin), cd)

    # Lane-concat im2col of the three dx taps: channel block dx holds the image
    # shifted by (dx - 1) pixels along W with zero fill at the borders.  The two
    # shifts are in-register work on the (H, W, cin) image (XLU), and every
    # scratch store / read below stays sublane-aligned.
    zcol = jnp.zeros((H, 1, cin), cd)
    v_left = jnp.concatenate([zcol, xg[:, :W - 1, :]], axis=1)   # input(h, w-1)
    v_right = jnp.concatenate([xg[:, 1:, :], zcol], axis=1)      # input(h, w+1)
    pad_ref[1:H + 1, 0:W, :] = jnp.concatenate([v_left, xg, v_right], axis=-1)

    prec = lax.Precision.HIGHEST if cd == jnp.float32 else None

    # 3 back-to-back MXU dots with K = 3*cin (one per kernel row dy).  Each LHS
    # slice pad[dy:dy+H] starts on a whole (WP % 8 == 0) row block, so the
    # reshape to (H*WP, 3*cin) is layout-preserving and relayout-free.
    acc = None
    for dy in range(3):                             # static unroll
        lhs = pad_ref[dy:dy + H, :, :].reshape(HF, 3 * cin)
        part = jnp.dot(lhs, w_ref[dy], preferred_element_type=jnp.float32,
                       precision=prec)
        acc = part if acc is None else acc + part

    # Epilogue on the valid W columns only (junk columns dropped first).
    y = acc.reshape(H, WP, cout)[:, :W, :]
    y = y * s_ref[0] + b_ref[0]                     # folded BatchNorm (eval)
    y = jnp.maximum(y, 0.0)                         # ReLU
    for r_ref in res_refs:                          # fused residual adds (f32)
        y = y + r_ref[...].astype(jnp.float32)
    o_ref[...] = y.astype(o_ref.dtype)


def _conv_call(inputs, in_specs, out_shape, out_spec, grid, dims, *,
               H, W, cin, cout, gate_mode, num_residual, compute_dtype):
    kernel = functools.partial(
        _conv3x3_bn_relu_kernel, H=H, W=W, cin=cin, cout=cout,
        gate_mode=gate_mode, num_residual=num_residual,
        compute_dtype=compute_dtype)
    WP = _round_up(W, 8)
    return pl.pallas_call(
        kernel,
        out_shape=out_shape,
        grid_spec=pltpu.PrefetchScalarGridSpec(
            num_scalar_prefetch=0,
            grid=grid,
            in_specs=list(in_specs),
            out_specs=out_spec,
            # im2col scratch: 1 halo row top/bottom, dx taps concatenated on
            # the channel (lane) axis.
            scratch_shapes=[pltpu.VMEM((H + 2, WP, 3 * cin), compute_dtype)]),
        compiler_params=pltpu.CompilerParams(
            dimension_semantics=dims,
            # Raise over the 16/32 MiB scoped defaults; safe on every
            # generation's physical VMEM at the shapes used here.
            vmem_limit_bytes=48 * 1024 * 1024),
        # TODO(synk): for large H*W*C add an H-tile grid axis with a 1-row halo
        # (marked "arbitrary", pipeline_mode=pl.Buffered(3) on the image specs)
        # so the per-step working set stays under v7x's 64 MiB physical VMEM.
    )(*inputs)


# ----------------------------------------------------------------------------
# Bilinear upsample (PyTorch F.interpolate, mode='bilinear', align_corners=False)
# ----------------------------------------------------------------------------
def _bilinear_matrix(in_size, out_size):
    A = np.zeros((out_size, in_size), np.float32)
    scale = in_size / out_size
    for o in range(out_size):
        src = max((o + 0.5) * scale - 0.5, 0.0)
        x0 = min(int(np.floor(src)), in_size - 1)
        x1 = min(x0 + 1, in_size - 1)
        f = src - x0
        A[o, x0] += 1.0 - f
        A[o, x1] += f
    return jnp.asarray(A)


def bilinear_upsample_nhwc(x, out_hw):
    # TODO(synk): bilinear resize is a plain-JAX separable matmul, not a Pallas
    # kernel (one-off linear resample outside the conv hot path).
    _, h_in, w_in, _ = x.shape
    h_out, w_out = out_hw
    ah = _bilinear_matrix(h_in, h_out).astype(x.dtype)
    aw = _bilinear_matrix(w_in, w_out).astype(x.dtype)
    y = jnp.einsum("oh,nhwc->nowc", ah, x)
    y = jnp.einsum("pw,nowc->nopc", aw, y)
    return y


# ----------------------------------------------------------------------------
# Parameter construction (deterministic, in-script)
# ----------------------------------------------------------------------------
def make_conv_bn_params(key, cin, cout, eps=1e-5):
    kw, kb, kg, kbeta, km, kv = jax.random.split(key, 6)
    w = jax.random.normal(kw, (cout, cin, 3, 3), jnp.float32) * 0.1   # OIHW
    b_conv = jax.random.normal(kb, (cout,), jnp.float32) * 0.1
    gamma = 1.0 + 0.1 * jax.random.normal(kg, (cout,), jnp.float32)
    beta = 0.1 * jax.random.normal(kbeta, (cout,), jnp.float32)
    mean = 0.1 * jax.random.normal(km, (cout,), jnp.float32)
    var = jnp.abs(jax.random.normal(kv, (cout,), jnp.float32)) * 0.1 + 1.0

    # Fold eval-mode BN (+ conv bias) into a per-channel scale / bias.
    # TODO(synk): training-mode BN (batch statistics) is not reproduced.
    scale = gamma / jnp.sqrt(var + eps)
    bias = beta + (b_conv - mean) * scale
    w_hwio = jnp.transpose(w, (2, 3, 1, 0))            # (3,3,cin,cout)
    return {
        "w3": w_hwio.reshape(3, 3 * cin, cout),        # dy-major, K = 3*cin
        "w_hwio": w_hwio,                              # for the lax reference
        "scale": scale.reshape(1, cout),
        "bias": bias.reshape(1, cout),
    }


def make_gfm_params(key, c):
    names = ["gate1", "gate2", "convAct1", "convAct2", "convLack"]
    keys = jax.random.split(key, len(names))
    return {n: make_conv_bn_params(k, c, c) for n, k in zip(names, keys)}


# ----------------------------------------------------------------------------
# GFM forward (matches torch GFM.forward; NCHW in / NCHW out)
# ----------------------------------------------------------------------------
@functools.partial(jax.jit, static_argnames=("compute_dtype",))
def gfm_forward(higher_nchw, lower_nchw, params, *, compute_dtype=jnp.bfloat16):
    cd = compute_dtype
    hi = jnp.transpose(higher_nchw, (0, 2, 3, 1)).astype(cd)
    lo = jnp.transpose(lower_nchw, (0, 2, 3, 1)).astype(cd)
    N, H, W, C = lo.shape

    f1 = bilinear_upsample_nhwc(hi, (H, W))            # stays in compute dtype

    # Stack the two streams (0: upsampled higher / f1, 1: lower) so gate1/gate2
    # and convAct1/convAct2 each run as ONE pallas_call with grid (2, N).
    x2 = jnp.stack([f1, lo], axis=0).astype(cd)        # (2,N,H,W,C), already cd

    def stack_w(a, b):
        return jnp.stack([params[a]["w3"], params[b]["w3"]]).astype(cd)

    def stack_v(a, b, field):
        return jnp.stack([params[a][field], params[b][field]])

    def x_pair():
        return pl.BlockSpec((None, None, H, W, C),
                            lambda s, n: (s, n, 0, 0, 0))

    def v_pair():
        return pl.BlockSpec((None, 1, C), lambda s, n: (s, 0, 0))

    w_pair = pl.BlockSpec((None, 3, 3 * C, C), lambda s, n: (s, 0, 0, 0))
    pair_out = jax.ShapeDtypeStruct((2, N, H, W, C), cd)
    common = dict(H=H, W=W, cin=C, cout=C, compute_dtype=cd)

    # g[0] = gate1(f1), g[1] = gate2(lower)
    g = _conv_call(
        (x2, stack_w("gate1", "gate2"),
         stack_v("gate1", "gate2", "scale"), stack_v("gate1", "gate2", "bias")),
        [x_pair(), w_pair, v_pair(), v_pair()],
        pair_out, x_pair(), grid=(2, N), dims=("parallel", "parallel"),
        gate_mode=None, num_residual=0, **common)

    # act[0] = convAct1(g1*f1), act[1] = convAct2(g2*lower)  (gating fused)
    act = _conv_call(
        (x2, g, stack_w("convAct1", "convAct2"),
         stack_v("convAct1", "convAct2", "scale"),
         stack_v("convAct1", "convAct2", "bias")),
        [x_pair(), x_pair(), w_pair, v_pair(), v_pair()],
        pair_out, x_pair(), grid=(2, N), dims=("parallel", "parallel"),
        gate_mode="mul", num_residual=0, **common)

    # f2 = lower + act2 + convLack((1 - g2) * act1): the (1-g) gating and both
    # residual adds are fused into the last conv kernel (no concat, no extra
    # elementwise HBM passes).  `lower` is fed in compute dtype.
    a1_spec = pl.BlockSpec((None, None, H, W, C), lambda n: (0, n, 0, 0, 0))
    a2_spec = pl.BlockSpec((None, None, H, W, C), lambda n: (1, n, 0, 0, 0))
    g2_spec = pl.BlockSpec((None, None, H, W, C), lambda n: (1, n, 0, 0, 0))
    lo_spec = pl.BlockSpec((None, H, W, C), lambda n: (n, 0, 0, 0))
    w_one = pl.BlockSpec((3, 3 * C, C), lambda n: (0, 0, 0))
    v_one = pl.BlockSpec((1, C), lambda n: (0, 0))
    lack_p = params["convLack"]

    f2 = _conv_call(
        (act, g, act, lo, lack_p["w3"].astype(cd),
         lack_p["scale"], lack_p["bias"]),
        [a1_spec, g2_spec, a2_spec, lo_spec, w_one, v_one, v_one],
        jax.ShapeDtypeStruct((N, H, W, C), jnp.float32),
        pl.BlockSpec((None, H, W, C), lambda n: (n, 0, 0, 0)),
        grid=(N,), dims=("parallel",),
        gate_mode="one_minus", num_residual=2, **common)

    return jnp.transpose(f2, (0, 3, 1, 2))


# ----------------------------------------------------------------------------
# Single fused conv block (used by the tight self-test) + pure-JAX references
# ----------------------------------------------------------------------------
def conv_bn_relu_pallas(x_nhwc, p, compute_dtype=jnp.float32):
    N, H, W, cin = x_nhwc.shape
    cout = p["w3"].shape[-1]
    cd = compute_dtype
    return _conv_call(
        (x_nhwc.astype(cd), p["w3"].astype(cd), p["scale"], p["bias"]),
        [pl.BlockSpec((None, H, W, cin), lambda n: (n, 0, 0, 0)),
         pl.BlockSpec((3, 3 * cin, cout), lambda n: (0, 0, 0)),
         pl.BlockSpec((1, cout), lambda n: (0, 0)),
         pl.BlockSpec((1, cout), lambda n: (0, 0))],
        jax.ShapeDtypeStruct((N, H, W, cout), jnp.float32),
        pl.BlockSpec((None, H, W, cout), lambda n: (n, 0, 0, 0)),
        grid=(N,), dims=("parallel",),
        H=H, W=W, cin=cin, cout=cout, gate_mode=None, num_residual=0,
        compute_dtype=cd)


def conv_bn_relu_ref(x_nhwc, p):
    y = lax.conv_general_dilated(
        x_nhwc, p["w_hwio"], window_strides=(1, 1), padding="SAME",
        dimension_numbers=("NHWC", "HWIO", "NHWC"),
        precision=lax.Precision.HIGHEST)
    y = y * p["scale"][0] + p["bias"][0]
    return jnp.maximum(y, 0.0)


@jax.jit
def gfm_forward_ref(higher_nchw, lower_nchw, params):
    hi = jnp.transpose(higher_nchw, (0, 2, 3, 1)).astype(jnp.float32)
    lo = jnp.transpose(lower_nchw, (0, 2, 3, 1)).astype(jnp.float32)
    H, W = lo.shape[1], lo.shape[2]
    f1 = bilinear_upsample_nhwc(hi, (H, W))
    g1 = conv_bn_relu_ref(f1, params["gate1"])
    act1 = conv_bn_relu_ref(g1 * f1, params["convAct1"])
    g2 = conv_bn_relu_ref(lo, params["gate2"])
    act2 = conv_bn_relu_ref(g2 * lo, params["convAct2"])
    lack = conv_bn_relu_ref((1.0 - g2) * act1, params["convLack"])
    f2 = lo + act2 + lack
    return jnp.transpose(f2, (0, 3, 1, 2))


if __name__ == "__main__":
    key = jax.random.PRNGKey(0)
    k_hi, k_lo, k_p = jax.random.split(key, 3)

    N, C, H, W = 2, 4, 16, 16
    higher = jax.random.normal(k_hi, (N, C, H // 2, W // 2), jnp.float32)
    lower = jax.random.normal(k_lo, (N, C, H, W), jnp.float32)
    params = make_gfm_params(k_p, C)

    # Default perf path: bf16 MXU inputs / bf16 inter-layer activations.
    out_bf16 = gfm_forward(higher, lower, params, compute_dtype=jnp.bfloat16)
    jax.block_until_ready(out_bf16)
    assert out_bf16.shape == (N, C, H, W)

    ref = gfm_forward_ref(higher, lower, params)

    # Exact path (f32 compute mode): tight tolerance.
    out_f32 = gfm_forward(higher, lower, params, compute_dtype=jnp.float32)
    np.testing.assert_allclose(np.asarray(out_f32), np.asarray(ref),
                               rtol=1e-4, atol=1e-4)

    # bf16 perf path: sanity check (bf16 storage + matmul rounding over 3 layers).
    np.testing.assert_allclose(np.asarray(out_bf16), np.asarray(ref),
                               rtol=5e-2, atol=5e-2)

    # Single fused conv + folded-BN + ReLU block vs lax conv reference (f32, tight).
    x_nhwc = jnp.transpose(lower, (0, 2, 3, 1))
    got = conv_bn_relu_pallas(x_nhwc, params["gate2"], jnp.float32)
    want = conv_bn_relu_ref(x_nhwc, params["gate2"])
    np.testing.assert_allclose(np.asarray(got), np.asarray(want),
                               rtol=1e-4, atol=1e-5)

    print("KERNEL_OK")
</pallas_src>

<mosaic_0001>
module attributes {stable_mosaic.version = 11 : i64} {
  func.func @_conv3x3_bn_relu_kernel(%arg0: i32, %arg1: i32, %arg2: memref<1x1x16x16x4xbf16, #tpu.memory_space<vmem>>, %arg3: memref<1x3x12x4xbf16, #tpu.memory_space<vmem>>, %arg4: memref<1x1x4xf32, #tpu.memory_space<vmem>>, %arg5: memref<1x1x4xf32, #tpu.memory_space<vmem>>, %arg6: memref<1x1x16x16x4xbf16, #tpu.memory_space<vmem>>, %arg7: memref<18x16x12xbf16, #tpu.memory_space<vmem>>) attributes {dimension_semantics = [#tpu.dimension_semantics<parallel>, #tpu.dimension_semantics<parallel>], iteration_bounds = array<i64: 2, 2>, scalar_prefetch = 0 : i64, scratch_operands = 1 : i64, tpu.core_type = #tpu.core_type<tc>, window_params = [{transform_indices = @transform_0, window_bounds = array<i64: 1, 1, 16, 16, 4>}, {transform_indices = @transform_1, window_bounds = array<i64: 1, 3, 12, 4>}, {transform_indices = @transform_2, window_bounds = array<i64: 1, 1, 4>}, {transform_indices = @transform_3, window_bounds = array<i64: 1, 1, 4>}, {transform_indices = @transform_4, window_bounds = array<i64: 1, 1, 16, 16, 4>}]} {
    %c0 = arith.constant 0 : index
    %c0_0 = arith.constant 0 : index
    %c0_1 = arith.constant 0 : index
    %c0_2 = arith.constant 0 : index
    %c0_3 = arith.constant 0 : index
    %0 = vector.load %arg2[%c0, %c0_0, %c0_1, %c0_2, %c0_3] : memref<1x1x16x16x4xbf16, #tpu.memory_space<vmem>>, vector<1x1x16x16x4xbf16>
    %1 = vector.shape_cast %0 : vector<1x1x16x16x4xbf16> to vector<16x16x4xbf16>
    %cst = arith.constant 0.000000e+00 : bf16
    %2 = vector.broadcast %cst : bf16 to vector<1x16x12xbf16>
    %c0_4 = arith.constant 0 : index
    %c0_5 = arith.constant 0 : index
    %c0_6 = arith.constant 0 : index
    %3 = vector.load %arg7[%c0_4, %c0_5, %c0_6] : memref<18x16x12xbf16, #tpu.memory_space<vmem>>, vector<1x16x12xbf16>
    tpu.vector_store %arg7[%c0_4, %c0_5, %c0_6], %2 {strides = array<i32>} : memref<18x16x12xbf16, #tpu.memory_space<vmem>>, vector<1x16x12xbf16>,
    %c17 = arith.constant 17 : index
    %c0_7 = arith.constant 0 : index
    %c0_8 = arith.constant 0 : index
    %4 = vector.load %arg7[%c17, %c0_7, %c0_8] : memref<18x16x12xbf16, #tpu.memory_space<vmem>>, vector<1x16x12xbf16>
    tpu.vector_store %arg7[%c17, %c0_7, %c0_8], %2 {strides = array<i32>} : memref<18x16x12xbf16, #tpu.memory_space<vmem>>, vector<1x16x12xbf16>,
    %cst_9 = arith.constant 0.000000e+00 : bf16
    %5 = vector.broadcast %cst_9 : bf16 to vector<16x1x4xbf16>
    %6 = vector.extract_strided_slice %1 {offsets = [0, 0, 0], sizes = [16, 15, 4], strides = [1, 1, 1]} : vector<16x16x4xbf16> to vector<16x15x4xbf16>
    %7 = tpu.concatenate %5, %6 in 1 : vector<16x1x4xbf16>, vector<16x15x4xbf16> -> vector<16x16x4xbf16>
    %8 = vector.extract_strided_slice %1 {offsets = [0, 1, 0], sizes = [16, 15, 4], strides = [1, 1, 1]} : vector<16x16x4xbf16> to vector<16x15x4xbf16>
    %9 = tpu.concatenate %8, %5 in 1 : vector<16x15x4xbf16>, vector<16x1x4xbf16> -> vector<16x16x4xbf16>
    %10 = tpu.concatenate %7, %1, %9 in 2 : vector<16x16x4xbf16>, vector<16x16x4xbf16>, vector<16x16x4xbf16> -> vector<16x16x12xbf16>
    %c1 = arith.constant 1 : index
    %c0_10 = arith.constant 0 : index
    %c0_11 = arith.constant 0 : index
    %11 = vector.load %arg7[%c1, %c0_10, %c0_11] : memref<18x16x12xbf16, #tpu.memory_space<vmem>>, vector<16x16x12xbf16>
    tpu.vector_store %arg7[%c1, %c0_10, %c0_11], %10 {strides = array<i32>} : memref<18x16x12xbf16, #tpu.memory_space<vmem>>, vector<16x16x12xbf16>,
    %c0_12 = arith.constant 0 : index
    %c0_13 = arith.constant 0 : index
    %c0_14 = arith.constant 0 : index
    %12 = vector.load %arg7[%c0_12, %c0_13, %c0_14] : memref<18x16x12xbf16, #tpu.memory_space<vmem>>, vector<16x16x12xbf16>
    %13 = vector.shape_cast %12 : vector<16x16x12xbf16> to vector<256x12xbf16>
    %c0_15 = arith.constant 0 : index
    %c0_16 = arith.constant 0 : index
    %c0_17 = arith.constant 0 : index
    %c0_18 = arith.constant 0 : index
    %14 = vector.load %arg3[%c0_15, %c0_16, %c0_17, %c0_18] : memref<1x3x12x4xbf16, #tpu.memory_space<vmem>>, vector<1x1x12x4xbf16>
    %15 = vector.shape_cast %14 : vector<1x1x12x4xbf16> to vector<12x4xbf16>
    %cst_19 = arith.constant dense<0.000000e+00> : vector<256x4xf32>
    %16 = tpu.matmul %13, %15, %cst_19 {dimension_numbers = #tpu.dot_dimension_numbers<[1], [0], [0], [1], [0, 0, 1, 1], [], []>} : vector<256x12xbf16>, vector<12x4xbf16>, vector<256x4xf32> -> vector<256x4xf32>
    %c1_20 = arith.constant 1 : index
    %c0_21 = arith.constant 0 : index
    %c0_22 = arith.constant 0 : index
    %17 = vector.load %arg7[%c1_20, %c0_21, %c0_22] : memref<18x16x12xbf16, #tpu.memory_space<vmem>>, vector<16x16x12xbf16>
    %18 = vector.shape_cast %17 : vector<16x16x12xbf16> to vector<256x12xbf16>
    %c0_23 = arith.constant 0 : index
    %c1_24 = arith.constant 1 : index
    %c0_25 = arith.constant 0 : index
    %c0_26 = arith.constant 0 : index
    %19 = vector.load %arg3[%c0_23, %c1_24, %c0_25, %c0_26] : memref<1x3x12x4xbf16, #tpu.memory_space<vmem>>, vector<1x1x12x4xbf16>
    %20 = vector.shape_cast %19 : vector<1x1x12x4xbf16> to vector<12x4xbf16>
    %cst_27 = arith.constant dense<0.000000e+00> : vector<256x4xf32>
    %21 = tpu.matmul %18, %20, %cst_27 {dimension_numbers = #tpu.dot_dimension_numbers<[1], [0], [0], [1], [0, 0, 1, 1], [], []>} : vector<256x12xbf16>, vector<12x4xbf16>, vector<256x4xf32> -> vector<256x4xf32>
    %22 = arith.addf %16, %21 : vector<256x4xf32>
    %c2 = arith.constant 2 : index
    %c0_28 = arith.constant 0 : index
    %c0_29 = arith.constant 0 : index
    %23 = vector.load %arg7[%c2, %c0_28, %c0_29] : memref<18x16x12xbf16, #tpu.memory_space<vmem>>, vector<16x16x12xbf16>
    %24 = vector.shape_cast %23 : vector<16x16x12xbf16> to vector<256x12xbf16>
    %c0_30 = arith.constant 0 : index
    %c2_31 = arith.constant 2 : index
    %c0_32 = arith.constant 0 : index
    %c0_33 = arith.constant 0 : index
    %25 = vector.load %arg3[%c0_30, %c2_31, %c0_32, %c0_33] : memref<1x3x12x4xbf16, #tpu.memory_space<vmem>>, vector<1x1x12x4xbf16>
    %26 = vector.shape_cast %25 : vector<1x1x12x4xbf16> to vector<12x4xbf16>
    %cst_34 = arith.constant dense<0.000000e+00> : vector<256x4xf32>
    %27 = tpu.matmul %24, %26, %cst_34 {dimension_numbers = #tpu.dot_dimension_numbers<[1], [0], [0], [1], [0, 0, 1, 1], [], []>} : vector<256x12xbf16>, vector<12x4xbf16>, vector<256x4xf32> -> vector<256x4xf32>
    %28 = arith.addf %22, %27 : vector<256x4xf32>
    %29 = vector.shape_cast %28 : vector<256x4xf32> to vector<16x16x4xf32>
    %c0_35 = arith.constant 0 : index
    %c0_36 = arith.constant 0 : index
    %c0_37 = arith.constant 0 : index
    %30 = vector.load %arg4[%c0_35, %c0_36, %c0_37] : memref<1x1x4xf32, #tpu.memory_space<vmem>>, vector<1x1x4xf32>
    %31 = vector.shape_cast %30 : vector<1x1x4xf32> to vector<4xf32>
    %32 = vector.shape_cast %31 : vector<4xf32> to vector<1x1x4xf32>
    %33 = vector.broadcast %32 : vector<1x1x4xf32> to vector<16x16x4xf32>
    %34 = arith.mulf %29, %33 : vector<16x16x4xf32>
    %c0_38 = arith.constant 0 : index
    %c0_39 = arith.constant 0 : index
    %c0_40 = arith.constant 0 : index
    %35 = vector.load %arg5[%c0_38, %c0_39, %c0_40] : memref<1x1x4xf32, #tpu.memory_space<vmem>>, vector<1x1x4xf32>
    %36 = vector.shape_cast %35 : vector<1x1x4xf32> to vector<4xf32>
    %37 = vector.shape_cast %36 : vector<4xf32> to vector<1x1x4xf32>
    %38 = vector.broadcast %37 : vector<1x1x4xf32> to vector<16x16x4xf32>
    %39 = arith.addf %34, %38 : vector<16x16x4xf32>
    %cst_41 = arith.constant 0.000000e+00 : f32
    %40 = vector.broadcast %cst_41 : f32 to vector<16x16x4xf32>
    %41 = arith.maximumf %39, %40 : vector<16x16x4xf32>
    %42 = arith.truncf %41 : vector<16x16x4xf32> to vector<16x16x4xbf16>
    %c0_42 = arith.constant 0 : index
    %c0_43 = arith.constant 0 : index
    %c0_44 = arith.constant 0 : index
    %c0_45 = arith.constant 0 : index
    %c0_46 = arith.constant 0 : index
    %43 = vector.load %arg6[%c0_42, %c0_43, %c0_44, %c0_45, %c0_46] : memref<1x1x16x16x4xbf16, #tpu.memory_space<vmem>>, vector<1x1x16x16x4xbf16>
    %44 = vector.shape_cast %43 : vector<1x1x16x16x4xbf16> to vector<16x16x4xbf16>
    %45 = vector.shape_cast %42 : vector<16x16x4xbf16> to vector<1x1x16x16x4xbf16>
    tpu.vector_store %arg6[%c0_42, %c0_43, %c0_44, %c0_45, %c0_46], %45 {strides = array<i32>} : memref<1x1x16x16x4xbf16, #tpu.memory_space<vmem>>, vector<1x1x16x16x4xbf16>,
    return
  }
  func.func @transform_0(%arg0: i32, %arg1: i32) -> (i32, i32, i32, i32, i32) {
    %c0_i32 = arith.constant 0 : i32
    %c0_i32_0 = arith.constant 0 : i32
    %c0_i32_1 = arith.constant 0 : i32
    %c0_i32_2 = arith.constant 0 : i32
    return %arg0, %arg1, %c0_i32, %c0_i32_0, %c0_i32_1 : i32, i32, i32, i32, i32
  }
  func.func @transform_1(%arg0: i32, %arg1: i32) -> (i32, i32, i32, i32) {
    %c0_i32 = arith.constant 0 : i32
    %c0_i32_0 = arith.constant 0 : i32
    %c0_i32_1 = arith.constant 0 : i32
    %c0_i32_2 = arith.constant 0 : i32
    return %arg0, %c0_i32, %c0_i32_0, %c0_i32_1 : i32, i32, i32, i32
  }
  func.func @transform_2(%arg0: i32, %arg1: i32) -> (i32, i32, i32) {
    %c0_i32 = arith.constant 0 : i32
    %c0_i32_0 = arith.constant 0 : i32
    %c0_i32_1 = arith.constant 0 : i32
    return %arg0, %c0_i32, %c0_i32_0 : i32, i32, i32
  }
  func.func @transform_3(%arg0: i32, %arg1: i32) -> (i32, i32, i32) {
    %c0_i32 = arith.constant 0 : i32
    %c0_i32_0 = arith.constant 0 : i32
    %c0_i32_1 = arith.constant 0 : i32
    return %arg0, %c0_i32, %c0_i32_0 : i32, i32, i32
  }
  func.func @transform_4(%arg0: i32, %arg1: i32) -> (i32, i32, i32, i32, i32) {
    %c0_i32 = arith.constant 0 : i32
    %c0_i32_0 = arith.constant 0 : i32
    %c0_i32_1 = arith.constant 0 : i32
    %c0_i32_2 = arith.constant 0 : i32
    return %arg0, %arg1, %c0_i32, %c0_i32_0, %c0_i32_1 : i32, i32, i32, i32, i32
  }
}

module attributes {stable_mosaic.version = 11 : i64} {
  func.func @_conv3x3_bn_relu_kernel(%arg0: i32, %arg1: i32, %arg2: memref<1x1x16x16x4xbf16, #tpu.memory_space<vmem>>, %arg3: memref<1x1x16x16x4xbf16, #tpu.memory_space<vmem>>, %arg4: memref<1x3x12x4xbf16, #tpu.memory_space<vmem>>, %arg5: memref<1x1x4xf32, #tpu.memory_space<vmem>>, %arg6: memref<1x1x4xf32, #tpu.memory_space<vmem>>, %arg7: memref<1x1x16x16x4xbf16, #tpu.memory_space<vmem>>, %arg8: memref<18x16x12xbf16, #tpu.memory_space<vmem>>) attributes {dimension_semantics = [#tpu.dimension_semantics<parallel>, #tpu.dimension_semantics<parallel>], iteration_bounds = array<i64: 2, 2>, scalar_prefetch = 0 : i64, scratch_operands = 1 : i64, tpu.core_type = #tpu.core_type<tc>, window_params = [{transform_indices = @transform_0, window_bounds = array<i64: 1, 1, 16, 16, 4>}, {transform_indices = @transform_1, window_bounds = array<i64: 1, 1, 16, 16, 4>}, {transform_indices = @transform_2, window_bounds = array<i64: 1, 3, 12, 4>}, {transform_indices = @transform_3, window_bounds = array<i64: 1, 1, 4>}, {transform_indices = @transform_4, window_bounds = array<i64: 1, 1, 4>}, {transform_indices = @transform_5, window_bounds = array<i64: 1, 1, 16, 16, 4>}]} {
    %c0 = arith.constant 0 : index
    %c0_0 = arith.constant 0 : index
    %c0_1 = arith.constant 0 : index
    %c0_2 = arith.constant 0 : index
    %c0_3 = arith.constant 0 : index
    %0 = vector.load %arg2[%c0, %c0_0, %c0_1, %c0_2, %c0_3] : memref<1x1x16x16x4xbf16, #tpu.memory_space<vmem>>, vector<1x1x16x16x4xbf16>
    %1 = vector.shape_cast %0 : vector<1x1x16x16x4xbf16> to vector<16x16x4xbf16>
    %c0_4 = arith.constant 0 : index
    %c0_5 = arith.constant 0 : index
    %c0_6 = arith.constant 0 : index
    %c0_7 = arith.constant 0 : index
    %c0_8 = arith.constant 0 : index
    %2 = vector.load %arg3[%c0_4, %c0_5, %c0_6, %c0_7, %c0_8] : memref<1x1x16x16x4xbf16, #tpu.memory_space<vmem>>, vector<1x1x16x16x4xbf16>
    %3 = vector.shape_cast %2 : vector<1x1x16x16x4xbf16> to vector<16x16x4xbf16>
    %4 = arith.mulf %1, %3 : vector<16x16x4xbf16>
    %cst = arith.constant 0.000000e+00 : bf16
    %5 = vector.broadcast %cst : bf16 to vector<1x16x12xbf16>
    %c0_9 = arith.constant 0 : index
    %c0_10 = arith.constant 0 : index
    %c0_11 = arith.constant 0 : index
    %6 = vector.load %arg8[%c0_9, %c0_10, %c0_11] : memref<18x16x12xbf16, #tpu.memory_space<vmem>>, vector<1x16x12xbf16>
    tpu.vector_store %arg8[%c0_9, %c0_10, %c0_11], %5 {strides = array<i32>} : memref<18x16x12xbf16, #tpu.memory_space<vmem>>, vector<1x16x12xbf16>,
    %c17 = arith.constant 17 : index
    %c0_12 = arith.constant 0 : index
    %c0_13 = arith.constant 0 : index
    %7 = vector.load %arg8[%c17, %c0_12, %c0_13] : memref<18x16x12xbf16, #tpu.memory_space<vmem>>, vector<1x16x12xbf16>
    tpu.vector_store %arg8[%c17, %c0_12, %c0_13], %5 {strides = array<i32>} : memref<18x16x12xbf16, #tpu.memory_space<vmem>>, vector<1x16x12xbf16>,
    %cst_14 = arith.constant 0.000000e+00 : bf16
    %8 = vector.broadcast %cst_14 : bf16 to vector<16x1x4xbf16>
    %9 = vector.extract_strided_slice %4 {offsets = [0, 0, 0], sizes = [16, 15, 4], strides = [1, 1, 1]} : vector<16x16x4xbf16> to vector<16x15x4xbf16>
    %10 = tpu.concatenate %8, %9 in 1 : vector<16x1x4xbf16>, vector<16x15x4xbf16> -> vector<16x16x4xbf16>
    %11 = vector.extract_strided_slice %4 {offsets = [0, 1, 0], sizes = [16, 15, 4], strides = [1, 1, 1]} : vector<16x16x4xbf16> to vector<16x15x4xbf16>
    %12 = tpu.concatenate %11, %8 in 1 : vector<16x15x4xbf16>, vector<16x1x4xbf16> -> vector<16x16x4xbf16>
    %13 = tpu.concatenate %10, %4, %12 in 2 : vector<16x16x4xbf16>, vector<16x16x4xbf16>, vector<16x16x4xbf16> -> vector<16x16x12xbf16>
    %c1 = arith.constant 1 : index
    %c0_15 = arith.constant 0 : index
    %c0_16 = arith.constant 0 : index
    %14 = vector.load %arg8[%c1, %c0_15, %c0_16] : memref<18x16x12xbf16, #tpu.memory_space<vmem>>, vector<16x16x12xbf16>
    tpu.vector_store %arg8[%c1, %c0_15, %c0_16], %13 {strides = array<i32>} : memref<18x16x12xbf16, #tpu.memory_space<vmem>>, vector<16x16x12xbf16>,
    %c0_17 = arith.constant 0 : index
    %c0_18 = arith.constant 0 : index
    %c0_19 = arith.constant 0 : index
    %15 = vector.load %arg8[%c0_17, %c0_18, %c0_19] : memref<18x16x12xbf16, #tpu.memory_space<vmem>>, vector<16x16x12xbf16>
    %16 = vector.shape_cast %15 : vector<16x16x12xbf16> to vector<256x12xbf16>
    %c0_20 = arith.constant 0 : index
    %c0_21 = arith.constant 0 : index
    %c0_22 = arith.constant 0 : index
    %c0_23 = arith.constant 0 : index
    %17 = vector.load %arg4[%c0_20, %c0_21, %c0_22, %c0_23] : memref<1x3x12x4xbf16, #tpu.memory_space<vmem>>, vector<1x1x12x4xbf16>
    %18 = vector.shape_cast %17 : vector<1x1x12x4xbf16> to vector<12x4xbf16>
    %cst_24 = arith.constant dense<0.000000e+00> : vector<256x4xf32>
    %19 = tpu.matmul %16, %18, %cst_24 {dimension_numbers = #tpu.dot_dimension_numbers<[1], [0], [0], [1], [0, 0, 1, 1], [], []>} : vector<256x12xbf16>, vector<12x4xbf16>, vector<256x4xf32> -> vector<256x4xf32>
    %c1_25 = arith.constant 1 : index
    %c0_26 = arith.constant 0 : index
    %c0_27 = arith.constant 0 : index
    %20 = vector.load %arg8[%c1_25, %c0_26, %c0_27] : memref<18x16x12xbf16, #tpu.memory_space<vmem>>, vector<16x16x12xbf16>
    %21 = vector.shape_cast %20 : vector<16x16x12xbf16> to vector<256x12xbf16>
    %c0_28 = arith.constant 0 : index
    %c1_29 = arith.constant 1 : index
    %c0_30 = arith.constant 0 : index
    %c0_31 = arith.constant 0 : index
    %22 = vector.load %arg4[%c0_28, %c1_29, %c0_30, %c0_31] : memref<1x3x12x4xbf16, #tpu.memory_space<vmem>>, vector<1x1x12x4xbf16>
    %23 = vector.shape_cast %22 : vector<1x1x12x4xbf16> to vector<12x4xbf16>
    %cst_32 = arith.constant dense<0.000000e+00> : vector<256x4xf32>
    %24 = tpu.matmul %21, %23, %cst_32 {dimension_numbers = #tpu.dot_dimension_numbers<[1], [0], [0], [1], [0, 0, 1, 1], [], []>} : vector<256x12xbf16>, vector<12x4xbf16>, vector<256x4xf32> -> vector<256x4xf32>
    %25 = arith.addf %19, %24 : vector<256x4xf32>
    %c2 = arith.constant 2 : index
    %c0_33 = arith.constant 0 : index
    %c0_34 = arith.constant 0 : index
    %26 = vector.load %arg8[%c2, %c0_33, %c0_34] : memref<18x16x12xbf16, #tpu.memory_space<vmem>>, vector<16x16x12xbf16>
    %27 = vector.shape_cast %26 : vector<16x16x12xbf16> to vector<256x12xbf16>
    %c0_35 = arith.constant 0 : index
    %c2_36 = arith.constant 2 : index
    %c0_37 = arith.constant 0 : index
    %c0_38 = arith.constant 0 : index
    %28 = vector.load %arg4[%c0_35, %c2_36, %c0_37, %c0_38] : memref<1x3x12x4xbf16, #tpu.memory_space<vmem>>, vector<1x1x12x4xbf16>
    %29 = vector.shape_cast %28 : vector<1x1x12x4xbf16> to vector<12x4xbf16>
    %cst_39 = arith.constant dense<0.000000e+00> : vector<256x4xf32>
    %30 = tpu.matmul %27, %29, %cst_39 {dimension_numbers = #tpu.dot_dimension_numbers<[1], [0], [0], [1], [0, 0, 1, 1], [], []>} : vector<256x12xbf16>, vector<12x4xbf16>, vector<256x4xf32> -> vector<256x4xf32>
    %31 = arith.addf %25, %30 : vector<256x4xf32>
    %32 = vector.shape_cast %31 : vector<256x4xf32> to vector<16x16x4xf32>
    %c0_40 = arith.constant 0 : index
    %c0_41 = arith.constant 0 : index
    %c0_42 = arith.constant 0 : index
    %33 = vector.load %arg5[%c0_40, %c0_41, %c0_42] : memref<1x1x4xf32, #tpu.memory_space<vmem>>, vector<1x1x4xf32>
    %34 = vector.shape_cast %33 : vector<1x1x4xf32> to vector<4xf32>
    %35 = vector.shape_cast %34 : vector<4xf32> to vector<1x1x4xf32>
    %36 = vector.broadcast %35 : vector<1x1x4xf32> to vector<16x16x4xf32>
    %37 = arith.mulf %32, %36 : vector<16x16x4xf32>
    %c0_43 = arith.constant 0 : index
    %c0_44 = arith.constant 0 : index
    %c0_45 = arith.constant 0 : index
    %38 = vector.load %arg6[%c0_43, %c0_44, %c0_45] : memref<1x1x4xf32, #tpu.memory_space<vmem>>, vector<1x1x4xf32>
    %39 = vector.shape_cast %38 : vector<1x1x4xf32> to vector<4xf32>
    %40 = vector.shape_cast %39 : vector<4xf32> to vector<1x1x4xf32>
    %41 = vector.broadcast %40 : vector<1x1x4xf32> to vector<16x16x4xf32>
    %42 = arith.addf %37, %41 : vector<16x16x4xf32>
    %cst_46 = arith.constant 0.000000e+00 : f32
    %43 = vector.broadcast %cst_46 : f32 to vector<16x16x4xf32>
    %44 = arith.maximumf %42, %43 : vector<16x16x4xf32>
    %45 = arith.truncf %44 : vector<16x16x4xf32> to vector<16x16x4xbf16>
    %c0_47 = arith.constant 0 : index
    %c0_48 = arith.constant 0 : index
    %c0_49 = arith.constant 0 : index
    %c0_50 = arith.constant 0 : index
    %c0_51 = arith.constant 0 : index
    %46 = vector.load %arg7[%c0_47, %c0_48, %c0_49, %c0_50, %c0_51] : memref<1x1x16x16x4xbf16, #tpu.memory_space<vmem>>, vector<1x1x16x16x4xbf16>
    %47 = vector.shape_cast %46 : vector<1x1x16x16x4xbf16> to vector<16x16x4xbf16>
    %48 = vector.shape_cast %45 : vector<16x16x4xbf16> to vector<1x1x16x16x4xbf16>
    tpu.vector_store %arg7[%c0_47, %c0_48, %c0_49, %c0_50, %c0_51], %48 {strides = array<i32>} : memref<1x1x16x16x4xbf16, #tpu.memory_space<vmem>>, vector<1x1x16x16x4xbf16>,
    return
  }
  func.func @transform_0(%arg0: i32, %arg1: i32) -> (i32, i32, i32, i32, i32) {
    %c0_i32 = arith.constant 0 : i32
    %c0_i32_0 = arith.constant 0 : i32
    %c0_i32_1 = arith.constant 0 : i32
    %c0_i32_2 = arith.constant 0 : i32
    return %arg0, %arg1, %c0_i32, %c0_i32_0, %c0_i32_1 : i32, i32, i32, i32, i32
  }
  func.func @transform_1(%arg0: i32, %arg1: i32) -> (i32, i32, i32, i32, i32) {
    %c0_i32 = arith.constant 0 : i32
    %c0_i32_0 = arith.constant 0 : i32
    %c0_i32_1 = arith.constant 0 : i32
    %c0_i32_2 = arith.constant 0 : i32
    return %arg0, %arg1, %c0_i32, %c0_i32_0, %c0_i32_1 : i32, i32, i32, i32, i32
  }
  func.func @transform_2(%arg0: i32, %arg1: i32) -> (i32, i32, i32, i32) {
    %c0_i32 = arith.constant 0 : i32
    %c0_i32_0 = arith.constant 0 : i32
    %c0_i32_1 = arith.constant 0 : i32
    %c0_i32_2 = arith.constant 0 : i32
    return %arg0, %c0_i32, %c0_i32_0, %c0_i32_1 : i32, i32, i32, i32
  }
  func.func @transform_3(%arg0: i32, %arg1: i32) -> (i32, i32, i32) {
    %c0_i32 = arith.constant 0 : i32
    %c0_i32_0 = arith.constant 0 : i32
    %c0_i32_1 = arith.constant 0 : i32
    return %arg0, %c0_i32, %c0_i32_0 : i32, i32, i32
  }
  func.func @transform_4(%arg0: i32, %arg1: i32) -> (i32, i32, i32) {
    %c0_i32 = arith.constant 0 : i32
    %c0_i32_0 = arith.constant 0 : i32
    %c0_i32_1 = arith.constant 0 : i32
    return %arg0, %c0_i32, %c0_i32_0 : i32, i32, i32
  }
  func.func @transform_5(%arg0: i32, %arg1: i32) -> (i32, i32, i32, i32, i32) {
    %c0_i32 = arith.constant 0 : i32
    %c0_i32_0 = arith.constant 0 : i32
    %c0_i32_1 = arith.constant 0 : i32
    %c0_i32_2 = arith.constant 0 : i32
    return %arg0, %arg1, %c0_i32, %c0_i32_0, %c0_i32_1 : i32, i32, i32, i32, i32
  }
}

module attributes {stable_mosaic.version = 11 : i64} {
  func.func @_conv3x3_bn_relu_kernel(%arg0: i32, %arg1: memref<1x1x16x16x4xbf16, #tpu.memory_space<vmem>>, %arg2: memref<1x1x16x16x4xbf16, #tpu.memory_space<vmem>>, %arg3: memref<1x1x16x16x4xbf16, #tpu.memory_space<vmem>>, %arg4: memref<1x16x16x4xbf16, #tpu.memory_space<vmem>>, %arg5: memref<3x12x4xbf16, #tpu.memory_space<vmem>>, %arg6: memref<1x4xf32, #tpu.memory_space<vmem>>, %arg7: memref<1x4xf32, #tpu.memory_space<vmem>>, %arg8: memref<1x16x16x4xf32, #tpu.memory_space<vmem>>, %arg9: memref<18x16x12xbf16, #tpu.memory_space<vmem>>) attributes {dimension_semantics = [#tpu.dimension_semantics<parallel>], iteration_bounds = array<i64: 2>, scalar_prefetch = 0 : i64, scratch_operands = 1 : i64, tpu.core_type = #tpu.core_type<tc>, window_params = [{transform_indices = @transform_0, window_bounds = array<i64: 1, 1, 16, 16, 4>}, {transform_indices = @transform_1, window_bounds = array<i64: 1, 1, 16, 16, 4>}, {transform_indices = @transform_2, window_bounds = array<i64: 1, 1, 16, 16, 4>}, {transform_indices = @transform_3, window_bounds = array<i64: 1, 16, 16, 4>}, {pipeline_mode = #tpu.pipeline_mode<synchronous>, transform_indices = @transform_4, window_bounds = array<i64: 3, 12, 4>}, {pipeline_mode = #tpu.pipeline_mode<synchronous>, transform_indices = @transform_5, window_bounds = array<i64: 1, 4>}, {pipeline_mode = #tpu.pipeline_mode<synchronous>, transform_indices = @transform_6, window_bounds = array<i64: 1, 4>}, {transform_indices = @transform_7, window_bounds = array<i64: 1, 16, 16, 4>}]} {
    %c0 = arith.constant 0 : index
    %c0_0 = arith.constant 0 : index
    %c0_1 = arith.constant 0 : index
    %c0_2 = arith.constant 0 : index
    %c0_3 = arith.constant 0 : index
    %0 = vector.load %arg1[%c0, %c0_0, %c0_1, %c0_2, %c0_3] : memref<1x1x16x16x4xbf16, #tpu.memory_space<vmem>>, vector<1x1x16x16x4xbf16>
    %1 = vector.shape_cast %0 : vector<1x1x16x16x4xbf16> to vector<16x16x4xbf16>
    %c0_4 = arith.constant 0 : index
    %c0_5 = arith.constant 0 : index
    %c0_6 = arith.constant 0 : index
    %c0_7 = arith.constant 0 : index
    %c0_8 = arith.constant 0 : index
    %2 = vector.load %arg2[%c0_4, %c0_5, %c0_6, %c0_7, %c0_8] : memref<1x1x16x16x4xbf16, #tpu.memory_space<vmem>>, vector<1x1x16x16x4xbf16>
    %3 = vector.shape_cast %2 : vector<1x1x16x16x4xbf16> to vector<16x16x4xbf16>
    %cst = arith.constant 1.000000e+00 : bf16
    %4 = vector.broadcast %cst : bf16 to vector<16x16x4xbf16>
    %5 = arith.subf %4, %3 : vector<16x16x4xbf16>
    %6 = arith.mulf %1, %5 : vector<16x16x4xbf16>
    %cst_9 = arith.constant 0.000000e+00 : bf16
    %7 = vector.broadcast %cst_9 : bf16 to vector<1x16x12xbf16>
    %c0_10 = arith.constant 0 : index
    %c0_11 = arith.constant 0 : index
    %c0_12 = arith.constant 0 : index
    %8 = vector.load %arg9[%c0_10, %c0_11, %c0_12] : memref<18x16x12xbf16, #tpu.memory_space<vmem>>, vector<1x16x12xbf16>
    tpu.vector_store %arg9[%c0_10, %c0_11, %c0_12], %7 {strides = array<i32>} : memref<18x16x12xbf16, #tpu.memory_space<vmem>>, vector<1x16x12xbf16>,
    %c17 = arith.constant 17 : index
    %c0_13 = arith.constant 0 : index
    %c0_14 = arith.constant 0 : index
    %9 = vector.load %arg9[%c17, %c0_13, %c0_14] : memref<18x16x12xbf16, #tpu.memory_space<vmem>>, vector<1x16x12xbf16>
    tpu.vector_store %arg9[%c17, %c0_13, %c0_14], %7 {strides = array<i32>} : memref<18x16x12xbf16, #tpu.memory_space<vmem>>, vector<1x16x12xbf16>,
    %cst_15 = arith.constant 0.000000e+00 : bf16
    %10 = vector.broadcast %cst_15 : bf16 to vector<16x1x4xbf16>
    %11 = vector.extract_strided_slice %6 {offsets = [0, 0, 0], sizes = [16, 15, 4], strides = [1, 1, 1]} : vector<16x16x4xbf16> to vector<16x15x4xbf16>
    %12 = tpu.concatenate %10, %11 in 1 : vector<16x1x4xbf16>, vector<16x15x4xbf16> -> vector<16x16x4xbf16>
    %13 = vector.extract_strided_slice %6 {offsets = [0, 1, 0], sizes = [16, 15, 4], strides = [1, 1, 1]} : vector<16x16x4xbf16> to vector<16x15x4xbf16>
    %14 = tpu.concatenate %13, %10 in 1 : vector<16x15x4xbf16>, vector<16x1x4xbf16> -> vector<16x16x4xbf16>
    %15 = tpu.concatenate %12, %6, %14 in 2 : vector<16x16x4xbf16>, vector<16x16x4xbf16>, vector<16x16x4xbf16> -> vector<16x16x12xbf16>
    %c1 = arith.constant 1 : index
    %c0_16 = arith.constant 0 : index
    %c0_17 = arith.constant 0 : index
    %16 = vector.load %arg9[%c1, %c0_16, %c0_17] : memref<18x16x12xbf16, #tpu.memory_space<vmem>>, vector<16x16x12xbf16>
    tpu.vector_store %arg9[%c1, %c0_16, %c0_17], %15 {strides = array<i32>} : memref<18x16x12xbf16, #tpu.memory_space<vmem>>, vector<16x16x12xbf16>,
    %c0_18 = arith.constant 0 : index
    %c0_19 = arith.constant 0 : index
    %c0_20 = arith.constant 0 : index
    %17 = vector.load %arg9[%c0_18, %c0_19, %c0_20] : memref<18x16x12xbf16, #tpu.memory_space<vmem>>, vector<16x16x12xbf16>
    %18 = vector.shape_cast %17 : vector<16x16x12xbf16> to vector<256x12xbf16>
    %c0_21 = arith.constant 0 : index
    %c0_22 = arith.constant 0 : index
    %c0_23 = arith.constant 0 : index
    %19 = vector.load %arg5[%c0_21, %c0_22, %c0_23] : memref<3x12x4xbf16, #tpu.memory_space<vmem>>, vector<1x12x4xbf16>
    %20 = vector.shape_cast %19 : vector<1x12x4xbf16> to vector<12x4xbf16>
    %cst_24 = arith.constant dense<0.000000e+00> : vector<256x4xf32>
    %21 = tpu.matmul %18, %20, %cst_24 {dimension_numbers = #tpu.dot_dimension_numbers<[1], [0], [0], [1], [0, 0, 1, 1], [], []>} : vector<256x12xbf16>, vector<12x4xbf16>, vector<256x4xf32> -> vector<256x4xf32>
    %c1_25 = arith.constant 1 : index
    %c0_26 = arith.constant 0 : index
    %c0_27 = arith.constant 0 : index
    %22 = vector.load %arg9[%c1_25, %c0_26, %c0_27] : memref<18x16x12xbf16, #tpu.memory_space<vmem>>, vector<16x16x12xbf16>
    %23 = vector.shape_cast %22 : vector<16x16x12xbf16> to vector<256x12xbf16>
    %c1_28 = arith.constant 1 : index
    %c0_29 = arith.constant 0 : index
    %c0_30 = arith.constant 0 : index
    %24 = vector.load %arg5[%c1_28, %c0_29, %c0_30] : memref<3x12x4xbf16, #tpu.memory_space<vmem>>, vector<1x12x4xbf16>
    %25 = vector.shape_cast %24 : vector<1x12x4xbf16> to vector<12x4xbf16>
    %cst_31 = arith.constant dense<0.000000e+00> : vector<256x4xf32>
    %26 = tpu.matmul %23, %25, %cst_31 {dimension_numbers = #tpu.dot_dimension_numbers<[1], [0], [0], [1], [0, 0, 1, 1], [], []>} : vector<256x12xbf16>, vector<12x4xbf16>, vector<256x4xf32> -> vector<256x4xf32>
    %27 = arith.addf %21, %26 : vector<256x4xf32>
    %c2 = arith.constant 2 : index
    %c0_32 = arith.constant 0 : index
    %c0_33 = arith.constant 0 : index
    %28 = vector.load %arg9[%c2, %c0_32, %c0_33] : memref<18x16x12xbf16, #tpu.memory_space<vmem>>, vector<16x16x12xbf16>
    %29 = vector.shape_cast %28 : vector<16x16x12xbf16> to vector<256x12xbf16>
    %c2_34 = arith.constant 2 : index
    %c0_35 = arith.constant 0 : index
    %c0_36 = arith.constant 0 : index
    %30 = vector.load %arg5[%c2_34, %c0_35, %c0_36] : memref<3x12x4xbf16, #tpu.memory_space<vmem>>, vector<1x12x4xbf16>
    %31 = vector.shape_cast %30 : vector<1x12x4xbf16> to vector<12x4xbf16>
    %cst_37 = arith.constant dense<0.000000e+00> : vector<256x4xf32>
    %32 = tpu.matmul %29, %31, %cst_37 {dimension_numbers = #tpu.dot_dimension_numbers<[1], [0], [0], [1], [0, 0, 1, 1], [], []>} : vector<256x12xbf16>, vector<12x4xbf16>, vector<256x4xf32> -> vector<256x4xf32>
    %33 = arith.addf %27, %32 : vector<256x4xf32>
    %34 = vector.shape_cast %33 : vector<256x4xf32> to vector<16x16x4xf32>
    %c0_38 = arith.constant 0 : index
    %c0_39 = arith.constant 0 : index
    %35 = vector.load %arg6[%c0_38, %c0_39] : memref<1x4xf32, #tpu.memory_space<vmem>>, vector<1x4xf32>
    %36 = vector.shape_cast %35 : vector<1x4xf32> to vector<4xf32>
    %37 = vector.shape_cast %36 : vector<4xf32> to vector<1x1x4xf32>
    %38 = vector.broadcast %37 : vector<1x1x4xf32> to vector<16x16x4xf32>
    %39 = arith.mulf %34, %38 : vector<16x16x4xf32>
    %c0_40 = arith.constant 0 : index
    %c0_41 = arith.constant 0 : index
    %40 = vector.load %arg7[%c0_40, %c0_41] : memref<1x4xf32, #tpu.memory_space<vmem>>, vector<1x4xf32>
    %41 = vector.shape_cast %40 : vector<1x4xf32> to vector<4xf32>
    %42 = vector.shape_cast %41 : vector<4xf32> to vector<1x1x4xf32>
    %43 = vector.broadcast %42 : vector<1x1x4xf32> to vector<16x16x4xf32>
    %44 = arith.addf %39, %43 : vector<16x16x4xf32>
    %cst_42 = arith.constant 0.000000e+00 : f32
    %45 = vector.broadcast %cst_42 : f32 to vector<16x16x4xf32>
    %46 = arith.maximumf %44, %45 : vector<16x16x4xf32>
    %c0_43 = arith.constant 0 : index
    %c0_44 = arith.constant 0 : index
    %c0_45 = arith.constant 0 : index
    %c0_46 = arith.constant 0 : index
    %c0_47 = arith.constant 0 : index
    %47 = vector.load %arg3[%c0_43, %c0_44, %c0_45, %c0_46, %c0_47] : memref<1x1x16x16x4xbf16, #tpu.memory_space<vmem>>, vector<1x1x16x16x4xbf16>
    %48 = vector.shape_cast %47 : vector<1x1x16x16x4xbf16> to vector<16x16x4xbf16>
    %49 = arith.extf %48 : vector<16x16x4xbf16> to vector<16x16x4xf32>
    %50 = arith.addf %46, %49 : vector<16x16x4xf32>
    %c0_48 = arith.constant 0 : index
    %c0_49 = arith.constant 0 : index
    %c0_50 = arith.constant 0 : index
    %c0_51 = arith.constant 0 : index
    %51 = vector.load %arg4[%c0_48, %c0_49, %c0_50, %c0_51] : memref<1x16x16x4xbf16, #tpu.memory_space<vmem>>, vector<1x16x16x4xbf16>
    %52 = vector.shape_cast %51 : vector<1x16x16x4xbf16> to vector<16x16x4xbf16>
    %53 = arith.extf %52 : vector<16x16x4xbf16> to vector<16x16x4xf32>
    %54 = arith.addf %50, %53 : vector<16x16x4xf32>
    %c0_52 = arith.constant 0 : index
    %c0_53 = arith.constant 0 : index
    %c0_54 = arith.constant 0 : index
    %c0_55 = arith.constant 0 : index
    %55 = vector.load %arg8[%c0_52, %c0_53, %c0_54, %c0_55] : memref<1x16x16x4xf32, #tpu.memory_space<vmem>>, vector<1x16x16x4xf32>
    %56 = vector.shape_cast %55 : vector<1x16x16x4xf32> to vector<16x16x4xf32>
    %57 = vector.shape_cast %54 : vector<16x16x4xf32> to vector<1x16x16x4xf32>
    tpu.vector_store %arg8[%c0_52, %c0_53, %c0_54, %c0_55], %57 {strides = array<i32>} : memref<1x16x16x4xf32, #tpu.memory_space<vmem>>, vector<1x16x16x4xf32>,
    return
  }
  func.func @transform_0(%arg0: i32) -> (i32, i32, i32, i32, i32) {
    %c0_i32 = arith.constant 0 : i32
    %c0_i32_0 = arith.constant 0 : i32
    %c0_i32_1 = arith.constant 0 : i32
    %c0_i32_2 = arith.constant 0 : i32
    %c0_i32_3 = arith.constant 0 : i32
    return %c0_i32, %arg0, %c0_i32_0, %c0_i32_1, %c0_i32_2 : i32, i32, i32, i32, i32
  }
  func.func @transform_1(%arg0: i32) -> (i32, i32, i32, i32, i32) {
    %c1_i32 = arith.constant 1 : i32
    %c0_i32 = arith.constant 0 : i32
    %c0_i32_0 = arith.constant 0 : i32
    %c0_i32_1 = arith.constant 0 : i32
    %c0_i32_2 = arith.constant 0 : i32
    return %c1_i32, %arg0, %c0_i32, %c0_i32_0, %c0_i32_1 : i32, i32, i32, i32, i32
  }
  func.func @transform_2(%arg0: i32) -> (i32, i32, i32, i32, i32) {
    %c1_i32 = arith.constant 1 : i32
    %c0_i32 = arith.constant 0 : i32
    %c0_i32_0 = arith.constant 0 : i32
    %c0_i32_1 = arith.constant 0 : i32
    %c0_i32_2 = arith.constant 0 : i32
    return %c1_i32, %arg0, %c0_i32, %c0_i32_0, %c0_i32_1 : i32, i32, i32, i32, i32
  }
  func.func @transform_3(%arg0: i32) -> (i32, i32, i32, i32) {
    %c0_i32 = arith.constant 0 : i32
    %c0_i32_0 = arith.constant 0 : i32
    %c0_i32_1 = arith.constant 0 : i32
    %c0_i32_2 = arith.constant 0 : i32
    return %arg0, %c0_i32, %c0_i32_0, %c0_i32_1 : i32, i32, i32, i32
  }
  func.func @transform_4(%arg0: i32) -> (i32, i32, i32) {
    %c0_i32 = arith.constant 0 : i32
    %c0_i32_0 = arith.constant 0 : i32
    %c0_i32_1 = arith.constant 0 : i32
    %c0_i32_2 = arith.constant 0 : i32
    return %c0_i32, %c0_i32_0, %c0_i32_1 : i32, i32, i32
  }
  func.func @transform_5(%arg0: i32) -> (i32, i32) {
    %c0_i32 = arith.constant 0 : i32
    %c0_i32_0 = arith.constant 0 : i32
    %c0_i32_1 = arith.constant 0 : i32
    return %c0_i32, %c0_i32_0 : i32, i32
  }
  func.func @transform_6(%arg0: i32) -> (i32, i32) {
    %c0_i32 = arith.constant 0 : i32
    %c0_i32_0 = arith.constant 0 : i32
    %c0_i32_1 = arith.constant 0 : i32
    return %c0_i32, %c0_i32_0 : i32, i32
  }
  func.func @transform_7(%arg0: i32) -> (i32, i32, i32, i32) {
    %c0_i32 = arith.constant 0 : i32
    %c0_i32_0 = arith.constant 0 : i32
    %c0_i32_1 = arith.constant 0 : i32
    %c0_i32_2 = arith.constant 0 : i32
    return %arg0, %c0_i32, %c0_i32_0, %c0_i32_1 : i32, i32, i32, i32
  }
}

</mosaic_0001>

<bundles_post_ra>
// kernel: gfm_forward.3
= control target key start
LH: loop header
LB: loop body
LE: loop exit
PB: predicated region body
PF: predicated region fallthrough
CT: control target
= control target key end

     0   :  { %s2548_s15 = smov 0   ;;  %s2550_s16 = smov 0   ;;  %s3277_s0 = inlined_call_operand.vmem [shape: bf16[2,2,16,16,4], index: 0, kind: input, shape index: {}]   ;;  %s3278_s1 = inlined_call_operand.vmem [shape: bf16[2,3,12,4], index: 1, kind: input, shape index: {}]   ;;  %s3279_s2 = inlined_call_operand.vmem [shape: f32[2,1,4], index: 2, kind: input, shape index: {}]   ;;  %s3280_s3 = inlined_call_operand.vmem [shape: f32[2,1,4], index: 3, kind: input, shape index: {}]   ;;  %s3281_s4 = inlined_call_operand.vmem [shape: bf16[2,2,16,16,4], index: 4, kind: output, shape index: {}]  }
   0x1   :  { %s2552_s17 = smov 0   ;;  %s2554_s18 = smov 0  }
   0x2   :  { %s2556_s19 = smov 0  }
   0x3 LB: > { %s23_s20 = sadd.s32 1, %s2510_s17  ;;  %s26_s21 = sadd.s32 1, %s2514_s18  ;;  %s2518_s19 = sphi %s2556_s19, %s14_s19   ;;  %s2514_s18 = sphi %s2554_s18, %s3289_s18   ;;  %s2510_s17 = sphi %s2552_s17, %s3288_s17   ;;  %s2506_s16 = sphi %s2550_s16, %s3287_s16   ;;  %s2502_s15 = sphi %s2548_s15, %s3286_s15  }
   0x4   : > { %p24_p0 = scmp.ge.s32.totalorder %s23_s20, 2  ;;  %p2034_p1 = scmp.ge.s32.totalorder %s2518_s19, 1 }
   0x5   : > { %p208_p2 = scmp.lt.s32.totalorder %s2518_s19, 5 }
   0x6   : > { %s3291_s20 = smov (%p24_p0, %s23_s20), 0  ;;  %s3293_s21 = smov (!%p24_p0, %s26_s21), %s2514_s18 }
   0x7   : > { %p209_p3 = pnand %p2034_p1, %p208_p2  ;;  %p28_p4 = scmp.ge.s32.totalorder %s3293_s21, 2 }
   0x8   : > { %p253_p5 = scmp.lt.s32.totalorder (!%p209_p3), %s2506_s16, 1  ;;  %p255_p6 = scmp.lt.s32.totalorder (!%p209_p3), %s2502_s15, 1 }
   0x9   : > { %s3295_s21 = smov (%p28_p4, %s3293_s21), 0  ;;  %212 = sbr.rel (%p209_p3) target bundleno = 491 (0x1eb), region = 36 }
   0xa   : > { %s2520_s29 = smov (!%p209_p3), 4   ;;  %s2521_s30 = smov (!%p209_p3), 8  }
   0xe   : > { %s3297_s16 = smov (!%p253_p5, %s2506_s16), 1  ;;  %s3299_s15 = smov (!%p255_p6, %s2502_s15), 1  ;;  %vm596_vm0 = vcmask 1047552   ;;  %vm597_vm1 = vsmask.f32 7424  ;;  %vm1125_vm3 = vcmask 1045504  }
   0xf   : > { %s2036_s22 = sshll.u32 %s3297_s16, 6  ;;  %s2035_s23 = sshll.u32 %s3299_s15, 5  ;;  %vm2611_vm2 = vmand %vm596_vm0, %vm597_vm1  ;;  %vm315_vm4 = vcmask 93184   ;;  %vm1076_vm5 = vcmask 97280   ;;  %vm529_vm6 = vcmask 1040384   ;;  %vm695_vm9 = vcmask 31744  }
  0x10   : > { %s2581_s24 = sadd.s32 %s2036_s22, %s2035_s23  ;;  %s2434_s5 = smul.u32 24, %s3297_s16  ;;  %vm530_vm7 = vsmask.f32 256  ;;  %vm744_vm10 = vcmask 64512   ;;  %vm1872_vm11 = vcmask 27648  }
  0x11   : > { %s2037_s25 = sshll.u32 %s2581_s24, 2  ;;  %vm2812_vm8 = vmand %vm529_vm6, %vm530_vm7  ;;  %s269_s11 = scalar_lea.vmem %s3279_s2, %s3297_s16 }
  0x12   : > { %s2589_s28 = scalar_lea.vmem %s3277_s0, %s2037_s25  ;;  %s2755_s8 = scalar_lea.vmem %s3278_s1, %s2434_s5 }
  0x13   : > { %v2592_v0 = vld [vmem:[%s2589_s28 + $0x8] sm:$0xff]  ;;  %v2595_v1 = vld [vmem:[%s2589_s28] sm:$0xff]  ;;  %v2630_v17 = vld [vmem:[%s2589_s28 + $0x10] sm:$0xff]  ;;  %s272_s14 = scalar_lea.vmem %s3280_s3, %s3297_s16 }
  0x14   : > { %v2598_v2 = vld [vmem:[%s2589_s28 + $0x60] sm:$0xff]  ;;  %617 = vrot.lane.b32.xlu0 %v2592_v0, %s2520_s29  ;;  %v409_v3 = vshrl.u32 %v2592_v0, 16  ;;  %v412_v4 = vshll.u32 %v2592_v0, 16  ;;  %615 = vrot.lane.b32.xlu2 %v2595_v1, %s2520_s29  ;;  %v402_v6 = vshrl.u32 %v2595_v1, 16  ;;  %v405_v7 = vshll.u32 %v2595_v1, 16  ;;  %v2625_v15 = vld [vmem:[%s2589_s28 + $0x68] sm:$0xff] }
  0x15   : > { %v489_v5 = vshll.u32 %v2598_v2, 16  ;;  %v486_v12 = vshrl.u32 %v2598_v2, 16  ;;  %v416_v20 = vshrl.u32 %v2630_v17, 16  ;;  %v419_v21 = vshll.u32 %v2630_v17, 16  ;;  %v2653_v28 = vld [vmem:[%s2589_s28 + $0x18] sm:$0xff]  ;;  %v2665_v32 = vld [vmem:[%s2589_s28 + $0x70] sm:$0xff] }
  0x16   : > { %v550_v8 = vrot.slane %v412_v4, 1  ;;  %v548_v10 = vrot.slane %v405_v7, 1  ;;  %v496_v22 = vshll.u32 %v2625_v15, 16  ;;  %v493_v26 = vshrl.u32 %v2625_v15, 16  ;;  %v2684_v40 = vld [vmem:[%s2589_s28 + $0x20] sm:$0xff]  ;;  %v2689_v42 = vld [vmem:[%s2589_s28 + $0x78] sm:$0xff] }
  0x17   : > { %v572_v13 = vrot.slane %v489_v5, 1  ;;  %v552_v23 = vrot.slane %v419_v21, 1  ;;  %v426_v31 = vshll.u32 %v2653_v28, 16  ;;  %v423_v34 = vshrl.u32 %v2653_v28, 16  ;;  %v2694_v43 = vld [vmem:[%s2589_s28 + $0x28] sm:$0xff]  ;;  %v2715_v54 = vld [vmem:[%s2589_s28 + $0x58] sm:$0xff] }
  0x18   : > { %v551_v11 = vor.u32 %v550_v8, %v409_v3  ;;  %v549_v14 = vor.u32 %v548_v10, %v402_v6  ;;  %v574_v27 = vrot.slane %v496_v22, 1  ;;  %v503_v36 = vshll.u32 %v2665_v32, 16 }
  0x19   : > { %v573_v19 = vor.u32 %v572_v13, %v486_v12  ;;  %v553_v25 = vor.u32 %v552_v23, %v416_v20  ;;  %v554_v35 = vrot.slane %v426_v31, 1  ;;  %v500_v38 = vshrl.u32 %v2665_v32, 16 }
  0x1a   : > { %v600_v16 = vsel %vm2611_vm2, %v551_v11, 0  ;;  %v599_v18 = vsel %vm2611_vm2, %v549_v14, 0  ;;  %v575_v30 = vor.u32 %v574_v27, %v493_v26  ;;  %v576_v39 = vrot.slane %v503_v36, 1  ;;  %v2758_v14 = vld [vmem:[%s2589_s28 + $0x30] sm:$0xff] }
  0x1b   : > { %665 = vrot.lane.b32.xlu1 %v600_v16, %s2521_s30  ;;  %v611_v24 = vsel %vm2611_vm2, %v573_v19, 0  ;;  %v601_v29 = vsel %vm2611_vm2, %v553_v25, 0  ;;  %v555_v37 = vor.u32 %v554_v35, %v423_v34  ;;  %v507_v44 = vshrl.u32 %v2689_v42, 16  ;;  %v2396_v19 = vld [vmem:[%s2755_s8] sm:$0x30] }
  0x1c   : > { %639 = vrot.lane.b32.xlu0 %v2598_v2, %s2520_s29  ;;  %663 = vrot.lane.b32.xlu2 %v599_v18, %s2521_s30  ;;  %v612_v33 = vsel %vm2611_vm2, %v575_v30, 0  ;;  %v510_v45 = vshll.u32 %v2689_v42, 16  ;;  %v577_v46 = vor.u32 %v576_v39, %v500_v38  ;;  %v433_v47 = vshll.u32 %v2684_v40, 16  ;;  %v2258_v18 = vld [vmem:[%s2755_s8] sm:$0xf] }
  0x1d   : > { %v602_v41 = vsel %vm2611_vm2, %v555_v37, 0  ;;  %v440_v49 = vshll.u32 %v2694_v43, 16  ;;  %v430_v52 = vshrl.u32 %v2684_v40, 16  ;;  %v437_v56 = vshrl.u32 %v2694_v43, 16  ;;  %v2174_v39 = vld [vmem:[%s2755_s8 + $0x8] sm:$0xf] }
  0x1e   : > { %v578_v48 = vrot.slane %v510_v45, 1  ;;  %v613_v51 = vsel %vm2611_vm2, %v577_v46, 0  ;;  %v556_v53 = vrot.slane %v433_v47, 1  ;;  %v482_v59 = vshll.u32 %v2715_v54, 16  ;;  %v2791_v46 = vld [vmem:[%s2589_s28 + $0x40] sm:$0xff] }
  0x1f   : > { %v558_v57 = vrot.slane %v440_v49, 1  ;;  %v479_v62 = vshrl.u32 %v2715_v54, 16  ;;  %v404_v13 = vrot.slane %v402_v6, 7  ;;  %v2765_v6 = vld [vmem:[%s2589_s28 + $0x38] sm:$0xff]  ;;  %v2259_v23 = vor.u32 %v2396_v19, %v2258_v18  ;;  %v2344_v19 = vld [vmem:[%s2755_s8 + $0x10] sm:$0xf] }
  0x20   : > { %v579_v50 = vor.u32 %v578_v48, %v507_v44  ;;  %v557_v58 = vor.u32 %v556_v53, %v430_v52  ;;  %v570_v63 = vrot.slane %v482_v59, 1  ;;  %v454_v25 = vshll.u32 %v2765_v6, 16 }
  0x21   : > { %v559_v60 = vor.u32 %v558_v57, %v437_v56  ;;  %v407_v16 = vor.u32 %v405_v7, %v404_v13  ;;  %v2522_v27 = vmov 0   ;;  %v447_v35 = vshll.u32 %v2758_v14, 16 }
  0x22   : > { %v614_v55 = vsel %vm2611_vm2, %v579_v50, 0  ;;  %v603_v61 = vsel %vm2611_vm2, %v557_v58, 0  ;;  %v571_v10 = vor.u32 %v570_v63, %v479_v62  ;;  %316 = vst.msk [vmem:[#allocation2] sm:$0xf] %vm315_vm4, %v2522_v27  ;;  %v562_v1 = vrot.slane %v454_v25, 1 }
  0x23   : > { %687 = vrot.lane.b32.xlu1 %v611_v24, %s2521_s30  ;;  %v604_v8 = vsel %vm2611_vm2, %v559_v60, 0  ;;  %v451_v24 = vshrl.u32 %v2765_v6, 16  ;;  %317 = vst.msk [vmem:[#allocation2 + $0x4] sm:$0xf] %vm315_vm4, %v2522_v27  ;;  %v444_v37 = vshrl.u32 %v2758_v14, 16  ;;  %v560_v48 = vrot.slane %v447_v35, 1 }
  0x24   : > { %619 = vrot.lane.b32.xlu0 %v2630_v17, %s2520_s29  ;;  %667 = vrot.lane.b32.xlu2 %v601_v29, %s2521_s30  ;;  %v610_v11 = vsel %vm2611_vm2, %v571_v10, 0  ;;  %v1352_v29 = vsel %vm1125_vm3, %v2259_v23, 0  ;;  %319 = vst.msk [vmem:[#allocation2 + $0x88] sm:$0xf] %vm315_vm4, %v2522_v27  ;;  %v461_v53 = vshll.u32 %v2791_v46, 16  ;;  %v488_v0 = vrot.slane %v486_v12, 7 }
  0x25   : > { %1361 = vmatpush.bf16.msra.mxu1 %v1352_v29  ;;  %320 = vst.msk [vmem:[#allocation2 + $0x8c] sm:$0xf] %vm315_vm4, %v2522_v27  ;;  %v563_v7 = vor.u32 %v562_v1, %v451_v24  ;;  %v2430_v23 = vld [vmem:[%s2755_s8 + $0x10] sm:$0x30] }
  0x26   : > { %v564_v58 = vrot.slane %v461_v53, 1 }
  0x27   : > { %v606_v30 = vsel %vm2611_vm2, %v563_v7, 0 }
  0x2b   : > { %641 = vrot.lane.b32.xlu1 %v2625_v15, %s2520_s29 }
  0x2c   : > { %689 = vrot.lane.b32.xlu0 %v612_v33, %s2521_s30  ;;  %643 = vrot.lane.b32.xlu2 %v2665_v32, %s2520_s29  ;;  %v2380_v33 = vld [vmem:[#allocation2] sm:$0xff] }
  0x2d   : > { %2260 = vmatmul.msk.bf16.vlgmr.msra.gmra.mxu1 %vm1076_vm5, %v2380_v33  ;;  %v2826_v33 = vld [vmem:[%s2589_s28 + $0x48] sm:$0xff] }
  0x33   : > { %621 = vrot.lane.b32.xlu1 %v2653_v28, %s2520_s29 }
  0x34   : > { %669 = vrot.lane.b32.xlu0 %v602_v41, %s2521_s30  ;;  %623 = vrot.lane.b32.xlu2 %v2684_v40, %s2520_s29  ;;  %v2413_v41 = vld [vmem:[%s2755_s8 + $0x8] sm:$0x30] }
  0x35   : > { %v2175_v50 = vor.u32 %v2413_v41, %v2174_v39 }
  0x37   : > { %v1127_v57 = vsel %vm1125_vm3, %v2175_v50, 0 }
  0x38   : > { %1136 = vmatpush.bf16.msra.mxu0 %v1127_v57  ;;  %2431 = vmatpush.bf16.msra.mxu3 %v1127_v57  ;;  %v2838_v57 = vld [vmem:[%s2589_s28 + $0x50] sm:$0xff] }
  0x3b   : > { %691 = vrot.lane.b32.xlu1 %v613_v51, %s2521_s30  ;;  %v458_v51 = vshrl.u32 %v2791_v46, 16 }
  0x3c   : > { %645 = vrot.lane.b32.xlu0 %v2689_v42, %s2520_s29  ;;  %693 = vrot.lane.b32.xlu2 %v614_v55, %s2521_s30  ;;  %v561_v55 = vor.u32 %v560_v48, %v444_v37 }
  0x3d   : > { %2432 = vmatpush.bf16.msrb.mxu3 %v1352_v29  ;;  %v2345_v29 = vor.u32 %v2430_v23, %v2344_v19 }
  0x3e   : > { %v605_v60 = vsel %vm2611_vm2, %v561_v55, 0 }
  0x43   : > { %671 = vrot.lane.b32.xlu1 %v603_v61, %s2521_s30  ;;  %v565_v61 = vor.u32 %v564_v58, %v458_v51 }
  0x44   : > { %625 = vrot.lane.b32.xlu0 %v2694_v43, %s2520_s29  ;;  %673 = vrot.lane.b32.xlu2 %v604_v8, %s2521_s30 }
  0x45   : > { %v607_v63 = vsel %vm2611_vm2, %v565_v61, 0  ;;  %v475_v61 = vshll.u32 %v2838_v57, 16 }
  0x4b   : > { %637 = vrot.lane.b32.xlu1 %v2715_v54, %s2520_s29 }
  0x4c   : > { %685 = vrot.lane.b32.xlu0 %v610_v11, %s2521_s30  ;;  %675 = vrot.lane.b32.xlu2 %v605_v60, %s2521_s30  ;;  %v532_v11 = vsel %vm2812_vm8, 0, %v407_v16  ;;  %v411_v16 = vrot.slane %v409_v3, 7  ;;  %v472_v60 = vshrl.u32 %v2838_v57, 16 }
  0x4e   : > { %v414_v48 = vor.u32 %v412_v4, %v411_v16  ;;  %v568_v4 = vrot.slane %v475_v61, 1 }
  0x50   : > { %v533_v3 = vsel %vm2812_vm8, 0, %v414_v48 }
  0x53   : > { %627 = vrot.lane.b32.xlu1 %v2758_v14, %s2520_s29 }
  0x54   : > { %629 = vrot.lane.b32.xlu0 %v2765_v6, %s2520_s29  ;;  %631 = vrot.lane.b32.xlu2 %v2791_v46, %s2520_s29 }
  0x5b   : > { %677 = vrot.lane.b32.xlu1 %v606_v30, %s2521_s30  ;;  %v2823_v30 = vsel %vm1125_vm3, %v2345_v29, 0  ;;  %v468_v29 = vshll.u32 %v2826_v33, 16 }
  0x5c   : > { %679 = vrot.lane.b32.xlu0 %v607_v63, %s2521_s30  ;;  %1622 = vmatpush.bf16.msra.mxu2 %v2823_v30  ;;  %v569_v63 = vor.u32 %v568_v4, %v472_v60 }
  0x5e   : > { %v609_v12 = vsel %vm2611_vm2, %v569_v63, 0 }
  0x63   : > { %633 = vrot.lane.b32.xlu1 %v2826_v33, %s2520_s29 }
  0x64   : > { %635 = vrot.lane.b32.xlu0 %v2838_v57, %s2520_s29  ;;  %s3076_s29 = scalar_lea.vmem %s3281_s4, %s2037_s25 }
  0x6b   : > { %683 = vrot.lane.b32.xlu1 %v609_v12, %s2521_s30 }
  0x6e   : > { %v616_v10 = vpop.permute.xlu2 %615 }
  0x6f   : > { %v698_v13 = vsel %vm695_vm9, %v532_v11, %v616_v10  ;;  %v418_v11 = vrot.slane %v416_v20, 7  ;;  %v566_v20 = vrot.slane %v468_v29, 1 }
  0x76   : > { %v664_v18 = vpop.permute.xlu2 %663 }
  0x77   : > { %v746_v27 = vsel %vm744_vm10, %v698_v13, %v664_v18  ;;  %v491_v13 = vor.u32 %v489_v5, %v488_v0  ;;  %v421_v5 = vor.u32 %v419_v21, %v418_v11 }
  0x78   : > { %v793_v1 = vunpack.c.l.b16 %v746_v27  ;;  %v794_v7 = vunpack.c.h.b16 %v746_v27  ;;  %v465_v27 = vshrl.u32 %v2826_v33, 16 }
  0x79   : > { %v544_v2 = vsel %vm2812_vm8, 0, %v491_v13  ;;  %v534_v17 = vsel %vm2812_vm8, 0, %v421_v5 }
  0x7a   : > { %v825_v39 = vpack.c.b16 %v793_v1, %v793_v1  ;;  %v826_v41 = vpack.c.b16 %v794_v7, %v794_v7  ;;  %v567_v48 = vor.u32 %v566_v20, %v465_v27 }
  0x7c   : > { %890 = vst.msk [vmem:[#allocation2 + $0x8] sm:$0xf] %vm315_vm4, %v825_v39  ;;  %v608_v21 = vsel %vm2611_vm2, %v567_v48, 0  ;;  %v502_v48 = vrot.slane %v500_v38, 7 }
  0x7d   : > { %891 = vst.msk [vmem:[#allocation2 + $0xc] sm:$0xf] %vm315_vm4, %v826_v41  ;;  %681 = vrot.lane.b32.xlu2 %v608_v21, %s2521_s30 }
  0x7e   : > { %v668_v39 = vpop.permute.xlu2 %667  ;;  %v505_v28 = vor.u32 %v503_v36, %v502_v48  ;;  %v481_v48 = vrot.slane %v479_v62, 7 }
  0x80   : > { %v546_v32 = vsel %vm2812_vm8, 0, %v505_v28  ;;  %v484_v28 = vor.u32 %v482_v59, %v481_v48 }
  0x82   : > { %v543_v54 = vsel %vm2812_vm8, 0, %v484_v28 }
  0x84   : > { %v2397_v50 = vld [vmem:[#allocation2 + $0x8] sm:$0xff] }
  0x85   : > { %v2381_v55 = vld [vmem:[#allocation2 + $0x8] sm:$0xff]  ;;  %2176 = vmatmul.msk.bf16.vlgmr.msra.gmra.mxu0 %vm1076_vm5, %v2397_v50  ;;  %v495_v50 = vrot.slane %v493_v26, 7 }
  0x86   : > { %v618_v58 = vpop.permute.xlu0 %617  ;;  %2261 = vmatmul.msk.bf16.gmra.mxu1 %vm1076_vm5, %v2381_v55  ;;  %v644_v11 = vpop.permute.xlu2 %643 }
  0x87   : > { %v701_v10 = vsel %vm695_vm9, %v533_v3, %v618_v58 }
  0x8d   : > { %v666_v18 = vpop.permute.xlu1 %665 }
  0x8e   : > { %v748_v19 = vsel %vm744_vm10, %v701_v10, %v666_v18  ;;  %v640_v23 = vpop.permute.xlu0 %639  ;;  %v498_v10 = vor.u32 %v496_v22, %v495_v50 }
  0x8f   : > { %v795_v1 = vunpack.c.l.b16 %v748_v19  ;;  %v796_v7 = vunpack.c.h.b16 %v748_v19  ;;  %v734_v55 = vsel %vm695_vm9, %v544_v2, %v640_v23  ;;  %v425_v23 = vrot.slane %v423_v34, 7 }
  0x90   : > { %v545_v22 = vsel %vm2812_vm8, 0, %v498_v10 }
  0x91   : > { %v827_v41 = vpack.c.b16 %v795_v1, %v795_v1  ;;  %v828_v16 = vpack.c.b16 %v796_v7, %v796_v7 }
  0x93   : > { %892 = vst.msk [vmem:[#allocation2 + $0x10] sm:$0xf] %vm315_vm4, %v827_v41 }
  0x94   : > { %893 = vst.msk [vmem:[#allocation2 + $0x14] sm:$0xf] %vm315_vm4, %v828_v16  ;;  %v428_v16 = vor.u32 %v426_v31, %v425_v23 }
  0x95   : > { %v688_v58 = vpop.permute.xlu1 %687 }
  0x96   : > { %v770_v0 = vsel %vm744_vm10, %v734_v55, %v688_v58  ;;  %v620_v3 = vpop.permute.xlu0 %619 }
  0x97   : > { %v817_v4 = vunpack.c.l.b16 %v770_v0  ;;  %v818_v26 = vunpack.c.h.b16 %v770_v0  ;;  %v704_v63 = vsel %vm695_vm9, %v534_v17, %v620_v3  ;;  %v624_v17 = vpop.permute.xlu2 %623  ;;  %v535_v3 = vsel %vm2812_vm8, 0, %v428_v16 }
  0x98   : > { %v750_v13 = vsel %vm744_vm10, %v704_v63, %v668_v39  ;;  %v432_v63 = vrot.slane %v430_v52, 7  ;;  %v439_v52 = vrot.slane %v437_v56, 7 }
  0x99   : > { %v849_v12 = vpack.c.b16 %v817_v4, %v817_v4  ;;  %v850_v18 = vpack.c.b16 %v818_v26, %v818_v26  ;;  %v797_v9 = vunpack.c.l.b16 %v750_v13  ;;  %v798_v19 = vunpack.c.h.b16 %v750_v13 }
  0x9a   : > { %v509_v4 = vrot.slane %v507_v44, 7 }
  0x9b   : > { %914 = vst.msk [vmem:[#allocation2 + $0x68] sm:$0xf] %vm315_vm4, %v849_v12  ;;  %v2414_v1 = vld [vmem:[#allocation2 + $0x10] sm:$0xff]  ;;  %v829_v7 = vpack.c.b16 %v797_v9, %v797_v9  ;;  %v830_v2 = vpack.c.b16 %v798_v19, %v798_v19 }
  0x9c   : > { %v2398_v5 = vld [vmem:[#allocation2 + $0x10] sm:$0xff]  ;;  %915 = vst.msk [vmem:[#allocation2 + $0x6c] sm:$0xf] %vm315_vm4, %v850_v18  ;;  %2346 = vmatmul.msk.bf16.vlgmr.msra.gmra.mxu2 %vm1076_vm5, %v2414_v1  ;;  %v512_v36 = vor.u32 %v510_v45, %v509_v4 }
  0x9d   : > { %v2382_v15 = vld [vmem:[#allocation2 + $0x10] sm:$0xff]  ;;  %894 = vst.msk [vmem:[#allocation2 + $0x18] sm:$0xf] %vm315_vm4, %v829_v7  ;;  %2177 = vmatmul.msk.bf16.gmra.mxu0 %vm1076_vm5, %v2398_v5  ;;  %v642_v34 = vpop.permute.xlu1 %641  ;;  %v435_v7 = vor.u32 %v433_v47, %v432_v63 }
  0x9e   : > { %895 = vst.msk [vmem:[#allocation2 + $0x1c] sm:$0xf] %vm315_vm4, %v830_v2  ;;  %2262 = vmatmul.msk.bf16.gmra.mxu1 %vm1076_vm5, %v2382_v15  ;;  %v737_v39 = vsel %vm695_vm9, %v545_v22, %v642_v34  ;;  %v690_v20 = vpop.permute.xlu0 %689  ;;  %v547_v42 = vsel %vm2812_vm8, 0, %v512_v36  ;;  %v442_v22 = vor.u32 %v440_v49, %v439_v52  ;;  %v446_v36 = vrot.slane %v444_v37, 7 }
  0x9f   : > { %v772_v41 = vsel %vm744_vm10, %v737_v39, %v690_v20  ;;  %v694_v1 = vpop.permute.xlu2 %693  ;;  %v536_v47 = vsel %vm2812_vm8, 0, %v435_v7  ;;  %v453_v52 = vrot.slane %v451_v24, 7 }
  0xa0   : > { %v819_v50 = vunpack.c.l.b16 %v772_v41  ;;  %v820_v55 = vunpack.c.h.b16 %v772_v41  ;;  %v537_v43 = vsel %vm2812_vm8, 0, %v442_v22 }
  0xa2   : > { %v851_v21 = vpack.c.b16 %v819_v50, %v819_v50  ;;  %v852_v58 = vpack.c.b16 %v820_v55, %v820_v55  ;;  %v710_v50 = vsel %vm695_vm9, %v536_v47, %v624_v17 }
  0xa3   : > { %v2409_v0 = vld [vmem:[#allocation2 + $0x68] sm:$0xff] }
  0xa4   : > { %916 = vst.msk [vmem:[#allocation2 + $0x70] sm:$0xf] %vm315_vm4, %v851_v21  ;;  %2188 = vmatmul.msk.bf16.vlgmr.msra.gmra.mxu3 %vm1076_vm5, %v2409_v0 }
  0xa5   : > { %917 = vst.msk [vmem:[#allocation2 + $0x74] sm:$0xf] %vm315_vm4, %v852_v58  ;;  %v622_v31 = vpop.permute.xlu1 %621  ;;  %2433 = vmatpush.bf16.msra.mxu3 %v2823_v30  ;;  %v2399_v12 = vld [vmem:[#allocation2 + $0x18] sm:$0xff]  ;;  %v740_v30 = vsel %vm695_vm9, %v546_v32, %v644_v11 }
  0xa6   : > { %v707_v38 = vsel %vm695_vm9, %v535_v3, %v622_v31  ;;  %v670_v26 = vpop.permute.xlu0 %669  ;;  %v2415_v18 = vld [vmem:[#allocation2 + $0x18] sm:$0xff] }
  0xa7   : > { %v752_v44 = vsel %vm744_vm10, %v707_v38, %v670_v26  ;;  %v2383_v23 = vld [vmem:[#allocation2 + $0x18] sm:$0xff]  ;;  %v674_v58 = vpop.permute.xlu2 %673 }
  0xa8   : > { %v799_v10 = vunpack.c.l.b16 %v752_v44  ;;  %v800_v13 = vunpack.c.h.b16 %v752_v44 }
  0xaa   : > { %v831_v9 = vpack.c.b16 %v799_v10, %v799_v10  ;;  %v832_v19 = vpack.c.b16 %v800_v13, %v800_v13 }
  0xac   : > { %896 = vst.msk [vmem:[#allocation2 + $0x20] sm:$0xf] %vm315_vm4, %v831_v9  ;;  %2347 = vmatmul.msk.bf16.gmra.mxu2 %vm1076_vm5, %v2415_v18  ;;  %v2410_v34 = vld [vmem:[#allocation2 + $0x70] sm:$0xff] }
  0xad   : > { %897 = vst.msk [vmem:[#allocation2 + $0x24] sm:$0xf] %vm315_vm4, %v832_v19  ;;  %2178 = vmatmul.msk.bf16.gmra.mxu0 %vm1076_vm5, %v2399_v12  ;;  %v692_v45 = vpop.permute.xlu1 %691  ;;  %v2394_v57 = vld [vmem:[#allocation2 + $0x70] sm:$0xff] }
  0xae   : > { %2263 = vmatmul.msk.bf16.gmra.mxu1 %vm1076_vm5, %v2383_v23  ;;  %v774_v11 = vsel %vm744_vm10, %v740_v30, %v692_v45  ;;  %v646_v56 = vpop.permute.xlu0 %645  ;;  %v449_v23 = vor.u32 %v447_v35, %v446_v36  ;;  %v456_v35 = vor.u32 %v454_v25, %v453_v52 }
  0xaf   : > { %v821_v2 = vunpack.c.l.b16 %v774_v11  ;;  %v822_v5 = vunpack.c.h.b16 %v774_v11  ;;  %v743_v40 = vsel %vm695_vm9, %v547_v42, %v646_v56  ;;  %v676_v56 = vpop.permute.xlu2 %675 }
  0xb0   : > { %v776_v15 = vsel %vm744_vm10, %v743_v40, %v694_v1  ;;  %v538_v11 = vsel %vm2812_vm8, 0, %v449_v23  ;;  %v539_v47 = vsel %vm2812_vm8, 0, %v456_v35 }
  0xb1   : > { %v853_v39 = vpack.c.b16 %v821_v2, %v821_v2  ;;  %v854_v20 = vpack.c.b16 %v822_v5, %v822_v5  ;;  %v823_v41 = vunpack.c.l.b16 %v776_v15  ;;  %v824_v16 = vunpack.c.h.b16 %v776_v15 }
  0xb3   : > { %918 = vst.msk [vmem:[#allocation2 + $0x78] sm:$0xf] %vm315_vm4, %v853_v39  ;;  %v855_v55 = vpack.c.b16 %v823_v41, %v823_v41  ;;  %v856_v21 = vpack.c.b16 %v824_v16, %v824_v16 }
  0xb4   : > { %919 = vst.msk [vmem:[#allocation2 + $0x7c] sm:$0xf] %vm315_vm4, %v854_v20  ;;  %2189 = vmatmul.msk.bf16.gmra.mxu3 %vm1076_vm5, %v2410_v34  ;;  %v2400_v63 = vld [vmem:[#allocation2 + $0x20] sm:$0xff] }
  0xb5   : > { %v672_v49 = vpop.permute.xlu1 %671  ;;  %920 = vst.msk [vmem:[#allocation2 + $0x80] sm:$0xf] %vm315_vm4, %v855_v55  ;;  %v2416_v44 = vld [vmem:[#allocation2 + $0x20] sm:$0xff]  ;;  %v460_v55 = vrot.slane %v458_v51, 7 }
  0xb6   : > { %v754_v0 = vsel %vm744_vm10, %v710_v50, %v672_v49  ;;  %921 = vst.msk [vmem:[#allocation2 + $0x84] sm:$0xf] %vm315_vm4, %v856_v21  ;;  %v626_v62 = vpop.permute.xlu0 %625  ;;  %v2384_v32 = vld [vmem:[#allocation2 + $0x20] sm:$0xff] }
  0xb7   : > { %v801_v3 = vunpack.c.l.b16 %v754_v0  ;;  %v802_v17 = vunpack.c.h.b16 %v754_v0  ;;  %v713_v4 = vsel %vm695_vm9, %v537_v43, %v626_v62  ;;  %v632_v0 = vpop.permute.xlu2 %631 }
  0xb8   : > { %v756_v31 = vsel %vm744_vm10, %v713_v4, %v674_v58  ;;  %v463_v58 = vor.u32 %v461_v53, %v460_v55  ;;  %v467_v53 = vrot.slane %v465_v27, 7  ;;  %v3057_v55 = vld [vmem:[%s269_s11] ss:$0 sm:$0xff] }
  0xb9   : > { %v833_v38 = vpack.c.b16 %v801_v3, %v801_v3  ;;  %v834_v26 = vpack.c.b16 %v802_v17, %v802_v17  ;;  %v803_v10 = vunpack.c.l.b16 %v756_v31  ;;  %v804_v13 = vunpack.c.h.b16 %v756_v31 }
  0xba   : > { %v540_v62 = vsel %vm2812_vm8, 0, %v463_v58 }
  0xbb   : > { %898 = vst.msk [vmem:[#allocation2 + $0x28] sm:$0xf] %vm315_vm4, %v833_v38  ;;  %v835_v12 = vpack.c.b16 %v803_v10, %v803_v10  ;;  %v836_v18 = vpack.c.b16 %v804_v13, %v804_v13  ;;  %v2411_v7 = vld [vmem:[#allocation2 + $0x78] sm:$0xff]  ;;  %v722_v3 = vsel %vm695_vm9, %v540_v62, %v632_v0  ;;  %v470_v10 = vor.u32 %v468_v29, %v467_v53 }
  0xbc   : > { %899 = vst.msk [vmem:[#allocation2 + $0x2c] sm:$0xf] %vm315_vm4, %v834_v26  ;;  %2348 = vmatmul.msk.bf16.gmra.mxu2 %vm1076_vm5, %v2416_v44 }
  0xbd   : > { %2179 = vmatmul.msk.bf16.gmra.mxu0 %vm1076_vm5, %v2400_v63  ;;  %900 = vst.msk [vmem:[#allocation2 + $0x30] sm:$0xf] %vm315_vm4, %v835_v12  ;;  %v638_v59 = vpop.permute.xlu1 %637  ;;  %v2412_v21 = vld [vmem:[#allocation2 + $0x80] sm:$0xff]  ;;  %v541_v12 = vsel %vm2812_vm8, 0, %v470_v10 }
  0xbe   : > { %2264 = vmatmul.msk.bf16.gmra.mxu1 %vm1076_vm5, %v2384_v32  ;;  %901 = vst.msk [vmem:[#allocation2 + $0x34] sm:$0xf] %vm315_vm4, %v836_v18  ;;  %v731_v37 = vsel %vm695_vm9, %v543_v54, %v638_v59  ;;  %v686_v9 = vpop.permute.xlu0 %685 }
  0xbf   : > { %v768_v19 = vsel %vm744_vm10, %v731_v37, %v686_v9  ;;  %v2393_v37 = vld [vmem:[#allocation2 + $0x68] sm:$0xff]  ;;  %v1363_v9 = vpop.f32.mrf.mxu1 }
  0xc0   : > { %v815_v30 = vunpack.c.l.b16 %v768_v19  ;;  %v816_v1 = vunpack.c.h.b16 %v768_v19 }
  0xc2   : > { %v847_v42 = vpack.c.b16 %v815_v30, %v815_v30  ;;  %v848_v45 = vpack.c.b16 %v816_v1, %v816_v1  ;;  %v474_v30 = vrot.slane %v472_v60, 7 }
  0xc3   : > { %v2417_v22 = vld [vmem:[#allocation2 + $0x28] sm:$0xff] }
  0xc4   : > { %912 = vst.msk [vmem:[#allocation2 + $0x60] sm:$0xf] %vm315_vm4, %v847_v42  ;;  %2190 = vmatmul.msk.bf16.gmra.mxu3 %vm1076_vm5, %v2411_v7  ;;  %v2401_v34 = vld [vmem:[#allocation2 + $0x28] sm:$0xff]  ;;  %v477_v42 = vor.u32 %v475_v61, %v474_v30 }
  0xc5   : > { %913 = vst.msk [vmem:[#allocation2 + $0x64] sm:$0xf] %vm315_vm4, %v848_v45  ;;  %v628_v14 = vpop.permute.xlu1 %627  ;;  %v2385_v39 = vld [vmem:[#allocation2 + $0x28] sm:$0xff]  ;;  %v2418_v51 = vld [vmem:[#allocation2 + $0x30] sm:$0xff] }
  0xc6   : > { %v716_v2 = vsel %vm695_vm9, %v538_v11, %v628_v14  ;;  %v630_v15 = vpop.permute.xlu0 %629  ;;  %v2402_v4 = vld [vmem:[#allocation2 + $0x30] sm:$0xff] }
  0xc7   : > { %v758_v24 = vsel %vm744_vm10, %v716_v2, %v676_v56  ;;  %v719_v16 = vsel %vm695_vm9, %v539_v47, %v630_v15  ;;  %v2386_v31 = vld [vmem:[#allocation2 + $0x30] sm:$0xff]  ;;  %v1365_v11 = vpop.f32.mrf.mxu1  ;;  %v542_v56 = vsel %vm2812_vm8, 0, %v477_v42 }
  0xc8   : > { %v805_v5 = vunpack.c.l.b16 %v758_v24  ;;  %v806_v40 = vunpack.c.h.b16 %v758_v24 }
  0xca   : > { %v837_v20 = vpack.c.b16 %v805_v5, %v805_v5  ;;  %v838_v41 = vpack.c.b16 %v806_v40, %v806_v40 }
  0xcc   : > { %902 = vst.msk [vmem:[#allocation2 + $0x38] sm:$0xf] %vm315_vm4, %v837_v20  ;;  %2349 = vmatmul.msk.bf16.gmra.mxu2 %vm1076_vm5, %v2417_v22  ;;  %v2392_v46 = vld [vmem:[#allocation2 + $0x60] sm:$0xff]  ;;  %v2395_v20 = vld [vmem:[#allocation2 + $0x78] sm:$0xff] }
  0xcd   : > { %2180 = vmatmul.msk.bf16.gmra.mxu0 %vm1076_vm5, %v2401_v34  ;;  %903 = vst.msk [vmem:[#allocation2 + $0x3c] sm:$0xf] %vm315_vm4, %v838_v41  ;;  %v678_v6 = vpop.permute.xlu1 %677 }
  0xce   : > { %2265 = vmatmul.msk.bf16.gmra.mxu1 %vm1076_vm5, %v2385_v39  ;;  %v760_v25 = vsel %vm744_vm10, %v719_v16, %v678_v6  ;;  %v680_v17 = vpop.permute.xlu0 %679 }
  0xcf   : > { %v807_v48 = vunpack.c.l.b16 %v760_v25  ;;  %v808_v50 = vunpack.c.h.b16 %v760_v25  ;;  %v762_v28 = vsel %vm744_vm10, %v722_v3, %v680_v17  ;;  %v2426_v3 = vld [vmem:[#allocation2 + $0x70] sm:$0xff] }
  0xd0   : > { %v809_v38 = vunpack.c.l.b16 %v762_v28  ;;  %v810_v26 = vunpack.c.h.b16 %v762_v28 }
  0xd1   : > { %v839_v43 = vpack.c.b16 %v807_v48, %v807_v48  ;;  %v840_v49 = vpack.c.b16 %v808_v50, %v808_v50 }
  0xd2   : > { %v841_v63 = vpack.c.b16 %v809_v38, %v809_v38  ;;  %v842_v44 = vpack.c.b16 %v810_v26, %v810_v26 }
  0xd3   : > { %904 = vst.msk [vmem:[#allocation2 + $0x40] sm:$0xf] %vm315_vm4, %v839_v43 }
  0xd4   : > { %905 = vst.msk [vmem:[#allocation2 + $0x44] sm:$0xf] %vm315_vm4, %v840_v49  ;;  %2191 = vmatmul.msk.bf16.gmra.mxu3 %vm1076_vm5, %v2412_v21  ;;  %v2403_v13 = vld [vmem:[#allocation2 + $0x38] sm:$0xff]  ;;  %v3064_v49 = vld [vmem:[%s272_s14] ss:$0 sm:$0xff] }
  0xd5   : > { %906 = vst.msk [vmem:[#allocation2 + $0x48] sm:$0xf] %vm315_vm4, %v841_v63  ;;  %v2419_v32 = vld [vmem:[#allocation2 + $0x38] sm:$0xff]  ;;  %v634_v18 = vpop.permute.xlu1 %633 }
  0xd6   : > { %907 = vst.msk [vmem:[#allocation2 + $0x4c] sm:$0xf] %vm315_vm4, %v842_v44  ;;  %v2387_v36 = vld [vmem:[#allocation2 + $0x38] sm:$0xff]  ;;  %v725_v27 = vsel %vm695_vm9, %v541_v12, %v634_v18  ;;  %v636_v45 = vpop.permute.xlu0 %635 }
  0xd7   : > { %v682_v54 = vpop.permute.xlu2 %681  ;;  %v728_v14 = vsel %vm695_vm9, %v542_v56, %v636_v45  ;;  %v2408_v56 = vld [vmem:[#allocation2 + $0x60] sm:$0xff] }
  0xd8   : > { %v764_v59 = vsel %vm744_vm10, %v725_v27, %v682_v54 }
  0xd9   : > { %v811_v33 = vunpack.c.l.b16 %v764_v59  ;;  %v812_v29 = vunpack.c.h.b16 %v764_v59 }
  0xdb   : > { %v843_v19 = vpack.c.b16 %v811_v33, %v811_v33  ;;  %v844_v23 = vpack.c.b16 %v812_v29, %v812_v29  ;;  %v2404_v1 = vld [vmem:[#allocation2 + $0x40] sm:$0xff] }
  0xdc   : > { %2350 = vmatmul.msk.bf16.gmra.mxu2 %vm1076_vm5, %v2418_v51  ;;  %v2420_v52 = vld [vmem:[#allocation2 + $0x40] sm:$0xff] }
  0xdd   : > { %2181 = vmatmul.msk.bf16.gmra.mxu0 %vm1076_vm5, %v2402_v4  ;;  %908 = vst.msk [vmem:[#allocation2 + $0x50] sm:$0xf] %vm315_vm4, %v843_v19  ;;  %v2388_v7 = vld [vmem:[#allocation2 + $0x40] sm:$0xff]  ;;  %v684_v60 = vpop.permute.xlu1 %683  ;;  %v2421_v47 = vld [vmem:[#allocation2 + $0x48] sm:$0xff] }
  0xde   : > { %2266 = vmatmul.msk.bf16.gmra.mxu1 %vm1076_vm5, %v2386_v31  ;;  %909 = vst.msk [vmem:[#allocation2 + $0x54] sm:$0xf] %vm315_vm4, %v844_v23  ;;  %v766_v35 = vsel %vm744_vm10, %v728_v14, %v684_v60  ;;  %v2405_v15 = vld [vmem:[#allocation2 + $0x48] sm:$0xff]  ;;  %v2424_v14 = vld [vmem:[#allocation2 + $0x60] sm:$0xff] }
  0xdf   : > { %v813_v2 = vunpack.c.l.b16 %v766_v35  ;;  %v814_v24 = vunpack.c.h.b16 %v766_v35  ;;  %v2389_v22 = vld [vmem:[#allocation2 + $0x48] sm:$0xff] }
  0xe1   : > { %v845_v61 = vpack.c.b16 %v813_v2, %v813_v2  ;;  %v846_v5 = vpack.c.b16 %v814_v24, %v814_v24 }
  0xe3   : > { %910 = vst.msk [vmem:[#allocation2 + $0x58] sm:$0xf] %vm315_vm4, %v845_v61 }
  0xe4   : > { %2272 = vmatmul.msk.bf16.vlgmr.msrb.gmra.mxu3 %vm1076_vm5, %v2392_v46  ;;  %911 = vst.msk [vmem:[#allocation2 + $0x5c] sm:$0xf] %vm315_vm4, %v846_v5 }
  0xe5   : > { %v2406_v41 = vld [vmem:[#allocation2 + $0x50] sm:$0xff] }
  0xe6   : > { %v2422_v16 = vld [vmem:[#allocation2 + $0x50] sm:$0xff] }
  0xe7   : > { %v2390_v25 = vld [vmem:[#allocation2 + $0x50] sm:$0xff] }
  0xeb   : > { %v2407_v63 = vld [vmem:[#allocation2 + $0x58] sm:$0xff] }
  0xec   : > { %2351 = vmatmul.msk.bf16.gmra.mxu2 %vm1076_vm5, %v2419_v32  ;;  %v2423_v44 = vld [vmem:[#allocation2 + $0x58] sm:$0xff] }
  0xed   : > { %2182 = vmatmul.msk.bf16.gmra.mxu0 %vm1076_vm5, %v2403_v13  ;;  %v2391_v53 = vld [vmem:[#allocation2 + $0x58] sm:$0xff] }
  0xee   : > { %2267 = vmatmul.msk.bf16.gmra.mxu1 %vm1076_vm5, %v2387_v36 }
  0xf4   : > { %2273 = vmatmul.msk.bf16.gmra.mxu3 %vm1076_vm5, %v2393_v37  ;;  %v2427_v37 = vld [vmem:[#allocation2 + $0x78] sm:$0xff] }
  0xfc   : > { %2352 = vmatmul.msk.bf16.gmra.mxu2 %vm1076_vm5, %v2420_v52 }
  0xfd   : > { %2183 = vmatmul.msk.bf16.gmra.mxu0 %vm1076_vm5, %v2404_v1 }
  0xfe   : > { %2268 = vmatmul.msk.bf16.gmra.mxu1 %vm1076_vm5, %v2388_v7 }
 0x102   : > { %v1138_v40 = vpop.f32.mrf.mxu0 }
 0x103   : > { %v1368_v8 = vpop.f32.mrf.mxu1  ;;  %v1364_v50 = vadd.f32 %v1363_v9, %v1138_v40 }
 0x104   : > { %2274 = vmatmul.msk.bf16.gmra.mxu3 %vm1076_vm5, %v2394_v57 }
 0x10a   : > { %v1140_v34 = vpop.f32.mrf.mxu0 }
 0x10b   : > { %v1370_v39 = vpop.f32.mrf.mxu1  ;;  %v1366_v51 = vadd.f32 %v1365_v11, %v1140_v34 }
 0x10c   : > { %2353 = vmatmul.msk.bf16.gmra.mxu2 %vm1076_vm5, %v2421_v47 }
 0x10d   : > { %2184 = vmatmul.msk.bf16.gmra.mxu0 %vm1076_vm5, %v2405_v15  ;;  %v2428_v15 = vld [vmem:[#allocation2 + $0x80] sm:$0xff] }
 0x10e   : > { %2269 = vmatmul.msk.bf16.gmra.mxu1 %vm1076_vm5, %v2389_v22 }
 0x114   : > { %2275 = vmatmul.msk.bf16.gmra.mxu3 %vm1076_vm5, %v2395_v20 }
 0x11a   : > { %v1143_v6 = vpop.f32.mrf.mxu0 }
 0x11b   : > { %v1373_v48 = vpop.f32.mrf.mxu1  ;;  %v1369_v36 = vadd.f32 %v1368_v8, %v1143_v6 }
 0x11c   : > { %2354 = vmatmul.msk.bf16.gmra.mxu2 %vm1076_vm5, %v2422_v16 }
 0x11d   : > { %2185 = vmatmul.msk.bf16.gmra.mxu0 %vm1076_vm5, %v2406_v41 }
 0x11e   : > { %2270 = vmatmul.msk.bf16.gmra.mxu1 %vm1076_vm5, %v2390_v25 }
 0x11f   : > { %v1624_v21 = vpop.f32.mrf.mxu2 }
 0x120   : > { %v1704_v43 = vadd.f32 %v1624_v21, %v1364_v50  ;;  %v2425_v21 = vld [vmem:[#allocation2 + $0x68] sm:$0xff] }
 0x122   : > { %v1145_v58 = vpop.f32.mrf.mxu0  ;;  %v1740_v0 = vmul.f32 %v3057_v55, %v1704_v43 }
 0x123   : > { %v3067_v62 = vpop.f32.mrf.mxu1  ;;  %v1371_v23 = vadd.f32 %v1370_v39, %v1145_v58 }
 0x124   : > { %v1776_v17 = vadd.f32 %v3064_v49, %v1740_v0  ;;  %2358 = vmatmul.msk.bf16.vlgmr.msra.gmra.mxu3 %vm1076_vm5, %v2426_v3 }
 0x126   : > { %v1808_v4 = vmax.f32 %v1776_v17, 0.0 }
 0x127   : > { %v3078_v28 = vpop.f32.mrf.mxu3  ;;  %v1626_v31 = vpop.f32.mrf.mxu2 }
 0x128   : > { %v1840_v38 = vpack.c.bf16 %v1808_v4, %v1808_v4  ;;  %v1705_v26 = vadd.f32 %v1626_v31, %v1366_v51  ;;  %v2429_v4 = vld [vmem:[#allocation2 + $0x88] sm:$0xff] }
 0x12a   : > { %v1148_v46 = vpop.f32.mrf.mxu0  ;;  %1873 = vst.msk [vmem:[%s3076_s29] sm:$0xf] %vm1872_vm11, %v1840_v38  ;;  %v1741_v10 = vmul.f32 %v3057_v55, %v1705_v26 }
 0x12b   : > { %v1378_v13 = vpop.f32.mrf.mxu1  ;;  %v1374_v35 = vadd.f32 %v1373_v48, %v1148_v46 }
 0x12c   : > { %v1777_v32 = vadd.f32 %v3064_v49, %v1741_v10  ;;  %2355 = vmatmul.msk.bf16.gmra.mxu2 %vm1076_vm5, %v2423_v44 }
 0x12d   : > { %2186 = vmatmul.msk.bf16.gmra.mxu0 %vm1076_vm5, %v2407_v63 }
 0x12e   : > { %2271 = vmatmul.msk.bf16.gmra.mxu1 %vm1076_vm5, %v2391_v53  ;;  %v1809_v12 = vmax.f32 %v1777_v32, 0.0 }
 0x12f   : > { %v3087_v18 = vpop.f32.mrf.mxu3  ;;  %v1629_v27 = vpop.f32.mrf.mxu2 }
 0x130   : > { %v1841_v54 = vpack.c.bf16 %v1809_v12, %v1809_v12  ;;  %v1706_v59 = vadd.f32 %v1629_v27, %v1369_v36 }
 0x132   : > { %v1150_v33 = vpop.f32.mrf.mxu0  ;;  %1874 = vst.msk [vmem:[%s3076_s29 + $0x4] sm:$0xf] %vm1872_vm11, %v1841_v54  ;;  %v1742_v29 = vmul.f32 %v3057_v55, %v1706_v59 }
 0x133   : > { %v1380_v19 = vpop.f32.mrf.mxu1  ;;  %v1376_v34 = vadd.f32 %v3067_v62, %v1150_v33 }
 0x134   : > { %v1778_v9 = vadd.f32 %v3064_v49, %v1742_v29  ;;  %2359 = vmatmul.msk.bf16.gmra.mxu3 %vm1076_vm5, %v2427_v37 }
 0x136   : > { %v1810_v30 = vmax.f32 %v1778_v9, 0.0 }
 0x137   : > { %v3094_v1 = vpop.f32.mrf.mxu3  ;;  %v1631_v52 = vpop.f32.mrf.mxu2 }
 0x138   : > { %v1842_v7 = vpack.c.bf16 %v1810_v30, %v1810_v30  ;;  %v1707_v42 = vadd.f32 %v1631_v52, %v1371_v23 }
 0x13a   : > { %v1153_v45 = vpop.f32.mrf.mxu0  ;;  %1875 = vst.msk [vmem:[%s3076_s29 + $0x8] sm:$0xf] %vm1872_vm11, %v1842_v7  ;;  %v1743_v11 = vmul.f32 %v3057_v55, %v1707_v42 }
 0x13b   : > { %v1383_v24 = vpop.f32.mrf.mxu1  ;;  %v1379_v58 = vadd.f32 %v1378_v13, %v1153_v45 }
 0x13c   : > { %v1779_v60 = vadd.f32 %v3064_v49, %v1743_v11  ;;  %2356 = vmatmul.msk.bf16.gmra.mxu2 %vm1076_vm5, %v2424_v14 }
 0x13d   : > { %2187 = vmatmul.msk.bf16.gmra.mxu0 %vm1076_vm5, %v2408_v56 }
 0x13e   : > { %v1811_v2 = vmax.f32 %v1779_v60, 0.0 }
 0x13f   : > { %v3102_v57 = vpop.f32.mrf.mxu3  ;;  %v1634_v61 = vpop.f32.mrf.mxu2 }
 0x140   : > { %v1843_v5 = vpack.c.bf16 %v1811_v2, %v1811_v2  ;;  %v1708_v40 = vadd.f32 %v1634_v61, %v1374_v35 }
 0x142   : > { %v1155_v8 = vpop.f32.mrf.mxu0  ;;  %1876 = vst.msk [vmem:[%s3076_s29 + $0xc] sm:$0xf] %vm1872_vm11, %v1843_v5  ;;  %v1744_v47 = vmul.f32 %v3057_v55, %v1708_v40 }
 0x143   : > { %v1385_v6 = vpop.f32.mrf.mxu1  ;;  %v1381_v44 = vadd.f32 %v1380_v19, %v1155_v8 }
 0x144   : > { %v1780_v22 = vadd.f32 %v3064_v49, %v1744_v47  ;;  %2360 = vmatmul.msk.bf16.gmra.mxu3 %vm1076_vm5, %v2428_v15 }
 0x146   : > { %v1812_v39 = vmax.f32 %v1780_v22, 0.0 }
 0x147   : > { %v3110_v20 = vpop.f32.mrf.mxu3  ;;  %v1636_v41 = vpop.f32.mrf.mxu2 }
 0x148   : > { %v1844_v16 = vpack.c.bf16 %v1812_v39, %v1812_v39  ;;  %v1709_v25 = vadd.f32 %v1636_v41, %v1376_v34 }
 0x14a   : > { %v1158_v48 = vpop.f32.mrf.mxu0  ;;  %1877 = vst.msk [vmem:[%s3076_s29 + $0x10] sm:$0xf] %vm1872_vm11, %v1844_v16  ;;  %v1745_v50 = vmul.f32 %v3057_v55, %v1709_v25 }
 0x14b   : > { %v1388_v38 = vpop.f32.mrf.mxu1  ;;  %v1384_v59 = vadd.f32 %v1383_v24, %v1158_v48 }
 0x14c   : > { %v1781_v43 = vadd.f32 %v3064_v49, %v1745_v50  ;;  %2357 = vmatmul.msk.bf16.gmra.mxu2 %vm1076_vm5, %v2425_v21 }
 0x14e   : > { %v1813_v0 = vmax.f32 %v1781_v43, 0.0 }
 0x14f   : > { %v3117_v62 = vpop.f32.mrf.mxu3  ;;  %v1639_v3 = vpop.f32.mrf.mxu2 }
 0x150   : > { %v1845_v17 = vpack.c.bf16 %v1813_v0, %v1813_v0  ;;  %v1710_v51 = vadd.f32 %v1639_v3, %v1379_v58 }
 0x152   : > { %v1160_v31 = vpop.f32.mrf.mxu0  ;;  %1878 = vst.msk [vmem:[%s3076_s29 + $0x14] sm:$0xf] %vm1872_vm11, %v1845_v17  ;;  %v1746_v26 = vmul.f32 %v3057_v55, %v1710_v51 }
 0x153   : > { %v1390_v27 = vpop.f32.mrf.mxu1  ;;  %v1386_v7 = vadd.f32 %v1385_v6, %v1160_v31 }
 0x154   : > { %v1782_v63 = vadd.f32 %v3064_v49, %v1746_v26  ;;  %2361 = vmatmul.msk.bf16.gmra.mxu3 %vm1076_vm5, %v2429_v4 }
 0x156   : > { %v1814_v46 = vmax.f32 %v1782_v63, 0.0 }
 0x157   : > { %v3124_v53 = vpop.f32.mrf.mxu3  ;;  %v1641_v10 = vpop.f32.mrf.mxu2 }
 0x158   : > { %v1846_v13 = vpack.c.bf16 %v1814_v46, %v1814_v46  ;;  %v1711_v32 = vadd.f32 %v1641_v10, %v1381_v44 }
 0x15a   : > { %v1163_v36 = vpop.f32.mrf.mxu0  ;;  %1879 = vst.msk [vmem:[%s3076_s29 + $0x18] sm:$0xf] %vm1872_vm11, %v1846_v13  ;;  %v1747_v12 = vmul.f32 %v3057_v55, %v1711_v32 }
 0x15b   : > { %v1393_v42 = vpop.f32.mrf.mxu1  ;;  %v1389_v61 = vadd.f32 %v1388_v38, %v1163_v36 }
 0x15c   : > { %v1783_v54 = vadd.f32 %v3064_v49, %v1747_v12 }
 0x15e   : > { %v1815_v33 = vmax.f32 %v1783_v54, 0.0 }
 0x15f   : > { %v3130_v29 = vpop.f32.mrf.mxu3  ;;  %v1644_v37 = vpop.f32.mrf.mxu2 }
 0x160   : > { %v1847_v9 = vpack.c.bf16 %v1815_v33, %v1815_v33  ;;  %v1712_v19 = vadd.f32 %v1644_v37, %v1384_v59 }
 0x162   : > { %v1165_v23 = vpop.f32.mrf.mxu0  ;;  %1880 = vst.msk [vmem:[%s3076_s29 + $0x1c] sm:$0xf] %vm1872_vm11, %v1847_v9  ;;  %v1748_v30 = vmul.f32 %v3057_v55, %v1712_v19 }
 0x163   : > { %v1395_v47 = vpop.f32.mrf.mxu1  ;;  %v1391_v16 = vadd.f32 %v1390_v27, %v1165_v23 }
 0x164   : > { %v1784_v52 = vadd.f32 %v3064_v49, %v1748_v30 }
 0x166   : > { %v1816_v45 = vmax.f32 %v1784_v52, 0.0 }
 0x167   : > { %v3136_v11 = vpop.f32.mrf.mxu3  ;;  %v1646_v56 = vpop.f32.mrf.mxu2 }
 0x168   : > { %v1848_v14 = vpack.c.bf16 %v1816_v45, %v1816_v45  ;;  %v1713_v60 = vadd.f32 %v1646_v56, %v1386_v7 }
 0x16a   : > { %v1168_v35 = vpop.f32.mrf.mxu0  ;;  %1881 = vst.msk [vmem:[%s3076_s29 + $0x20] sm:$0xf] %vm1872_vm11, %v1848_v14  ;;  %v1749_v2 = vmul.f32 %v3057_v55, %v1713_v60 }
 0x16b   : > { %v1398_v58 = vpop.f32.mrf.mxu1  ;;  %v1394_v17 = vadd.f32 %v1393_v42, %v1168_v35 }
 0x16c   : > { %v1785_v24 = vadd.f32 %v3064_v49, %v1749_v2 }
 0x16e   : > { %v1817_v5 = vmax.f32 %v1785_v24, 0.0 }
 0x16f   : > { %v3142_v40 = vpop.f32.mrf.mxu3  ;;  %v1649_v8 = vpop.f32.mrf.mxu2 }
 0x170   : > { %v1849_v15 = vpack.c.bf16 %v1817_v5, %v1817_v5  ;;  %v1714_v22 = vadd.f32 %v1649_v8, %v1389_v61 }
 0x172   : > { %v1170_v34 = vpop.f32.mrf.mxu0  ;;  %1882 = vst.msk [vmem:[%s3076_s29 + $0x24] sm:$0xf] %vm1872_vm11, %v1849_v15  ;;  %v1750_v39 = vmul.f32 %v3057_v55, %v1714_v22 }
 0x173   : > { %v1400_v46 = vpop.f32.mrf.mxu1  ;;  %v1396_v13 = vadd.f32 %v1395_v47, %v1170_v34 }
 0x174   : > { %v1786_v41 = vadd.f32 %v3064_v49, %v1750_v39 }
 0x176   : > { %v1818_v6 = vmax.f32 %v1786_v41, 0.0 }
 0x177   : > { %v3148_v25 = vpop.f32.mrf.mxu3  ;;  %v1651_v48 = vpop.f32.mrf.mxu2 }
 0x178   : > { %v1850_v50 = vpack.c.bf16 %v1818_v6, %v1818_v6  ;;  %v1715_v21 = vadd.f32 %v1651_v48, %v1391_v16 }
 0x17a   : > { %v1173_v43 = vpop.f32.mrf.mxu0  ;;  %1883 = vst.msk [vmem:[%s3076_s29 + $0x28] sm:$0xf] %vm1872_vm11, %v1850_v50  ;;  %v1751_v0 = vmul.f32 %v3057_v55, %v1715_v21 }
 0x17b   : > { %v1399_v9 = vadd.f32 %v1398_v58, %v1173_v43  ;;  %v1403_v19 = vpop.f32.mrf.mxu1  ;;  %v1424_v58 = vadd.f32 %v3136_v11, %v3078_v28  ;;  %v1426_v11 = vadd.f32 %v3142_v40, %v3087_v18 }
 0x17c   : > { %v1787_v3 = vadd.f32 %v3064_v49, %v1751_v0 }
 0x17e   : > { %v1819_v51 = vmax.f32 %v1787_v3, 0.0 }
 0x17f   : > { %v3154_v4 = vpop.f32.mrf.mxu3  ;;  %v1654_v31 = vpop.f32.mrf.mxu2 }
 0x180   : > { %v1851_v38 = vpack.c.bf16 %v1819_v51, %v1819_v51  ;;  %v1716_v26 = vadd.f32 %v1654_v31, %v1394_v17 }
 0x182   : > { %1884 = vst.msk [vmem:[%s3076_s29 + $0x2c] sm:$0xf] %vm1872_vm11, %v1851_v38  ;;  %v1752_v63 = vmul.f32 %v3057_v55, %v1716_v26  ;;  %v1175_v44 = vpop.f32.mrf.mxu0 }
 0x183   : > { %v1401_v14 = vadd.f32 %v1400_v46, %v1175_v44  ;;  %v1405_v61 = vpop.f32.mrf.mxu1 }
 0x184   : > { %v1788_v10 = vadd.f32 %v3064_v49, %v1752_v63 }
 0x186   : > { %v1820_v32 = vmax.f32 %v1788_v10, 0.0 }
 0x187   : > { %v3160_v36 = vpop.f32.mrf.mxu3  ;;  %v1656_v12 = vpop.f32.mrf.mxu2 }
 0x188   : > { %v1852_v27 = vpack.c.bf16 %v1820_v32, %v1820_v32  ;;  %v1717_v54 = vadd.f32 %v1656_v12, %v1396_v13 }
 0x18a   : > { %1885 = vst.msk [vmem:[%s3076_s29 + $0x30] sm:$0xf] %vm1872_vm11, %v1852_v27  ;;  %v1753_v59 = vmul.f32 %v3057_v55, %v1717_v54  ;;  %v1178_v37 = vpop.f32.mrf.mxu0 }
 0x18b   : > { %v1404_v22 = vadd.f32 %v1403_v19, %v1178_v37  ;;  %v1408_v50 = vpop.f32.mrf.mxu1 }
 0x18c   : > { %v1789_v33 = vadd.f32 %v3064_v49, %v1753_v59 }
 0x18e   : > { %v1821_v23 = vmax.f32 %v1789_v33, 0.0 }
 0x18f   : > { %v3166_v30 = vpop.f32.mrf.mxu3  ;;  %v1659_v52 = vpop.f32.mrf.mxu2 }
 0x190   : > { %v1853_v7 = vpack.c.bf16 %v1821_v23, %v1821_v23  ;;  %v1718_v42 = vadd.f32 %v1659_v52, %v1399_v9 }
 0x192   : > { %1886 = vst.msk [vmem:[%s3076_s29 + $0x34] sm:$0xf] %vm1872_vm11, %v1853_v7  ;;  %v1754_v45 = vmul.f32 %v3057_v55, %v1718_v42  ;;  %v1180_v35 = vpop.f32.mrf.mxu0  ;;  %v1429_v42 = vadd.f32 %v3148_v25, %v3094_v1 }
 0x193   : > { %v1406_v0 = vadd.f32 %v1405_v61, %v1180_v35  ;;  %v1410_v10 = vpop.f32.mrf.mxu1 }
 0x194   : > { %v1790_v56 = vadd.f32 %v3064_v49, %v1754_v45 }
 0x196   : > { %v1822_v60 = vmax.f32 %v1790_v56, 0.0 }
 0x197   : > { %v3172_v2 = vpop.f32.mrf.mxu3  ;;  %v1661_v24 = vpop.f32.mrf.mxu2 }
 0x198   : > { %v1854_v5 = vpack.c.bf16 %v1822_v60, %v1822_v60  ;;  %v1719_v8 = vadd.f32 %v1661_v24, %v1401_v14 }
 0x19a   : > { %1887 = vst.msk [vmem:[%s3076_s29 + $0x38] sm:$0xf] %vm1872_vm11, %v1854_v5  ;;  %v1755_v47 = vmul.f32 %v3057_v55, %v1719_v8  ;;  %v1183_v6 = vpop.f32.mrf.mxu0 }
 0x19b   : > { %v1409_v32 = vadd.f32 %v1408_v50, %v1183_v6  ;;  %v1413_v45 = vpop.f32.mrf.mxu1 }
 0x19c   : > { %v1791_v15 = vadd.f32 %v3064_v49, %v1755_v47 }
 0x19e   : > { %v1823_v34 = vmax.f32 %v1791_v15, 0.0 }
 0x19f   : > { %v3178_v39 = vpop.f32.mrf.mxu3  ;;  %v1664_v41 = vpop.f32.mrf.mxu2 }
 0x1a0   : > { %v1855_v16 = vpack.c.bf16 %v1823_v34, %v1823_v34  ;;  %v1720_v48 = vadd.f32 %v1664_v41, %v1404_v22  ;;  %v1431_v34 = vadd.f32 %v3154_v4, %v3102_v57 }
 0x1a2   : > { %1888 = vst.msk [vmem:[%s3076_s29 + $0x3c] sm:$0xf] %vm1872_vm11, %v1855_v16  ;;  %v1756_v21 = vmul.f32 %v3057_v55, %v1720_v48  ;;  %v1185_v63 = vpop.f32.mrf.mxu0 }
 0x1a3   : > { %v1411_v56 = vadd.f32 %v1410_v10, %v1185_v63 }
 0x1a4   : > { %v1792_v43 = vadd.f32 %v3064_v49, %v1756_v21 }
 0x1a6   : > { %v1824_v3 = vmax.f32 %v1792_v43, 0.0 }
 0x1a7   : > { %v1666_v17 = vpop.f32.mrf.mxu2  ;;  %v1684_v51 = vpop.f32.mrf.mxu3 }
 0x1a8   : > { %v1856_v31 = vpack.c.bf16 %v1824_v3, %v1824_v3  ;;  %v1721_v38 = vadd.f32 %v1666_v17, %v1406_v0  ;;  %v1728_v26 = vadd.f32 %v1684_v51, %v1424_v58  ;;  %v1415_v17 = vpop.f32.mrf.mxu1 }
 0x1aa   : > { %1889 = vst.msk [vmem:[%s3076_s29 + $0x40] sm:$0xf] %vm1872_vm11, %v1856_v31  ;;  %v1757_v44 = vmul.f32 %v3057_v55, %v1721_v38  ;;  %v1764_v46 = vmul.f32 %v3057_v55, %v1728_v26  ;;  %v1188_v7 = vpop.f32.mrf.mxu0  ;;  %v1434_v38 = vadd.f32 %v3160_v36, %v3110_v20 }
 0x1ab   : > { %v1414_v41 = vadd.f32 %v1413_v45, %v1188_v7 }
 0x1ac   : > { %v1793_v13 = vadd.f32 %v3064_v49, %v1757_v44  ;;  %v1800_v28 = vadd.f32 %v3064_v49, %v1764_v46 }
 0x1ae   : > { %v1825_v12 = vmax.f32 %v1793_v13, 0.0  ;;  %v1832_v27 = vmax.f32 %v1800_v28, 0.0 }
 0x1af   : > { %v1669_v54 = vpop.f32.mrf.mxu2  ;;  %v1686_v59 = vpop.f32.mrf.mxu3 }
 0x1b0   : > { %v1857_v33 = vpack.c.bf16 %v1825_v12, %v1825_v12  ;;  %v1864_v37 = vpack.c.bf16 %v1832_v27, %v1832_v27  ;;  %v1722_v9 = vadd.f32 %v1669_v54, %v1409_v32  ;;  %v1729_v19 = vadd.f32 %v1686_v59, %v1426_v11  ;;  %v1418_v59 = vpop.f32.mrf.mxu1 }
 0x1b2   : > { %1890 = vst.msk [vmem:[%s3076_s29 + $0x44] sm:$0xf] %vm1872_vm11, %v1857_v33  ;;  %v1758_v23 = vmul.f32 %v3057_v55, %v1722_v9  ;;  %v1765_v52 = vmul.f32 %v3057_v55, %v1729_v19  ;;  %v1190_v16 = vpop.f32.mrf.mxu0  ;;  %v1436_v33 = vadd.f32 %v3166_v30, %v3117_v62 }
 0x1b3   : > { %1897 = vst.msk [vmem:[%s3076_s29 + $0x60] sm:$0xf] %vm1872_vm11, %v1864_v37  ;;  %v1416_v26 = vadd.f32 %v1415_v17, %v1190_v16  ;;  %v1441_v16 = vadd.f32 %v3178_v39, %v3130_v29 }
 0x1b4   : > { %v1794_v18 = vadd.f32 %v3064_v49, %v1758_v23  ;;  %v1801_v40 = vadd.f32 %v3064_v49, %v1765_v52 }
 0x1b6   : > { %v1826_v14 = vmax.f32 %v1794_v18, 0.0  ;;  %v1833_v60 = vmax.f32 %v1801_v40, 0.0 }
 0x1b7   : > { %v1671_v35 = vpop.f32.mrf.mxu2  ;;  %v1689_v24 = vpop.f32.mrf.mxu3 }
 0x1b8   : > { %v1858_v61 = vpack.c.bf16 %v1826_v14, %v1826_v14  ;;  %v1865_v5 = vpack.c.bf16 %v1833_v60, %v1833_v60  ;;  %v1723_v8 = vadd.f32 %v1671_v35, %v1411_v56  ;;  %v1730_v47 = vadd.f32 %v1689_v24, %v1429_v42  ;;  %v1420_v60 = vpop.f32.mrf.mxu1 }
 0x1b9   : > { %v1439_v35 = vadd.f32 %v3172_v2, %v3124_v53 }
 0x1ba   : > { %1891 = vst.msk [vmem:[%s3076_s29 + $0x48] sm:$0xf] %vm1872_vm11, %v1858_v61  ;;  %v1759_v15 = vmul.f32 %v3057_v55, %v1723_v8  ;;  %v1766_v22 = vmul.f32 %v3057_v55, %v1730_v47  ;;  %v1193_v12 = vpop.f32.mrf.mxu0 }
 0x1bb   : > { %1898 = vst.msk [vmem:[%s3076_s29 + $0x64] sm:$0xf] %vm1872_vm11, %v1865_v5  ;;  %v1419_v37 = vadd.f32 %v1418_v59, %v1193_v12 }
 0x1bc   : > { %v1795_v1 = vadd.f32 %v3064_v49, %v1759_v15  ;;  %v1802_v25 = vadd.f32 %v3064_v49, %v1766_v22 }
 0x1be   : > { %v1827_v6 = vmax.f32 %v1795_v1, 0.0  ;;  %v1834_v48 = vmax.f32 %v1802_v25, 0.0 }
 0x1bf   : > { %v1674_v50 = vpop.f32.mrf.mxu2  ;;  %v1691_v21 = vpop.f32.mrf.mxu3 }
 0x1c0   : > { %v1859_v43 = vpack.c.bf16 %v1827_v6, %v1827_v6  ;;  %v1866_v58 = vpack.c.bf16 %v1834_v48, %v1834_v48  ;;  %v1724_v0 = vadd.f32 %v1674_v50, %v1414_v41  ;;  %v1731_v3 = vadd.f32 %v1691_v21, %v1431_v34 }
 0x1c2   : > { %1892 = vst.msk [vmem:[%s3076_s29 + $0x4c] sm:$0xf] %vm1872_vm11, %v1859_v43  ;;  %v1760_v51 = vmul.f32 %v3057_v55, %v1724_v0  ;;  %v1767_v31 = vmul.f32 %v3057_v55, %v1731_v3  ;;  %v1195_v14 = vpop.f32.mrf.mxu0 }
 0x1c3   : > { %1899 = vst.msk [vmem:[%s3076_s29 + $0x68] sm:$0xf] %vm1872_vm11, %v1866_v58  ;;  %v1421_v24 = vadd.f32 %v1420_v60, %v1195_v14 }
 0x1c4   : > { %v1796_v57 = vadd.f32 %v3064_v49, %v1760_v51  ;;  %v1803_v4 = vadd.f32 %v3064_v49, %v1767_v31 }
 0x1c6   : > { %v1828_v63 = vmax.f32 %v1796_v57, 0.0  ;;  %v1835_v44 = vmax.f32 %v1803_v4, 0.0 }
 0x1c7   : > { %v1676_v46 = vpop.f32.mrf.mxu2  ;;  %v1694_v10 = vpop.f32.mrf.mxu3 }
 0x1c8   : > { %v1860_v13 = vpack.c.bf16 %v1828_v63, %v1828_v63  ;;  %v1867_v28 = vpack.c.bf16 %v1835_v44, %v1835_v44  ;;  %v1725_v11 = vadd.f32 %v1676_v46, %v1416_v26  ;;  %v1732_v32 = vadd.f32 %v1694_v10, %v1434_v38 }
 0x1ca   : > { %1893 = vst.msk [vmem:[%s3076_s29 + $0x50] sm:$0xf] %vm1872_vm11, %v1860_v13  ;;  %v1761_v27 = vmul.f32 %v3057_v55, %v1725_v11  ;;  %v1768_v54 = vmul.f32 %v3057_v55, %v1732_v32 }
 0x1cb   : > { %1900 = vst.msk [vmem:[%s3076_s29 + $0x6c] sm:$0xf] %vm1872_vm11, %v1867_v28 }
 0x1cc   : > { %v1797_v20 = vadd.f32 %v3064_v49, %v1761_v27  ;;  %v1804_v36 = vadd.f32 %v3064_v49, %v1768_v54 }
 0x1ce   : > { %v1829_v9 = vmax.f32 %v1797_v20, 0.0  ;;  %v1836_v19 = vmax.f32 %v1804_v36, 0.0 }
 0x1cf   : > { %v1679_v23 = vpop.f32.mrf.mxu2  ;;  %v1696_v52 = vpop.f32.mrf.mxu3 }
 0x1d0   : > { %v1861_v7 = vpack.c.bf16 %v1829_v9, %v1829_v9  ;;  %v1868_v18 = vpack.c.bf16 %v1836_v19, %v1836_v19  ;;  %v1726_v40 = vadd.f32 %v1679_v23, %v1419_v37  ;;  %v1733_v42 = vadd.f32 %v1696_v52, %v1436_v33 }
 0x1d2   : > { %1894 = vst.msk [vmem:[%s3076_s29 + $0x54] sm:$0xf] %vm1872_vm11, %v1861_v7  ;;  %v1762_v45 = vmul.f32 %v3057_v55, %v1726_v40  ;;  %v1769_v56 = vmul.f32 %v3057_v55, %v1733_v42 }
 0x1d3   : > { %1901 = vst.msk [vmem:[%s3076_s29 + $0x70] sm:$0xf] %vm1872_vm11, %v1868_v18 }
 0x1d4   : > { %v1798_v62 = vadd.f32 %v3064_v49, %v1762_v45  ;;  %v1805_v30 = vadd.f32 %v3064_v49, %v1769_v56 }
 0x1d6   : > { %v1830_v61 = vmax.f32 %v1798_v62, 0.0  ;;  %v1837_v5 = vmax.f32 %v1805_v30, 0.0 }
 0x1d7   : > { %v1681_v8 = vpop.f32.mrf.mxu2  ;;  %v1699_v47 = vpop.f32.mrf.mxu3 }
 0x1d8   : > { %v1862_v15 = vpack.c.bf16 %v1830_v61, %v1830_v61  ;;  %v1869_v22 = vpack.c.bf16 %v1837_v5, %v1837_v5  ;;  %v1727_v1 = vadd.f32 %v1681_v8, %v1421_v24  ;;  %v1734_v25 = vadd.f32 %v1699_v47, %v1439_v35 }
 0x1da   : > { %1895 = vst.msk [vmem:[%s3076_s29 + $0x58] sm:$0xf] %vm1872_vm11, %v1862_v15  ;;  %v1763_v34 = vmul.f32 %v3057_v55, %v1727_v1  ;;  %v1770_v41 = vmul.f32 %v3057_v55, %v1734_v25 }
 0x1db   : > { %1902 = vst.msk [vmem:[%s3076_s29 + $0x74] sm:$0xf] %vm1872_vm11, %v1869_v22 }
 0x1dc   : > { %v1799_v53 = vadd.f32 %v3064_v49, %v1763_v34  ;;  %v1806_v2 = vadd.f32 %v3064_v49, %v1770_v41 }
 0x1de   : > { %v1831_v6 = vmax.f32 %v1799_v53, 0.0  ;;  %v1838_v48 = vmax.f32 %v1806_v2, 0.0 }
 0x1df   : > { %v1701_v50 = vpop.f32.mrf.mxu3 }
 0x1e0   : > { %v1863_v21 = vpack.c.bf16 %v1831_v6, %v1831_v6  ;;  %v1870_v43 = vpack.c.bf16 %v1838_v48, %v1838_v48  ;;  %v1735_v58 = vadd.f32 %v1701_v50, %v1441_v16 }
 0x1e2   : > { %1896 = vst.msk [vmem:[%s3076_s29 + $0x5c] sm:$0xf] %vm1872_vm11, %v1863_v21  ;;  %v1771_v0 = vmul.f32 %v3057_v55, %v1735_v58 }
 0x1e3   : > { %1903 = vst.msk [vmem:[%s3076_s29 + $0x78] sm:$0xf] %vm1872_vm11, %v1870_v43 }
 0x1e4   : > { %v1807_v3 = vadd.f32 %v3064_v49, %v1771_v0 }
 0x1e6   : > { %v1839_v17 = vmax.f32 %v1807_v3, 0.0 }
 0x1e8   : > { %v1871_v51 = vpack.c.bf16 %v1839_v17, %v1839_v17 }
 0x1ea   : > { %1904 = vst.msk [vmem:[%s3076_s29 + $0x7c] sm:$0xf] %vm1872_vm11, %v1871_v51 }
 0x1eb PF: > { %s14_s19 = sadd.s32 1, %s2518_s19   ;;  %s3286_s15 = smov %s2510_s17 }
 0x1ec   : > { %p11_p7 = scmp.ge.s32.totalorder %s14_s19, 6   ;;  %s3287_s16 = smov %s2514_s18 }
 0x1ed   : > { %s3288_s17 = smov %s3291_s20  ;;  %s3289_s18 = smov %s3295_s21 }
 0x1ee   :  { %13 = sbr.rel (!%p11_p7) target bundleno = 3 (0x3), region = 80 }

// kernel: gfm_forward.4
= control target key start
LH: loop header
LB: loop body
LE: loop exit
PB: predicated region body
PF: predicated region fallthrough
CT: control target
= control target key end

     0   :  { %s2876_s18 = smov 0   ;;  %s2878_s19 = smov 0   ;;  %s3629_s0 = inlined_call_operand.vmem [shape: bf16[2,2,16,16,4], index: 0, kind: input, shape index: {}]   ;;  %s3630_s1 = inlined_call_operand.vmem [shape: bf16[2,2,16,16,4], index: 1, kind: input, shape index: {}]   ;;  %s3631_s2 = inlined_call_operand.vmem [shape: bf16[2,3,12,4], index: 2, kind: input, shape index: {}]   ;;  %s3632_s3 = inlined_call_operand.vmem [shape: f32[2,1,4], index: 3, kind: input, shape index: {}]   ;;  %s3633_s4 = inlined_call_operand.vmem [shape: f32[2,1,4], index: 4, kind: input, shape index: {}]   ;;  %s3634_s5 = inlined_call_operand.vmem [shape: bf16[2,2,16,16,4], index: 5, kind: output, shape index: {}]  }
   0x1   :  { %s2880_s20 = smov 0   ;;  %s2882_s21 = smov 0  }
   0x2   :  { %s2884_s22 = smov 0  }
   0x3 LB: > { %s24_s23 = sadd.s32 1, %s2833_s20  ;;  %s27_s24 = sadd.s32 1, %s2837_s21  ;;  %s2841_s22 = sphi %s2884_s22, %s15_s22   ;;  %s2837_s21 = sphi %s2882_s21, %s3642_s21   ;;  %s2833_s20 = sphi %s2880_s20, %s3641_s20   ;;  %s2829_s19 = sphi %s2878_s19, %s3640_s19   ;;  %s2825_s18 = sphi %s2876_s18, %s3639_s18  }
   0x4   : > { %p25_p0 = scmp.ge.s32.totalorder %s24_s23, 2  ;;  %p2276_p1 = scmp.ge.s32.totalorder %s2841_s22, 1 }
   0x5   : > { %p249_p2 = scmp.lt.s32.totalorder %s2841_s22, 5 }
   0x6   : > { %s3644_s23 = smov (%p25_p0, %s24_s23), 0  ;;  %s3646_s24 = smov (!%p25_p0, %s27_s24), %s2837_s21 }
   0x7   : > { %p250_p3 = pnand %p2276_p1, %p249_p2  ;;  %p29_p4 = scmp.ge.s32.totalorder %s3646_s24, 2 }
   0x8   : > { %p305_p5 = scmp.lt.s32.totalorder (!%p250_p3), %s2829_s19, 1  ;;  %p307_p6 = scmp.lt.s32.totalorder (!%p250_p3), %s2825_s18, 1 }
   0x9   : > { %s3648_s24 = smov (%p29_p4, %s3646_s24), 0  ;;  %253 = sbr.rel (%p250_p3) target bundleno = 502 (0x1f6), region = 40 }
   0xa   : > { %s2843_s10 = smov (!%p250_p3), 4   ;;  %s2844_s11 = smov (!%p250_p3), 8  }
   0xe   : > { %s3650_s19 = smov (!%p305_p5, %s2829_s19), 1  ;;  %s3652_s18 = smov (!%p307_p6, %s2825_s18), 1  ;;  %vm817_vm0 = vcmask 1047552   ;;  %vm818_vm1 = vsmask.f32 7424  ;;  %vm1346_vm3 = vcmask 1045504  }
   0xf   : > { %s2278_s25 = sshll.u32 %s3650_s19, 6  ;;  %s2277_s26 = sshll.u32 %s3652_s18, 5  ;;  %vm2952_vm2 = vmand %vm817_vm0, %vm818_vm1  ;;  %vm536_vm4 = vcmask 93184   ;;  %vm1297_vm5 = vcmask 97280   ;;  %vm750_vm6 = vcmask 1040384   ;;  %vm916_vm9 = vcmask 31744  }
  0x10   : > { %s311_s27 = sadd.s32 %s2278_s25, %s2277_s26  ;;  %s2757_s12 = smul.u32 24, %s3650_s19  ;;  %vm751_vm7 = vsmask.f32 256  ;;  %vm965_vm10 = vcmask 64512   ;;  %vm2093_vm11 = vcmask 27648  }
  0x11   : > { %s2909_s28 = sshll.u32 %s311_s27, 2  ;;  %vm3162_vm8 = vmand %vm750_vm6, %vm751_vm7  ;;  %s330_s18 = scalar_lea.vmem %s3632_s3, %s3650_s19 }
  0x12   : > { %s2915_s6 = scalar_lea.vmem %s3629_s0, %s2909_s28  ;;  %s2921_s9 = scalar_lea.vmem %s3630_s1, %s2909_s28 }
  0x13   : > { %v2724_v0 = vld [vmem:[%s2915_s6 + $0x8] sm:$0xff]   ;;  %v2597_v2 = vld [vmem:[%s2915_s6] sm:$0xff]   ;;  %v2725_v14 = vld [vmem:[%s2915_s6 + $0x10] sm:$0xff]   ;;  %s3104_s15 = scalar_lea.vmem %s3631_s2, %s2757_s12  ;;  %s333_s27 = scalar_lea.vmem %s3633_s4, %s3650_s19 }
  0x14   : > { %v2739_v1 = vld [vmem:[%s2921_s9 + $0x8] sm:$0xff]   ;;  %v2602_v3 = vunpack.c.l.bf16 %v2724_v0  ;;  %v2603_v4 = vunpack.c.h.bf16 %v2724_v0  ;;  %v2661_v7 = vld [vmem:[%s2921_s9] sm:$0xff]   ;;  %v2598_v10 = vunpack.c.l.bf16 %v2597_v2  ;;  %v2599_v11 = vunpack.c.h.bf16 %v2597_v2  ;;  %v2740_v23 = vld [vmem:[%s2921_s9 + $0x10] sm:$0xff]  }
  0x15   : > { %v2666_v5 = vunpack.c.l.bf16 %v2739_v1  ;;  %v2667_v6 = vunpack.c.h.bf16 %v2739_v1  ;;  %v2735_v8 = vld [vmem:[%s2915_s6 + $0x60] sm:$0xff]   ;;  %v2662_v12 = vunpack.c.l.bf16 %v2661_v7  ;;  %v2663_v13 = vunpack.c.h.bf16 %v2661_v7  ;;  %v2736_v36 = vld [vmem:[%s2915_s6 + $0x68] sm:$0xff]   ;;  %v2726_v61 = vld [vmem:[%s2915_s6 + $0x18] sm:$0xff]  }
  0x16   : > { %v2750_v9 = vld [vmem:[%s2921_s9 + $0x60] sm:$0xff]   ;;  %v2646_v17 = vunpack.c.l.bf16 %v2735_v8  ;;  %v2647_v18 = vunpack.c.h.bf16 %v2735_v8  ;;  %v2606_v26 = vunpack.c.l.bf16 %v2725_v14  ;;  %v2607_v27 = vunpack.c.h.bf16 %v2725_v14  ;;  %v2751_v44 = vld [vmem:[%s2921_s9 + $0x68] sm:$0xff]  }
  0x17   : > { %v474_v15 = vmul.f32 %v2666_v5, %v2602_v3  ;;  %v475_v16 = vmul.f32 %v2667_v6, %v2603_v4  ;;  %v472_v19 = vmul.f32 %v2662_v12, %v2598_v10  ;;  %v473_v20 = vmul.f32 %v2663_v13, %v2599_v11  ;;  %v2741_v5 = vld [vmem:[%s2921_s9 + $0x18] sm:$0xff]   ;;  %v2737_v10 = vld [vmem:[%s2915_s6 + $0x70] sm:$0xff]  }
  0x18   : > { %v2710_v21 = vunpack.c.l.bf16 %v2750_v9  ;;  %v2711_v22 = vunpack.c.h.bf16 %v2750_v9  ;;  %v2670_v34 = vunpack.c.l.bf16 %v2740_v23  ;;  %v2671_v35 = vunpack.c.h.bf16 %v2740_v23 }
  0x19   : > { %v506_v24 = vpack.c.bf16 %v474_v15, %v474_v15  ;;  %v507_v25 = vpack.c.bf16 %v475_v16, %v475_v16  ;;  %v504_v28 = vpack.c.bf16 %v472_v19, %v472_v19  ;;  %v505_v29 = vpack.c.bf16 %v473_v20, %v473_v20  ;;  %v2752_v15 = vld [vmem:[%s2921_s9 + $0x70] sm:$0xff]  }
  0x1a   : > { %v496_v30 = vmul.f32 %v2710_v21, %v2646_v17  ;;  %v497_v31 = vmul.f32 %v2711_v22, %v2647_v18  ;;  %v476_v42 = vmul.f32 %v2670_v34, %v2606_v26  ;;  %v477_v43 = vmul.f32 %v2671_v35, %v2607_v27  ;;  %v2727_v27 = vld [vmem:[%s2915_s6 + $0x20] sm:$0xff]  }
  0x1b   : > { %v576_v32 = vunpack.c.l.b16 %v506_v24  ;;  %v577_v33 = vunpack.c.l.b16 %v507_v25  ;;  %v574_v37 = vunpack.c.l.b16 %v504_v28  ;;  %v575_v38 = vunpack.c.l.b16 %v505_v29 }
  0x1c   : > { %v528_v39 = vpack.c.bf16 %v496_v30, %v496_v30  ;;  %v529_v40 = vpack.c.bf16 %v497_v31, %v497_v31  ;;  %v2650_v48 = vunpack.c.l.bf16 %v2736_v36  ;;  %v508_v51 = vpack.c.bf16 %v476_v42, %v476_v42 }
  0x1d   : > { %v2932_v41 = vpack.c.b16 %v577_v33, %v576_v32  ;;  %v2935_v45 = vpack.c.b16 %v575_v38, %v574_v37  ;;  %v509_v52 = vpack.c.bf16 %v477_v43, %v477_v43  ;;  %v2714_v56 = vunpack.c.l.bf16 %v2751_v44 }
  0x1e   : > { %v598_v46 = vunpack.c.l.b16 %v528_v39  ;;  %v599_v47 = vunpack.c.l.b16 %v529_v40  ;;  %v578_v58 = vunpack.c.l.b16 %v508_v51  ;;  %v2651_v60 = vunpack.c.h.bf16 %v2736_v36  ;;  %v2742_v40 = vld [vmem:[%s2921_s9 + $0x20] sm:$0xff]  }
  0x1f   : > { %838 = vrot.lane.b32.xlu0 %v2932_v41, %s2843_s10  ;;  %v630_v49 = vshrl.u32 %v2932_v41, 16  ;;  %v633_v50 = vshll.u32 %v2932_v41, 16  ;;  %836 = vrot.lane.b32.xlu2 %v2935_v45, %s2843_s10  ;;  %v623_v54 = vshrl.u32 %v2935_v45, 16  ;;  %v626_v55 = vshll.u32 %v2935_v45, 16 }
  0x20   : > { %v2943_v53 = vpack.c.b16 %v599_v47, %v598_v46  ;;  %v579_v59 = vunpack.c.l.b16 %v509_v52  ;;  %v2715_v3 = vunpack.c.h.bf16 %v2751_v44  ;;  %v498_v4 = vmul.f32 %v2714_v56, %v2650_v48 }
  0x21   : > { %v771_v57 = vrot.slane %v633_v50, 1  ;;  %v769_v1 = vrot.slane %v626_v55, 1  ;;  %v2610_v9 = vunpack.c.l.bf16 %v2726_v61  ;;  %v2611_v14 = vunpack.c.h.bf16 %v2726_v61 }
  0x22   : > { %v707_v63 = vshrl.u32 %v2943_v53, 16  ;;  %v710_v0 = vshll.u32 %v2943_v53, 16  ;;  %v2967_v8 = vpack.c.b16 %v579_v59, %v578_v58  ;;  %v499_v12 = vmul.f32 %v2715_v3, %v2651_v60  ;;  %v2738_v60 = vld [vmem:[%s2915_s6 + $0x78] sm:$0xff]  }
  0x23   : > { %v772_v2 = vor.u32 %v771_v57, %v630_v49  ;;  %v770_v7 = vor.u32 %v769_v1, %v623_v54  ;;  %v530_v13 = vpack.c.bf16 %v498_v4, %v498_v4  ;;  %v2674_v18 = vunpack.c.l.bf16 %v2741_v5 }
  0x24   : > { %v793_v6 = vrot.slane %v710_v0, 1  ;;  %v2675_v19 = vunpack.c.h.bf16 %v2741_v5  ;;  %v531_v20 = vpack.c.bf16 %v499_v12, %v499_v12  ;;  %v2654_v22 = vunpack.c.l.bf16 %v2737_v10 }
  0x25   : > { %v821_v11 = vsel %vm2952_vm2, %v772_v2, 0  ;;  %v820_v17 = vsel %vm2952_vm2, %v770_v7, 0  ;;  %v600_v21 = vunpack.c.l.b16 %v530_v13  ;;  %v2655_v23 = vunpack.c.h.bf16 %v2737_v10 }
  0x26   : > { %886 = vrot.lane.b32.xlu1 %v821_v11, %s2844_s11  ;;  %v794_v16 = vor.u32 %v793_v6, %v707_v63  ;;  %v478_v24 = vmul.f32 %v2674_v18, %v2610_v9  ;;  %v479_v25 = vmul.f32 %v2675_v19, %v2611_v14  ;;  %v2718_v26 = vunpack.c.l.bf16 %v2752_v15  ;;  %v2753_v6 = vld [vmem:[%s2921_s9 + $0x78] sm:$0xff]   ;;  %v2728_v14 = vld [vmem:[%s2915_s6 + $0x28] sm:$0xff]  }
  0x27   : > { %860 = vrot.lane.b32.xlu0 %v2943_v53, %s2843_s10  ;;  %884 = vrot.lane.b32.xlu2 %v820_v17, %s2844_s11  ;;  %v601_v28 = vunpack.c.l.b16 %v531_v20  ;;  %v2719_v29 = vunpack.c.h.bf16 %v2752_v15  ;;  %v637_v30 = vshrl.u32 %v2967_v8, 16  ;;  %v640_v31 = vshll.u32 %v2967_v8, 16  ;;  %v2743_v20 = vld [vmem:[%s2921_s9 + $0x28] sm:$0xff]  }
  0x28   : > { %v832_v32 = vsel %vm2952_vm2, %v794_v16, 0  ;;  %v510_v33 = vpack.c.bf16 %v478_v24, %v478_v24  ;;  %v511_v34 = vpack.c.bf16 %v479_v25, %v479_v25  ;;  %v500_v35 = vmul.f32 %v2718_v26, %v2654_v22 }
  0x29   : > { %v2986_v36 = vpack.c.b16 %v601_v28, %v600_v21  ;;  %v501_v37 = vmul.f32 %v2719_v29, %v2655_v23  ;;  %v773_v38 = vrot.slane %v640_v31, 1  ;;  %v2614_v39 = vunpack.c.l.bf16 %v2727_v27  ;;  %v2734_v28 = vld [vmem:[%s2915_s6 + $0x58] sm:$0xff]  }
  0x2a   : > { %v580_v42 = vunpack.c.l.b16 %v510_v33  ;;  %v581_v43 = vunpack.c.l.b16 %v511_v34  ;;  %v532_v44 = vpack.c.bf16 %v500_v35, %v500_v35  ;;  %v2615_v46 = vunpack.c.h.bf16 %v2727_v27 }
  0x2b   : > { %v714_v47 = vshrl.u32 %v2986_v36, 16  ;;  %v717_v48 = vshll.u32 %v2986_v36, 16  ;;  %v533_v51 = vpack.c.bf16 %v501_v37, %v501_v37  ;;  %v774_v52 = vor.u32 %v773_v38, %v637_v30  ;;  %v2749_v38 = vld [vmem:[%s2921_s9 + $0x58] sm:$0xff]  }
  0x2c   : > { %v2996_v56 = vpack.c.b16 %v581_v43, %v580_v42  ;;  %v602_v57 = vunpack.c.l.b16 %v532_v44  ;;  %v2678_v58 = vunpack.c.l.bf16 %v2742_v40  ;;  %v2679_v59 = vunpack.c.h.bf16 %v2742_v40 }
  0x2d   : > { %v795_v61 = vrot.slane %v717_v48, 1  ;;  %v603_v1 = vunpack.c.l.b16 %v533_v51  ;;  %v822_v2 = vsel %vm2952_vm2, %v774_v52, 0  ;;  %v2658_v10 = vunpack.c.l.bf16 %v2738_v60 }
  0x2e   : > { %908 = vrot.lane.b32.xlu1 %v832_v32, %s2844_s11  ;;  %v647_v3 = vshll.u32 %v2996_v56, 16  ;;  %v480_v4 = vmul.f32 %v2678_v58, %v2614_v39  ;;  %v481_v5 = vmul.f32 %v2679_v59, %v2615_v46  ;;  %v2659_v13 = vunpack.c.h.bf16 %v2738_v60 }
  0x2f   : > { %840 = vrot.lane.b32.xlu0 %v2967_v8, %s2843_s10  ;;  %888 = vrot.lane.b32.xlu2 %v822_v2, %s2844_s11  ;;  %v796_v7 = vor.u32 %v795_v61, %v714_v47  ;;  %v3010_v9 = vpack.c.b16 %v603_v1, %v602_v57  ;;  %v2722_v15 = vunpack.c.l.bf16 %v2753_v6  ;;  %v644_v17 = vshrl.u32 %v2996_v56, 16 }
  0x30   : > { %v512_v11 = vpack.c.bf16 %v480_v4, %v480_v4  ;;  %v513_v12 = vpack.c.bf16 %v481_v5, %v481_v5  ;;  %v775_v18 = vrot.slane %v647_v3, 1  ;;  %v2723_v19 = vunpack.c.h.bf16 %v2753_v6 }
  0x31   : > { %v833_v16 = vsel %vm2952_vm2, %v796_v7, 0  ;;  %v724_v21 = vshll.u32 %v3010_v9, 16  ;;  %v502_v22 = vmul.f32 %v2722_v15, %v2658_v10  ;;  %v2618_v23 = vunpack.c.l.bf16 %v2728_v14 }
  0x32   : > { %v582_v24 = vunpack.c.l.b16 %v512_v11  ;;  %v583_v25 = vunpack.c.l.b16 %v513_v12  ;;  %v503_v26 = vmul.f32 %v2723_v19, %v2659_v13  ;;  %v2619_v27 = vunpack.c.h.bf16 %v2728_v14 }
  0x33   : > { %v534_v29 = vpack.c.bf16 %v502_v22, %v502_v22  ;;  %v2682_v32 = vunpack.c.l.bf16 %v2743_v20  ;;  %v2683_v33 = vunpack.c.h.bf16 %v2743_v20  ;;  %v776_v34 = vor.u32 %v775_v18, %v644_v17 }
  0x34   : > { %v721_v35 = vshrl.u32 %v3010_v9, 16  ;;  %v535_v37 = vpack.c.bf16 %v503_v26, %v503_v26  ;;  %v2642_v43 = vunpack.c.l.bf16 %v2734_v28  ;;  %v797_v44 = vrot.slane %v724_v21, 1 }
  0x35   : > { %v604_v39 = vunpack.c.l.b16 %v534_v29  ;;  %v482_v40 = vmul.f32 %v2682_v32, %v2618_v23  ;;  %v483_v42 = vmul.f32 %v2683_v33, %v2619_v27  ;;  %v3032_v46 = vpack.c.b16 %v583_v25, %v582_v24  ;;  %v2729_v33 = vld [vmem:[%s2915_s6 + $0x30] sm:$0xff]  }
  0x36   : > { %862 = vrot.lane.b32.xlu1 %v2986_v36, %s2843_s10  ;;  %v605_v51 = vunpack.c.l.b16 %v535_v37  ;;  %v2643_v52 = vunpack.c.h.bf16 %v2734_v28  ;;  %v2706_v59 = vunpack.c.l.bf16 %v2749_v38  ;;  %v2707_v60 = vunpack.c.h.bf16 %v2749_v38 }
  0x37   : > { %910 = vrot.lane.b32.xlu0 %v833_v16, %s2844_s11  ;;  %864 = vrot.lane.b32.xlu2 %v3010_v9, %s2843_s10  ;;  %v514_v57 = vpack.c.bf16 %v482_v40, %v482_v40  ;;  %v515_v58 = vpack.c.bf16 %v483_v42, %v483_v42  ;;  %v823_v61 = vsel %vm2952_vm2, %v776_v34, 0  ;;  %v798_v7 = vor.u32 %v797_v44, %v721_v35  ;;  %v2744_v34 = vld [vmem:[%s2921_s9 + $0x30] sm:$0xff]  }
  0x38   : > { %v3036_v1 = vpack.c.b16 %v605_v51, %v604_v39  ;;  %v494_v5 = vmul.f32 %v2706_v59, %v2642_v43  ;;  %v495_v6 = vmul.f32 %v2707_v60, %v2643_v52  ;;  %v654_v10 = vshll.u32 %v3032_v46, 16 }
  0x39   : > { %v584_v2 = vunpack.c.l.b16 %v514_v57  ;;  %v585_v4 = vunpack.c.l.b16 %v515_v58  ;;  %v834_v22 = vsel %vm2952_vm2, %v798_v7, 0  ;;  %v651_v23 = vshrl.u32 %v3032_v46, 16 }
  0x3a   : > { %v526_v11 = vpack.c.bf16 %v494_v5, %v494_v5  ;;  %v527_v12 = vpack.c.bf16 %v495_v6, %v495_v6  ;;  %v728_v13 = vshrl.u32 %v3036_v1, 16  ;;  %v731_v14 = vshll.u32 %v3036_v1, 16  ;;  %v2730_v5 = vld [vmem:[%s2915_s6 + $0x38] sm:$0xff]  }
  0x3b   : > { %v3046_v15 = vpack.c.b16 %v585_v4, %v584_v2  ;;  %v777_v24 = vrot.slane %v654_v10, 1  ;;  %v2622_v39 = vunpack.c.l.bf16 %v2729_v33  ;;  %v2623_v40 = vunpack.c.h.bf16 %v2729_v33  ;;  %v2745_v6 = vld [vmem:[%s2921_s9 + $0x38] sm:$0xff]   ;;  %v2439_v33 = vld [vmem:[%s3104_s15] sm:$0xf] }
  0x3c   : > { %v596_v16 = vunpack.c.l.b16 %v526_v11  ;;  %v597_v18 = vunpack.c.l.b16 %v527_v12  ;;  %v799_v19 = vrot.slane %v731_v14, 1  ;;  %v2686_v42 = vunpack.c.l.bf16 %v2744_v34 }
  0x3d   : > { %v661_v20 = vshll.u32 %v3046_v15, 16  ;;  %v658_v28 = vshrl.u32 %v3046_v15, 16  ;;  %v778_v32 = vor.u32 %v777_v24, %v651_v23  ;;  %v2687_v43 = vunpack.c.h.bf16 %v2744_v34  ;;  %v2561_v34 = vld [vmem:[%s3104_s15] sm:$0x30] }
  0x3e   : > { %842 = vrot.lane.b32.xlu1 %v2996_v56, %s2843_s10  ;;  %v800_v25 = vor.u32 %v799_v19, %v728_v13  ;;  %v3060_v26 = vpack.c.b16 %v597_v18, %v596_v16  ;;  %v484_v58 = vmul.f32 %v2686_v42, %v2622_v39  ;;  %v2626_v7 = vunpack.c.l.bf16 %v2730_v5 }
  0x3f   : > { %890 = vrot.lane.b32.xlu0 %v823_v61, %s2844_s11  ;;  %844 = vrot.lane.b32.xlu2 %v3032_v46, %s2843_s10  ;;  %v779_v29 = vrot.slane %v661_v20, 1  ;;  %v824_v44 = vsel %vm2952_vm2, %v778_v32, 0  ;;  %v485_v59 = vmul.f32 %v2687_v43, %v2623_v40  ;;  %v2627_v11 = vunpack.c.h.bf16 %v2730_v5 }
  0x40   : > { %v835_v27 = vsel %vm2952_vm2, %v800_v25, 0  ;;  %v703_v37 = vshll.u32 %v3060_v26, 16  ;;  %v700_v51 = vshrl.u32 %v3060_v26, 16  ;;  %v516_v61 = vpack.c.bf16 %v484_v58, %v484_v58  ;;  %v2731_v58 = vld [vmem:[%s2915_s6 + $0x40] sm:$0xff]  }
  0x41   : > { %v780_v38 = vor.u32 %v779_v29, %v658_v28  ;;  %v517_v2 = vpack.c.bf16 %v485_v59, %v485_v59  ;;  %v2690_v12 = vunpack.c.l.bf16 %v2745_v6  ;;  %v2691_v16 = vunpack.c.h.bf16 %v2745_v6  ;;  %v2746_v59 = vld [vmem:[%s2921_s9 + $0x40] sm:$0xff]  }
  0x42   : > { %v791_v52 = vrot.slane %v703_v37, 1  ;;  %v625_v18 = vrot.slane %v623_v54, 7  ;;  %v586_v19 = vunpack.c.l.b16 %v516_v61  ;;  %v2440_v40 = vor.u32 %v2561_v34, %v2439_v33 }
  0x43   : > { %v825_v57 = vsel %vm2952_vm2, %v780_v38, 0  ;;  %v486_v24 = vmul.f32 %v2690_v12, %v2626_v7  ;;  %v487_v25 = vmul.f32 %v2691_v16, %v2627_v11  ;;  %v2845_v43 = vmov 0  }
  0x44   : > { %v792_v60 = vor.u32 %v791_v52, %v700_v51  ;;  %v3110_v54 = vor.u32 %v626_v55, %v625_v18  ;;  %537 = vst.msk [vmem:[#allocation2] sm:$0xf] %vm536_vm4, %v2845_v43  ;;  %v1573_v45 = vsel %vm1346_vm3, %v2440_v40, 0  ;;  %v2694_v5 = vunpack.c.l.bf16 %v2746_v59 }
  0x45   : > { %v519_v29 = vpack.c.bf16 %v487_v25, %v487_v25  ;;  %538 = vst.msk [vmem:[#allocation2 + $0x4] sm:$0xf] %vm536_vm4, %v2845_v43  ;;  %1582 = vmatpush.bf16.msra.mxu1 %v1573_v45  ;;  %v2695_v6 = vunpack.c.h.bf16 %v2746_v59  ;;  %v709_v41 = vrot.slane %v707_v63, 7 }
  0x46   : > { %912 = vrot.lane.b32.xlu1 %v834_v22, %s2844_s11  ;;  %v831_v4 = vsel %vm2952_vm2, %v792_v60, 0  ;;  %v587_v22 = vunpack.c.l.b16 %v517_v2  ;;  %540 = vst.msk [vmem:[#allocation2 + $0x88] sm:$0xf] %vm536_vm4, %v2845_v43  ;;  %v2630_v2 = vunpack.c.l.bf16 %v2731_v58 }
  0x47   : > { %866 = vrot.lane.b32.xlu0 %v3036_v1, %s2843_s10  ;;  %914 = vrot.lane.b32.xlu2 %v835_v27, %s2844_s11  ;;  %v518_v27 = vpack.c.bf16 %v486_v24, %v486_v24  ;;  %v589_v39 = vunpack.c.l.b16 %v519_v29  ;;  %541 = vst.msk [vmem:[#allocation2 + $0x8c] sm:$0xf] %vm536_vm4, %v2845_v43 }
  0x48   : > { %v3106_v32 = vpack.c.b16 %v587_v22, %v586_v19  ;;  %v488_v11 = vmul.f32 %v2694_v5, %v2630_v2  ;;  %v2355_v19 = vld [vmem:[%s3104_s15 + $0x8] sm:$0xf]  ;;  %v2578_v22 = vld [vmem:[%s3104_s15 + $0x8] sm:$0x30] }
  0x49   : > { %v588_v38 = vunpack.c.l.b16 %v518_v27  ;;  %v2356_v25 = vor.u32 %v2578_v22, %v2355_v19  ;;  %v2747_v2 = vld [vmem:[%s2921_s9 + $0x48] sm:$0xff]  }
  0x4a   : > { %v668_v7 = vshll.u32 %v3106_v32, 16  ;;  %v665_v16 = vshrl.u32 %v3106_v32, 16  ;;  %v520_v24 = vpack.c.bf16 %v488_v11, %v488_v11  ;;  %v2699_v11 = vunpack.c.h.bf16 %v2747_v2 }
  0x4b   : > { %v3114_v42 = vpack.c.b16 %v589_v39, %v588_v38  ;;  %v1348_v34 = vsel %vm1346_vm3, %v2356_v25, 0 }
  0x4c   : > { %v2545_v61 = vld [vmem:[#allocation2] sm:$0xff]  ;;  %v781_v18 = vrot.slane %v668_v7, 1  ;;  %v590_v33 = vunpack.c.l.b16 %v520_v24  ;;  %1357 = vmatpush.bf16.msra.mxu0 %v1348_v34  ;;  %2754 = vmatpush.bf16.msra.mxu3 %v1348_v34 }
  0x4d   : > { %v672_v55 = vshrl.u32 %v3114_v42, 16  ;;  %2441 = vmatmul.msk.bf16.vlgmr.msra.gmra.mxu1 %vm1297_vm5, %v2545_v61  ;;  %v2732_v61 = vld [vmem:[%s2915_s6 + $0x48] sm:$0xff]  }
  0x4e   : > { %892 = vrot.lane.b32.xlu1 %v824_v44, %s2844_s11  ;;  %v675_v44 = vshll.u32 %v3114_v42, 16  ;;  %v782_v29 = vor.u32 %v781_v18, %v665_v16  ;;  %v2635_v5 = vunpack.c.h.bf16 %v2732_v61 }
  0x4f   : > { %846 = vrot.lane.b32.xlu0 %v3046_v15, %s2843_s10  ;;  %894 = vrot.lane.b32.xlu2 %v825_v57, %s2844_s11 }
  0x50   : > { %v783_v52 = vrot.slane %v675_v44, 1  ;;  %v826_v39 = vsel %vm2952_vm2, %v782_v29, 0  ;;  %2755 = vmatpush.bf16.msrb.mxu3 %v1573_v45  ;;  %v491_v19 = vmul.f32 %v2699_v11, %v2635_v5  ;;  %v2595_v29 = vld [vmem:[%s3104_s15 + $0x10] sm:$0x30] }
  0x51   : > { %v2748_v5 = vld [vmem:[%s2921_s9 + $0x50] sm:$0xff]  }
  0x52   : > { %v784_v57 = vor.u32 %v783_v52, %v672_v55  ;;  %v523_v25 = vpack.c.bf16 %v491_v19, %v491_v19 }
  0x54   : > { %v827_v60 = vsel %vm2952_vm2, %v784_v57, 0 }
  0x56   : > { %858 = vrot.lane.b32.xlu1 %v3060_v26, %s2843_s10 }
  0x57   : > { %906 = vrot.lane.b32.xlu0 %v831_v4, %s2844_s11  ;;  %v2631_v4 = vunpack.c.h.bf16 %v2731_v58  ;;  %896 = vrot.lane.b32.xlu2 %v826_v39, %s2844_s11  ;;  %v593_v39 = vunpack.c.l.b16 %v523_v25 }
  0x59   : > { %v489_v12 = vmul.f32 %v2695_v6, %v2631_v4  ;;  %v2634_v4 = vunpack.c.l.bf16 %v2732_v61  ;;  %v2698_v6 = vunpack.c.l.bf16 %v2747_v2 }
  0x5b   : > { %v521_v27 = vpack.c.bf16 %v489_v12, %v489_v12  ;;  %v753_v12 = vsel %vm3162_vm8, 0, %v3110_v54  ;;  %v490_v18 = vmul.f32 %v2698_v6, %v2634_v4  ;;  %v2733_v4 = vld [vmem:[%s2915_s6 + $0x50] sm:$0xff]  }
  0x5c   : > { %v2638_v6 = vunpack.c.l.bf16 %v2733_v4  ;;  %v2639_v11 = vunpack.c.h.bf16 %v2733_v4 }
  0x5d   : > { %v591_v38 = vunpack.c.l.b16 %v521_v27  ;;  %v522_v24 = vpack.c.bf16 %v490_v18, %v490_v18  ;;  %v2525_v27 = vld [vmem:[%s3104_s15 + $0x10] sm:$0xf]  ;;  %v2703_v18 = vunpack.c.h.bf16 %v2748_v5 }
  0x5e   : > { %848 = vrot.lane.b32.xlu1 %v3106_v32, %s2843_s10  ;;  %v2526_v34 = vor.u32 %v2595_v29, %v2525_v27 }
  0x5f   : > { %850 = vrot.lane.b32.xlu0 %v3114_v42, %s2843_s10  ;;  %v3149_v40 = vpack.c.b16 %v591_v38, %v590_v33  ;;  %v592_v38 = vunpack.c.l.b16 %v522_v24  ;;  %v632_v24 = vrot.slane %v630_v49, 7 }
  0x60   : > { %v3176_v54 = vsel %vm1346_vm3, %v2526_v34, 0 }
  0x61   : > { %v679_v43 = vshrl.u32 %v3149_v40, 16  ;;  %v682_v52 = vshll.u32 %v3149_v40, 16  ;;  %852 = vrot.lane.b32.xlu2 %v3149_v40, %s2843_s10  ;;  %v3178_v61 = vpack.c.b16 %v593_v39, %v592_v38  ;;  %1843 = vmatpush.bf16.msra.mxu2 %v3176_v54  ;;  %v635_v34 = vor.u32 %v633_v50, %v632_v24 }
  0x63   : > { %v785_v57 = vrot.slane %v682_v52, 1  ;;  %v754_v49 = vsel %vm3162_vm8, 0, %v635_v34 }
  0x65   : > { %v786_v58 = vor.u32 %v785_v57, %v679_v43 }
  0x66   : > { %898 = vrot.lane.b32.xlu1 %v827_v60, %s2844_s11 }
  0x67   : > { %v828_v59 = vsel %vm2952_vm2, %v786_v58, 0 }
  0x68   : > { %900 = vrot.lane.b32.xlu0 %v828_v59, %s2844_s11 }
  0x6e   : > { %854 = vrot.lane.b32.xlu1 %v3178_v61, %s2843_s10 }
  0x79   : > { %v837_v60 = vpop.permute.xlu2 %836 }
  0x7a   : > { %v919_v22 = vsel %vm916_vm9, %v753_v12, %v837_v60  ;;  %v2702_v12 = vunpack.c.l.bf16 %v2748_v5  ;;  %v639_v5 = vrot.slane %v637_v30, 7 }
  0x7c   : > { %v492_v19 = vmul.f32 %v2702_v12, %v2638_v6  ;;  %v712_v6 = vor.u32 %v710_v0, %v709_v41  ;;  %v642_v0 = vor.u32 %v640_v31, %v639_v5 }
  0x7e   : > { %v524_v25 = vpack.c.bf16 %v492_v19, %v492_v19  ;;  %v686_v19 = vshrl.u32 %v3178_v61, 16  ;;  %v765_v53 = vsel %vm3162_vm8, 0, %v712_v6  ;;  %v755_v8 = vsel %vm3162_vm8, 0, %v642_v0 }
  0x80   : > { %v594_v29 = vunpack.c.l.b16 %v524_v25 }
  0x81   : > { %v885_v33 = vpop.permute.xlu2 %884 }
  0x82   : > { %v967_v57 = vsel %vm965_vm10, %v919_v22, %v885_v33  ;;  %v493_v22 = vmul.f32 %v2703_v18, %v2639_v11 }
  0x83   : > { %v1014_v58 = vunpack.c.l.b16 %v967_v57  ;;  %v1015_v59 = vunpack.c.h.b16 %v967_v57 }
  0x84   : > { %v525_v27 = vpack.c.bf16 %v493_v22, %v493_v22  ;;  %v689_v22 = vshll.u32 %v3178_v61, 16 }
  0x85   : > { %v1046_v60 = vpack.c.b16 %v1014_v58, %v1014_v58  ;;  %v1047_v2 = vpack.c.b16 %v1015_v59, %v1015_v59 }
  0x86   : > { %v595_v33 = vunpack.c.l.b16 %v525_v27  ;;  %v787_v30 = vrot.slane %v689_v22, 1 }
  0x87   : > { %1111 = vst.msk [vmem:[#allocation2 + $0x8] sm:$0xf] %vm536_vm4, %v1046_v60 }
  0x88   : > { %1112 = vst.msk [vmem:[#allocation2 + $0xc] sm:$0xf] %vm536_vm4, %v1047_v2  ;;  %v3191_v38 = vpack.c.b16 %v595_v33, %v594_v29  ;;  %v788_v34 = vor.u32 %v787_v30, %v686_v19 }
  0x89   : > { %v889_v27 = vpop.permute.xlu2 %888 }
  0x8a   : > { %856 = vrot.lane.b32.xlu0 %v3191_v38, %s2843_s10  ;;  %v693_v59 = vshrl.u32 %v3191_v38, 16  ;;  %v696_v60 = vshll.u32 %v3191_v38, 16  ;;  %v829_v31 = vsel %vm2952_vm2, %v788_v34, 0  ;;  %v723_v34 = vrot.slane %v721_v35, 7  ;;  %s3428_s10 = scalar_lea.vmem %s3634_s5, %s2909_s28 }
  0x8b   : > { %902 = vrot.lane.b32.xlu2 %v829_v31, %s2844_s11 }
  0x8c   : > { %v789_v50 = vrot.slane %v696_v60, 1  ;;  %v726_v56 = vor.u32 %v724_v21, %v723_v34  ;;  %v702_v34 = vrot.slane %v700_v51, 7 }
  0x8e   : > { %v790_v2 = vor.u32 %v789_v50, %v693_v59  ;;  %v767_v9 = vsel %vm3162_vm8, 0, %v726_v56  ;;  %v705_v56 = vor.u32 %v703_v37, %v702_v34 }
  0x8f   : > { %v2562_v39 = vld [vmem:[#allocation2 + $0x8] sm:$0xff] }
  0x90   : > { %v2546_v57 = vld [vmem:[#allocation2 + $0x8] sm:$0xff]  ;;  %2357 = vmatmul.msk.bf16.vlgmr.msra.gmra.mxu0 %vm1297_vm5, %v2562_v39  ;;  %v830_v63 = vsel %vm2952_vm2, %v790_v2, 0  ;;  %v716_v39 = vrot.slane %v714_v47, 7  ;;  %v764_v26 = vsel %vm3162_vm8, 0, %v705_v56 }
  0x91   : > { %v839_v58 = vpop.permute.xlu0 %838  ;;  %2442 = vmatmul.msk.bf16.gmra.mxu1 %vm1297_vm5, %v2546_v57  ;;  %904 = vrot.lane.b32.xlu1 %v830_v63, %s2844_s11  ;;  %v865_v5 = vpop.permute.xlu2 %864 }
  0x92   : > { %v922_v4 = vsel %vm916_vm9, %v754_v49, %v839_v58 }
  0x98   : > { %v887_v11 = vpop.permute.xlu1 %886 }
  0x99   : > { %v969_v12 = vsel %vm965_vm10, %v922_v4, %v887_v11  ;;  %v861_v18 = vpop.permute.xlu0 %860  ;;  %v719_v4 = vor.u32 %v717_v48, %v716_v39 }
  0x9a   : > { %v1016_v24 = vunpack.c.l.b16 %v969_v12  ;;  %v1017_v25 = vunpack.c.h.b16 %v969_v12  ;;  %v955_v57 = vsel %vm916_vm9, %v765_v53, %v861_v18  ;;  %v646_v18 = vrot.slane %v644_v17, 7 }
  0x9b   : > { %v766_v48 = vsel %vm3162_vm8, 0, %v719_v4 }
  0x9c   : > { %v1048_v29 = vpack.c.b16 %v1016_v24, %v1016_v24  ;;  %v1049_v33 = vpack.c.b16 %v1017_v25, %v1017_v25 }
  0x9e   : > { %1113 = vst.msk [vmem:[#allocation2 + $0x10] sm:$0xf] %vm536_vm4, %v1048_v29 }
  0x9f   : > { %1114 = vst.msk [vmem:[#allocation2 + $0x14] sm:$0xf] %vm536_vm4, %v1049_v33  ;;  %v649_v33 = vor.u32 %v647_v3, %v646_v18 }
  0xa0   : > { %v909_v58 = vpop.permute.xlu1 %908 }
  0xa1   : > { %v991_v41 = vsel %vm965_vm10, %v955_v57, %v909_v58  ;;  %v841_v49 = vpop.permute.xlu0 %840 }
  0xa2   : > { %v1038_v50 = vunpack.c.l.b16 %v991_v41  ;;  %v1039_v47 = vunpack.c.h.b16 %v991_v41  ;;  %v925_v2 = vsel %vm916_vm9, %v755_v8, %v841_v49  ;;  %v845_v8 = vpop.permute.xlu2 %844  ;;  %v756_v49 = vsel %vm3162_vm8, 0, %v649_v33 }
  0xa3   : > { %v971_v6 = vsel %vm965_vm10, %v925_v2, %v889_v27  ;;  %v653_v2 = vrot.slane %v651_v23, 7  ;;  %v660_v23 = vrot.slane %v658_v28, 7 }
  0xa4   : > { %v1070_v63 = vpack.c.b16 %v1038_v50, %v1038_v50  ;;  %v1071_v11 = vpack.c.b16 %v1039_v47, %v1039_v47  ;;  %v1018_v62 = vunpack.c.l.b16 %v971_v6  ;;  %v1019_v12 = vunpack.c.h.b16 %v971_v6 }
  0xa5   : > { %v730_v50 = vrot.slane %v728_v13, 7 }
  0xa6   : > { %1135 = vst.msk [vmem:[#allocation2 + $0x68] sm:$0xf] %vm536_vm4, %v1070_v63  ;;  %v2579_v24 = vld [vmem:[#allocation2 + $0x10] sm:$0xff]  ;;  %v1050_v25 = vpack.c.b16 %v1018_v62, %v1018_v62  ;;  %v1051_v53 = vpack.c.b16 %v1019_v12, %v1019_v12 }
  0xa7   : > { %v2563_v0 = vld [vmem:[#allocation2 + $0x10] sm:$0xff]  ;;  %1136 = vst.msk [vmem:[#allocation2 + $0x6c] sm:$0xf] %vm536_vm4, %v1071_v11  ;;  %2527 = vmatmul.msk.bf16.vlgmr.msra.gmra.mxu2 %vm1297_vm5, %v2579_v24  ;;  %v733_v21 = vor.u32 %v731_v14, %v730_v50 }
  0xa8   : > { %v2547_v36 = vld [vmem:[#allocation2 + $0x10] sm:$0xff]  ;;  %1115 = vst.msk [vmem:[#allocation2 + $0x18] sm:$0xf] %vm536_vm4, %v1050_v25  ;;  %2358 = vmatmul.msk.bf16.gmra.mxu0 %vm1297_vm5, %v2563_v0  ;;  %v863_v17 = vpop.permute.xlu1 %862  ;;  %v656_v25 = vor.u32 %v654_v10, %v653_v2 }
  0xa9   : > { %1116 = vst.msk [vmem:[#allocation2 + $0x1c] sm:$0xf] %vm536_vm4, %v1051_v53  ;;  %2443 = vmatmul.msk.bf16.gmra.mxu1 %vm1297_vm5, %v2547_v36  ;;  %v958_v27 = vsel %vm916_vm9, %v766_v48, %v863_v17  ;;  %v911_v30 = vpop.permute.xlu0 %910  ;;  %v768_v1 = vsel %vm3162_vm8, 0, %v733_v21  ;;  %v663_v48 = vor.u32 %v661_v20, %v660_v23  ;;  %v667_v21 = vrot.slane %v665_v16, 7 }
  0xaa   : > { %v993_v29 = vsel %vm965_vm10, %v958_v27, %v911_v30  ;;  %v915_v24 = vpop.permute.xlu2 %914  ;;  %v757_v10 = vsel %vm3162_vm8, 0, %v656_v25  ;;  %v674_v23 = vrot.slane %v672_v55, 7 }
  0xab   : > { %v1040_v39 = vunpack.c.l.b16 %v993_v29  ;;  %v1041_v57 = vunpack.c.h.b16 %v993_v29  ;;  %v758_v15 = vsel %vm3162_vm8, 0, %v663_v48 }
  0xad   : > { %v1072_v31 = vpack.c.b16 %v1040_v39, %v1040_v39  ;;  %v1073_v58 = vpack.c.b16 %v1041_v57, %v1041_v57  ;;  %v931_v39 = vsel %vm916_vm9, %v757_v10, %v845_v8 }
  0xae   : > { %v2574_v41 = vld [vmem:[#allocation2 + $0x68] sm:$0xff] }
  0xaf   : > { %1137 = vst.msk [vmem:[#allocation2 + $0x70] sm:$0xf] %vm536_vm4, %v1072_v31  ;;  %2369 = vmatmul.msk.bf16.vlgmr.msra.gmra.mxu3 %vm1297_vm5, %v2574_v41 }
  0xb0   : > { %1138 = vst.msk [vmem:[#allocation2 + $0x74] sm:$0xf] %vm536_vm4, %v1073_v58  ;;  %v843_v3 = vpop.permute.xlu1 %842  ;;  %2756 = vmatpush.bf16.msra.mxu3 %v3176_v54  ;;  %v2564_v63 = vld [vmem:[#allocation2 + $0x18] sm:$0xff]  ;;  %v961_v54 = vsel %vm916_vm9, %v767_v9, %v865_v5 }
  0xb1   : > { %v928_v35 = vsel %vm916_vm9, %v756_v49, %v843_v3  ;;  %v891_v47 = vpop.permute.xlu0 %890  ;;  %v2580_v11 = vld [vmem:[#allocation2 + $0x18] sm:$0xff] }
  0xb2   : > { %v973_v13 = vsel %vm965_vm10, %v928_v35, %v891_v47  ;;  %v2548_v18 = vld [vmem:[#allocation2 + $0x18] sm:$0xff]  ;;  %v895_v58 = vpop.permute.xlu2 %894 }
  0xb3   : > { %v1020_v4 = vunpack.c.l.b16 %v973_v13  ;;  %v1021_v6 = vunpack.c.h.b16 %v973_v13 }
  0xb5   : > { %v1052_v62 = vpack.c.b16 %v1020_v4, %v1020_v4  ;;  %v1053_v12 = vpack.c.b16 %v1021_v6, %v1021_v6 }
  0xb7   : > { %1117 = vst.msk [vmem:[#allocation2 + $0x20] sm:$0xf] %vm536_vm4, %v1052_v62  ;;  %2528 = vmatmul.msk.bf16.gmra.mxu2 %vm1297_vm5, %v2580_v11  ;;  %v2575_v17 = vld [vmem:[#allocation2 + $0x70] sm:$0xff] }
  0xb8   : > { %1118 = vst.msk [vmem:[#allocation2 + $0x24] sm:$0xf] %vm536_vm4, %v1053_v12  ;;  %2359 = vmatmul.msk.bf16.gmra.mxu0 %vm1297_vm5, %v2564_v63  ;;  %v913_v14 = vpop.permute.xlu1 %912  ;;  %v2559_v38 = vld [vmem:[#allocation2 + $0x70] sm:$0xff] }
  0xb9   : > { %2444 = vmatmul.msk.bf16.gmra.mxu1 %vm1297_vm5, %v2548_v18  ;;  %v995_v5 = vsel %vm965_vm10, %v961_v54, %v913_v14  ;;  %v867_v28 = vpop.permute.xlu0 %866  ;;  %v670_v18 = vor.u32 %v668_v7, %v667_v21  ;;  %v677_v7 = vor.u32 %v675_v44, %v674_v23 }
  0xba   : > { %v1042_v53 = vunpack.c.l.b16 %v995_v5  ;;  %v1043_v0 = vunpack.c.h.b16 %v995_v5  ;;  %v964_v46 = vsel %vm916_vm9, %v768_v1, %v867_v28  ;;  %v897_v28 = vpop.permute.xlu2 %896 }
  0xbb   : > { %v997_v36 = vsel %vm965_vm10, %v964_v46, %v915_v24  ;;  %v759_v5 = vsel %vm3162_vm8, 0, %v670_v18  ;;  %v760_v10 = vsel %vm3162_vm8, 0, %v677_v7 }
  0xbc   : > { %v1074_v27 = vpack.c.b16 %v1042_v53, %v1042_v53  ;;  %v1075_v30 = vpack.c.b16 %v1043_v0, %v1043_v0  ;;  %v1044_v29 = vunpack.c.l.b16 %v997_v36  ;;  %v1045_v33 = vunpack.c.h.b16 %v997_v36 }
  0xbe   : > { %1139 = vst.msk [vmem:[#allocation2 + $0x78] sm:$0xf] %vm536_vm4, %v1074_v27  ;;  %v1076_v57 = vpack.c.b16 %v1044_v29, %v1044_v29  ;;  %v1077_v31 = vpack.c.b16 %v1045_v33, %v1045_v33 }
  0xbf   : > { %1140 = vst.msk [vmem:[#allocation2 + $0x7c] sm:$0xf] %vm536_vm4, %v1075_v30  ;;  %2370 = vmatmul.msk.bf16.gmra.mxu3 %vm1297_vm5, %v2575_v17  ;;  %v2565_v2 = vld [vmem:[#allocation2 + $0x20] sm:$0xff] }
  0xc0   : > { %v893_v20 = vpop.permute.xlu1 %892  ;;  %1141 = vst.msk [vmem:[#allocation2 + $0x80] sm:$0xf] %vm536_vm4, %v1076_v57  ;;  %v2581_v13 = vld [vmem:[#allocation2 + $0x20] sm:$0xff]  ;;  %v681_v57 = vrot.slane %v679_v43, 7 }
  0xc1   : > { %v975_v41 = vsel %vm965_vm10, %v931_v39, %v893_v20  ;;  %1142 = vst.msk [vmem:[#allocation2 + $0x84] sm:$0xf] %vm536_vm4, %v1077_v31  ;;  %v847_v51 = vpop.permute.xlu0 %846  ;;  %v2549_v9 = vld [vmem:[#allocation2 + $0x20] sm:$0xff] }
  0xc2   : > { %v1022_v49 = vunpack.c.l.b16 %v975_v41  ;;  %v1023_v8 = vunpack.c.h.b16 %v975_v41  ;;  %v934_v50 = vsel %vm916_vm9, %v758_v15, %v847_v51 }
  0xc3   : > { %v977_v3 = vsel %vm965_vm10, %v934_v50, %v895_v58  ;;  %v684_v58 = vor.u32 %v682_v52, %v681_v57  ;;  %v3410_v57 = vld [vmem:[%s330_s18] ss:$0 sm:$0xff] }
  0xc4   : > { %v1054_v35 = vpack.c.b16 %v1022_v49, %v1022_v49  ;;  %v1055_v47 = vpack.c.b16 %v1023_v8, %v1023_v8  ;;  %v1024_v4 = vunpack.c.l.b16 %v977_v3  ;;  %v1025_v6 = vunpack.c.h.b16 %v977_v3  ;;  %v853_v8 = vpop.permute.xlu2 %852 }
  0xc5   : > { %v761_v49 = vsel %vm3162_vm8, 0, %v684_v58 }
  0xc6   : > { %1119 = vst.msk [vmem:[#allocation2 + $0x28] sm:$0xf] %vm536_vm4, %v1054_v35  ;;  %v1056_v63 = vpack.c.b16 %v1024_v4, %v1024_v4  ;;  %v1057_v11 = vpack.c.b16 %v1025_v6, %v1025_v6  ;;  %v2576_v25 = vld [vmem:[#allocation2 + $0x78] sm:$0xff]  ;;  %v943_v43 = vsel %vm916_vm9, %v761_v49, %v853_v8  ;;  %v2591_v49 = vld [vmem:[#allocation2 + $0x70] sm:$0xff] }
  0xc7   : > { %1120 = vst.msk [vmem:[#allocation2 + $0x2c] sm:$0xf] %vm536_vm4, %v1055_v47  ;;  %2529 = vmatmul.msk.bf16.gmra.mxu2 %vm1297_vm5, %v2581_v13  ;;  %v688_v13 = vrot.slane %v686_v19, 7 }
  0xc8   : > { %2360 = vmatmul.msk.bf16.gmra.mxu0 %vm1297_vm5, %v2565_v2  ;;  %1121 = vst.msk [vmem:[#allocation2 + $0x30] sm:$0xf] %vm536_vm4, %v1056_v63  ;;  %v859_v37 = vpop.permute.xlu1 %858  ;;  %v2577_v31 = vld [vmem:[#allocation2 + $0x80] sm:$0xff] }
  0xc9   : > { %2445 = vmatmul.msk.bf16.gmra.mxu1 %vm1297_vm5, %v2549_v9  ;;  %1122 = vst.msk [vmem:[#allocation2 + $0x34] sm:$0xf] %vm536_vm4, %v1057_v11  ;;  %v952_v16 = vsel %vm916_vm9, %v764_v26, %v859_v37  ;;  %v907_v62 = vpop.permute.xlu0 %906  ;;  %v691_v4 = vor.u32 %v689_v22, %v688_v13 }
  0xca   : > { %v989_v12 = vsel %vm965_vm10, %v952_v16, %v907_v62  ;;  %v2558_v16 = vld [vmem:[#allocation2 + $0x68] sm:$0xff]  ;;  %v1584_v62 = vpop.f32.mrf.mxu1 }
  0xcb   : > { %v1036_v54 = vunpack.c.l.b16 %v989_v12  ;;  %v1037_v24 = vunpack.c.h.b16 %v989_v12  ;;  %v762_v63 = vsel %vm3162_vm8, 0, %v691_v4 }
  0xcd   : > { %v1068_v1 = vpack.c.b16 %v1036_v54, %v1036_v54  ;;  %v1069_v14 = vpack.c.b16 %v1037_v24, %v1037_v24  ;;  %v695_v54 = vrot.slane %v693_v59, 7 }
  0xce   : > { %v2582_v48 = vld [vmem:[#allocation2 + $0x28] sm:$0xff] }
  0xcf   : > { %1133 = vst.msk [vmem:[#allocation2 + $0x60] sm:$0xf] %vm536_vm4, %v1068_v1  ;;  %2371 = vmatmul.msk.bf16.gmra.mxu3 %vm1297_vm5, %v2576_v25  ;;  %v2566_v17 = vld [vmem:[#allocation2 + $0x28] sm:$0xff]  ;;  %v698_v1 = vor.u32 %v696_v60, %v695_v54 }
  0xd0   : > { %1134 = vst.msk [vmem:[#allocation2 + $0x64] sm:$0xf] %vm536_vm4, %v1069_v14  ;;  %v849_v32 = vpop.permute.xlu1 %848  ;;  %v2550_v27 = vld [vmem:[#allocation2 + $0x28] sm:$0xff]  ;;  %v2583_v41 = vld [vmem:[#allocation2 + $0x30] sm:$0xff] }
  0xd1   : > { %v937_v53 = vsel %vm916_vm9, %v759_v5, %v849_v32  ;;  %v851_v36 = vpop.permute.xlu0 %850  ;;  %v2567_v51 = vld [vmem:[#allocation2 + $0x30] sm:$0xff] }
  0xd2   : > { %v979_v55 = vsel %vm965_vm10, %v937_v53, %v897_v28  ;;  %v940_v33 = vsel %vm916_vm9, %v760_v10, %v851_v36  ;;  %v2551_v50 = vld [vmem:[#allocation2 + $0x30] sm:$0xff]  ;;  %v1586_v5 = vpop.f32.mrf.mxu1  ;;  %v763_v28 = vsel %vm3162_vm8, 0, %v698_v1 }
  0xd3   : > { %v1026_v0 = vunpack.c.l.b16 %v979_v55  ;;  %v1027_v46 = vunpack.c.h.b16 %v979_v55 }
  0xd5   : > { %v1058_v30 = vpack.c.b16 %v1026_v0, %v1026_v0  ;;  %v1059_v29 = vpack.c.b16 %v1027_v46, %v1027_v46 }
  0xd7   : > { %1123 = vst.msk [vmem:[#allocation2 + $0x38] sm:$0xf] %vm536_vm4, %v1058_v30  ;;  %2530 = vmatmul.msk.bf16.gmra.mxu2 %vm1297_vm5, %v2582_v48  ;;  %v2557_v35 = vld [vmem:[#allocation2 + $0x60] sm:$0xff]  ;;  %v2560_v30 = vld [vmem:[#allocation2 + $0x78] sm:$0xff] }
  0xd8   : > { %2361 = vmatmul.msk.bf16.gmra.mxu0 %vm1297_vm5, %v2566_v17  ;;  %1124 = vst.msk [vmem:[#allocation2 + $0x3c] sm:$0xf] %vm536_vm4, %v1059_v29  ;;  %v899_v42 = vpop.permute.xlu1 %898 }
  0xd9   : > { %2446 = vmatmul.msk.bf16.gmra.mxu1 %vm1297_vm5, %v2550_v27  ;;  %v981_v44 = vsel %vm965_vm10, %v940_v33, %v899_v42 }
  0xda   : > { %v1028_v34 = vunpack.c.l.b16 %v981_v44  ;;  %v1029_v39 = vunpack.c.h.b16 %v981_v44  ;;  %v901_v56 = vpop.permute.xlu0 %900 }
  0xdb   : > { %v983_v3 = vsel %vm965_vm10, %v943_v43, %v901_v56 }
  0xdc   : > { %v1060_v15 = vpack.c.b16 %v1028_v34, %v1028_v34  ;;  %v1061_v20 = vpack.c.b16 %v1029_v39, %v1029_v39  ;;  %v1030_v40 = vunpack.c.l.b16 %v983_v3  ;;  %v1031_v52 = vunpack.c.h.b16 %v983_v3 }
  0xde   : > { %1125 = vst.msk [vmem:[#allocation2 + $0x40] sm:$0xf] %vm536_vm4, %v1060_v15  ;;  %v1062_v47 = vpack.c.b16 %v1030_v40, %v1030_v40  ;;  %v1063_v2 = vpack.c.b16 %v1031_v52, %v1031_v52 }
  0xdf   : > { %1126 = vst.msk [vmem:[#allocation2 + $0x44] sm:$0xf] %vm536_vm4, %v1061_v20  ;;  %2372 = vmatmul.msk.bf16.gmra.mxu3 %vm1297_vm5, %v2577_v31  ;;  %v2568_v6 = vld [vmem:[#allocation2 + $0x38] sm:$0xff]  ;;  %v3417_v20 = vld [vmem:[%s333_s27] ss:$0 sm:$0xff] }
  0xe0   : > { %1127 = vst.msk [vmem:[#allocation2 + $0x48] sm:$0xf] %vm536_vm4, %v1062_v47  ;;  %v2584_v9 = vld [vmem:[#allocation2 + $0x38] sm:$0xff]  ;;  %v855_v19 = vpop.permute.xlu1 %854 }
  0xe1   : > { %1128 = vst.msk [vmem:[#allocation2 + $0x4c] sm:$0xf] %vm536_vm4, %v1063_v2  ;;  %v2552_v21 = vld [vmem:[#allocation2 + $0x38] sm:$0xff]  ;;  %v946_v11 = vsel %vm916_vm9, %v762_v63, %v855_v19 }
  0xe5   : > { %v903_v26 = vpop.permute.xlu2 %902 }
  0xe6   : > { %v985_v37 = vsel %vm965_vm10, %v946_v11, %v903_v26  ;;  %v2569_v24 = vld [vmem:[#allocation2 + $0x40] sm:$0xff] }
  0xe7   : > { %2531 = vmatmul.msk.bf16.gmra.mxu2 %vm1297_vm5, %v2583_v41  ;;  %v1032_v61 = vunpack.c.l.b16 %v985_v37  ;;  %v1033_v22 = vunpack.c.h.b16 %v985_v37  ;;  %v2585_v23 = vld [vmem:[#allocation2 + $0x40] sm:$0xff] }
  0xe8   : > { %2362 = vmatmul.msk.bf16.gmra.mxu0 %vm1297_vm5, %v2567_v51  ;;  %v2553_v25 = vld [vmem:[#allocation2 + $0x40] sm:$0xff]  ;;  %v2586_v10 = vld [vmem:[#allocation2 + $0x48] sm:$0xff] }
  0xe9   : > { %2447 = vmatmul.msk.bf16.gmra.mxu1 %vm1297_vm5, %v2551_v50  ;;  %v1064_v12 = vpack.c.b16 %v1032_v61, %v1032_v61  ;;  %v1065_v18 = vpack.c.b16 %v1033_v22, %v1033_v22  ;;  %v2570_v36 = vld [vmem:[#allocation2 + $0x48] sm:$0xff] }
  0xea   : > { %v2554_v48 = vld [vmem:[#allocation2 + $0x48] sm:$0xff] }
  0xeb   : > { %1129 = vst.msk [vmem:[#allocation2 + $0x50] sm:$0xf] %vm536_vm4, %v1064_v12 }
  0xec   : > { %1130 = vst.msk [vmem:[#allocation2 + $0x54] sm:$0xf] %vm536_vm4, %v1065_v18 }
  0xef   : > { %2453 = vmatmul.msk.bf16.vlgmr.msrb.gmra.mxu3 %vm1297_vm5, %v2557_v35 }
  0xf3   : > { %v2571_v29 = vld [vmem:[#allocation2 + $0x50] sm:$0xff] }
  0xf4   : > { %v2587_v33 = vld [vmem:[#allocation2 + $0x50] sm:$0xff] }
  0xf5   : > { %v2555_v44 = vld [vmem:[#allocation2 + $0x50] sm:$0xff] }
  0xf7   : > { %2532 = vmatmul.msk.bf16.gmra.mxu2 %vm1297_vm5, %v2584_v9 }
  0xf8   : > { %2363 = vmatmul.msk.bf16.gmra.mxu0 %vm1297_vm5, %v2568_v6 }
  0xf9   : > { %2448 = vmatmul.msk.bf16.gmra.mxu1 %vm1297_vm5, %v2552_v21 }
  0xfc   : > { %v857_v14 = vpop.permute.xlu0 %856 }
  0xfd   : > { %v949_v32 = vsel %vm916_vm9, %v763_v28, %v857_v14  ;;  %v2573_v28 = vld [vmem:[#allocation2 + $0x60] sm:$0xff] }
  0xff   : > { %2454 = vmatmul.msk.bf16.gmra.mxu3 %vm1297_vm5, %v2558_v16  ;;  %v2592_v16 = vld [vmem:[#allocation2 + $0x78] sm:$0xff] }
 0x103   : > { %v905_v59 = vpop.permute.xlu1 %904 }
 0x104   : > { %v987_v7 = vsel %vm965_vm10, %v949_v32, %v905_v59  ;;  %v2589_v32 = vld [vmem:[#allocation2 + $0x60] sm:$0xff] }
 0x105   : > { %v1034_v53 = vunpack.c.l.b16 %v987_v7  ;;  %v1035_v55 = vunpack.c.h.b16 %v987_v7 }
 0x107   : > { %2533 = vmatmul.msk.bf16.gmra.mxu2 %vm1297_vm5, %v2585_v23  ;;  %v1066_v60 = vpack.c.b16 %v1034_v53, %v1034_v53  ;;  %v1067_v0 = vpack.c.b16 %v1035_v55, %v1035_v55 }
 0x108   : > { %2364 = vmatmul.msk.bf16.gmra.mxu0 %vm1297_vm5, %v2569_v24 }
 0x109   : > { %2449 = vmatmul.msk.bf16.gmra.mxu1 %vm1297_vm5, %v2553_v25  ;;  %1131 = vst.msk [vmem:[#allocation2 + $0x58] sm:$0xf] %vm536_vm4, %v1066_v60 }
 0x10a   : > { %1132 = vst.msk [vmem:[#allocation2 + $0x5c] sm:$0xf] %vm536_vm4, %v1067_v0 }
 0x10d   : > { %v1359_v46 = vpop.f32.mrf.mxu0 }
 0x10e   : > { %v1589_v45 = vpop.f32.mrf.mxu1  ;;  %v1585_v39 = vadd.f32 %v1584_v62, %v1359_v46 }
 0x10f   : > { %2455 = vmatmul.msk.bf16.gmra.mxu3 %vm1297_vm5, %v2559_v38 }
 0x111   : > { %v2572_v35 = vld [vmem:[#allocation2 + $0x58] sm:$0xff] }
 0x112   : > { %v2588_v47 = vld [vmem:[#allocation2 + $0x58] sm:$0xff] }
 0x113   : > { %v2556_v13 = vld [vmem:[#allocation2 + $0x58] sm:$0xff] }
 0x115   : > { %v1361_v17 = vpop.f32.mrf.mxu0 }
 0x116   : > { %v1591_v27 = vpop.f32.mrf.mxu1  ;;  %v1587_v50 = vadd.f32 %v1586_v5, %v1361_v17 }
 0x117   : > { %2534 = vmatmul.msk.bf16.gmra.mxu2 %vm1297_vm5, %v2586_v10 }
 0x118   : > { %2365 = vmatmul.msk.bf16.gmra.mxu0 %vm1297_vm5, %v2570_v36  ;;  %v2593_v36 = vld [vmem:[#allocation2 + $0x80] sm:$0xff] }
 0x119   : > { %2450 = vmatmul.msk.bf16.gmra.mxu1 %vm1297_vm5, %v2554_v48 }
 0x11f   : > { %2456 = vmatmul.msk.bf16.gmra.mxu3 %vm1297_vm5, %v2560_v30 }
 0x125   : > { %v1364_v42 = vpop.f32.mrf.mxu0 }
 0x126   : > { %v1594_v34 = vpop.f32.mrf.mxu1  ;;  %v1590_v21 = vadd.f32 %v1589_v45, %v1364_v42 }
 0x127   : > { %2535 = vmatmul.msk.bf16.gmra.mxu2 %vm1297_vm5, %v2587_v33 }
 0x128   : > { %2366 = vmatmul.msk.bf16.gmra.mxu0 %vm1297_vm5, %v2571_v29 }
 0x129   : > { %2451 = vmatmul.msk.bf16.gmra.mxu1 %vm1297_vm5, %v2555_v44 }
 0x12a   : > { %v1845_v31 = vpop.f32.mrf.mxu2 }
 0x12b   : > { %v1925_v15 = vadd.f32 %v1845_v31, %v1585_v39  ;;  %v2590_v31 = vld [vmem:[#allocation2 + $0x68] sm:$0xff] }
 0x12d   : > { %v1366_v58 = vpop.f32.mrf.mxu0  ;;  %v1961_v41 = vmul.f32 %v3410_v57, %v1925_v15 }
 0x12e   : > { %v3420_v51 = vpop.f32.mrf.mxu1  ;;  %v1592_v18 = vadd.f32 %v1591_v27, %v1366_v58 }
 0x12f   : > { %v1997_v8 = vadd.f32 %v3417_v20, %v1961_v41  ;;  %2539 = vmatmul.msk.bf16.vlgmr.msra.gmra.mxu3 %vm1297_vm5, %v2591_v49 }
 0x131   : > { %v2029_v43 = vmax.f32 %v1997_v8, 0.0 }
 0x132   : > { %v3430_v56 = vpop.f32.mrf.mxu3  ;;  %v1847_v3 = vpop.f32.mrf.mxu2 }
 0x133   : > { %v2061_v40 = vpack.c.bf16 %v2029_v43, %v2029_v43  ;;  %v1926_v52 = vadd.f32 %v1847_v3, %v1587_v50  ;;  %v2594_v43 = vld [vmem:[#allocation2 + $0x88] sm:$0xff] }
 0x135   : > { %v1369_v2 = vpop.f32.mrf.mxu0  ;;  %2094 = vst.msk [vmem:[%s3428_s10] sm:$0xf] %vm2093_vm11, %v2061_v40  ;;  %v1962_v4 = vmul.f32 %v3410_v57, %v1926_v52 }
 0x136   : > { %v1599_v6 = vpop.f32.mrf.mxu1  ;;  %v1595_v7 = vadd.f32 %v1594_v34, %v1369_v2 }
 0x137   : > { %v1998_v9 = vadd.f32 %v3417_v20, %v1962_v4  ;;  %2536 = vmatmul.msk.bf16.gmra.mxu2 %vm1297_vm5, %v2588_v47 }
 0x138   : > { %2367 = vmatmul.msk.bf16.gmra.mxu0 %vm1297_vm5, %v2572_v35 }
 0x139   : > { %2452 = vmatmul.msk.bf16.gmra.mxu1 %vm1297_vm5, %v2556_v13  ;;  %v2030_v63 = vmax.f32 %v1998_v9, 0.0 }
 0x13a   : > { %v3439_v19 = vpop.f32.mrf.mxu3  ;;  %v1850_v11 = vpop.f32.mrf.mxu2 }
 0x13b   : > { %v2062_v26 = vpack.c.bf16 %v2030_v63, %v2030_v63  ;;  %v1927_v37 = vadd.f32 %v1850_v11, %v1590_v21 }
 0x13d   : > { %v1371_v61 = vpop.f32.mrf.mxu0  ;;  %2095 = vst.msk [vmem:[%s3428_s10 + $0x4] sm:$0xf] %vm2093_vm11, %v2062_v26  ;;  %v1963_v22 = vmul.f32 %v3410_v57, %v1927_v37 }
 0x13e   : > { %v1601_v12 = vpop.f32.mrf.mxu1  ;;  %v1597_v17 = vadd.f32 %v3420_v51, %v1371_v61 }
 0x13f   : > { %v1999_v62 = vadd.f32 %v3417_v20, %v1963_v22  ;;  %2540 = vmatmul.msk.bf16.gmra.mxu3 %vm1297_vm5, %v2592_v16 }
 0x141   : > { %v2031_v54 = vmax.f32 %v1999_v62, 0.0 }
 0x142   : > { %v3446_v24 = vpop.f32.mrf.mxu3  ;;  %v1852_v23 = vpop.f32.mrf.mxu2 }
 0x143   : > { %v2063_v25 = vpack.c.bf16 %v2031_v54, %v2031_v54  ;;  %v1928_v1 = vadd.f32 %v1852_v23, %v1592_v18 }
 0x145   : > { %v1374_v14 = vpop.f32.mrf.mxu0  ;;  %2096 = vst.msk [vmem:[%s3428_s10 + $0x8] sm:$0xf] %vm2093_vm11, %v2063_v25  ;;  %v1964_v5 = vmul.f32 %v3410_v57, %v1928_v1 }
 0x146   : > { %v1604_v55 = vpop.f32.mrf.mxu1  ;;  %v1600_v58 = vadd.f32 %v1599_v6, %v1374_v14 }
 0x147   : > { %v2000_v59 = vadd.f32 %v3417_v20, %v1964_v5  ;;  %2537 = vmatmul.msk.bf16.gmra.mxu2 %vm1297_vm5, %v2589_v32 }
 0x148   : > { %2368 = vmatmul.msk.bf16.gmra.mxu0 %vm1297_vm5, %v2573_v28 }
 0x149   : > { %v2032_v53 = vmax.f32 %v2000_v59, 0.0 }
 0x14a   : > { %v3454_v38 = vpop.f32.mrf.mxu3  ;;  %v1855_v60 = vpop.f32.mrf.mxu2 }
 0x14b   : > { %v2064_v0 = vpack.c.bf16 %v2032_v53, %v2032_v53  ;;  %v1929_v46 = vadd.f32 %v1855_v60, %v1595_v7 }
 0x14d   : > { %v1376_v45 = vpop.f32.mrf.mxu0  ;;  %2097 = vst.msk [vmem:[%s3428_s10 + $0xc] sm:$0xf] %vm2093_vm11, %v2064_v0  ;;  %v1965_v10 = vmul.f32 %v3410_v57, %v1929_v46 }
 0x14e   : > { %v1606_v42 = vpop.f32.mrf.mxu1  ;;  %v1602_v47 = vadd.f32 %v1601_v12, %v1376_v45 }
 0x14f   : > { %v2001_v48 = vadd.f32 %v3417_v20, %v1965_v10  ;;  %2541 = vmatmul.msk.bf16.gmra.mxu3 %vm1297_vm5, %v2593_v36 }
 0x151   : > { %v2033_v27 = vmax.f32 %v2001_v48, 0.0 }
 0x152   : > { %v3462_v30 = vpop.f32.mrf.mxu3  ;;  %v1857_v29 = vpop.f32.mrf.mxu2 }
 0x153   : > { %v2065_v33 = vpack.c.bf16 %v2033_v27, %v2033_v27  ;;  %v1930_v44 = vadd.f32 %v1857_v29, %v1597_v17 }
 0x155   : > { %v1379_v34 = vpop.f32.mrf.mxu0  ;;  %2098 = vst.msk [vmem:[%s3428_s10 + $0x10] sm:$0xf] %vm2093_vm11, %v2065_v33  ;;  %v1966_v39 = vmul.f32 %v3410_v57, %v1930_v44 }
 0x156   : > { %v1609_v40 = vpop.f32.mrf.mxu1  ;;  %v1605_v37 = vadd.f32 %v1604_v55, %v1379_v34 }
 0x157   : > { %v2002_v15 = vadd.f32 %v3417_v20, %v1966_v39  ;;  %2538 = vmatmul.msk.bf16.gmra.mxu2 %vm1297_vm5, %v2590_v31 }
 0x159   : > { %v2034_v41 = vmax.f32 %v2002_v15, 0.0 }
 0x15a   : > { %v3469_v51 = vpop.f32.mrf.mxu3  ;;  %v1860_v49 = vpop.f32.mrf.mxu2 }
 0x15b   : > { %v2066_v8 = vpack.c.bf16 %v2034_v41, %v2034_v41  ;;  %v1931_v50 = vadd.f32 %v1860_v49, %v1600_v58 }
 0x15d   : > { %v1381_v3 = vpop.f32.mrf.mxu0  ;;  %2099 = vst.msk [vmem:[%s3428_s10 + $0x14] sm:$0xf] %vm2093_vm11, %v2066_v8  ;;  %v1967_v52 = vmul.f32 %v3410_v57, %v1931_v50 }
 0x15e   : > { %v1611_v11 = vpop.f32.mrf.mxu1  ;;  %v1607_v25 = vadd.f32 %v1606_v42, %v1381_v3 }
 0x15f   : > { %v2003_v35 = vadd.f32 %v3417_v20, %v1967_v52  ;;  %2542 = vmatmul.msk.bf16.gmra.mxu3 %vm1297_vm5, %v2594_v43 }
 0x161   : > { %v2035_v2 = vmax.f32 %v2003_v35, 0.0 }
 0x162   : > { %v3476_v13 = vpop.f32.mrf.mxu3  ;;  %v1862_v4 = vpop.f32.mrf.mxu2 }
 0x163   : > { %v2067_v6 = vpack.c.bf16 %v2035_v2, %v2035_v2  ;;  %v1932_v9 = vadd.f32 %v1862_v4, %v1602_v47 }
 0x165   : > { %v1384_v21 = vpop.f32.mrf.mxu0  ;;  %2100 = vst.msk [vmem:[%s3428_s10 + $0x18] sm:$0xf] %vm2093_vm11, %v2067_v6  ;;  %v1968_v63 = vmul.f32 %v3410_v57, %v1932_v9 }
 0x166   : > { %v1614_v1 = vpop.f32.mrf.mxu1  ;;  %v1610_v60 = vadd.f32 %v1609_v40, %v1384_v21 }
 0x167   : > { %v2004_v26 = vadd.f32 %v3417_v20, %v1968_v63 }
 0x169   : > { %v2036_v61 = vmax.f32 %v2004_v26, 0.0 }
 0x16a   : > { %v3482_v22 = vpop.f32.mrf.mxu3  ;;  %v1865_v16 = vpop.f32.mrf.mxu2 }
 0x16b   : > { %v2068_v62 = vpack.c.bf16 %v2036_v61, %v2036_v61  ;;  %v1933_v12 = vadd.f32 %v1865_v16, %v1605_v37 }
 0x16d   : > { %v1386_v18 = vpop.f32.mrf.mxu0  ;;  %2101 = vst.msk [vmem:[%s3428_s10 + $0x1c] sm:$0xf] %vm2093_vm11, %v2068_v62  ;;  %v1969_v54 = vmul.f32 %v3410_v57, %v1933_v12 }
 0x16e   : > { %v1616_v10 = vpop.f32.mrf.mxu1  ;;  %v1612_v33 = vadd.f32 %v1611_v11, %v1386_v18 }
 0x16f   : > { %v2005_v23 = vadd.f32 %v3417_v20, %v1969_v54 }
 0x171   : > { %v2037_v14 = vmax.f32 %v2005_v23, 0.0 }
 0x172   : > { %v3488_v5 = vpop.f32.mrf.mxu3  ;;  %v1867_v28 = vpop.f32.mrf.mxu2 }
 0x173   : > { %v2069_v32 = vpack.c.bf16 %v2037_v14, %v2037_v14  ;;  %v1934_v59 = vadd.f32 %v1867_v28, %v1607_v25 }
 0x175   : > { %v1389_v7 = vpop.f32.mrf.mxu0  ;;  %2102 = vst.msk [vmem:[%s3428_s10 + $0x20] sm:$0xf] %vm2093_vm11, %v2069_v32  ;;  %v1970_v53 = vmul.f32 %v3410_v57, %v1934_v59 }
 0x176   : > { %v1619_v58 = vpop.f32.mrf.mxu1  ;;  %v1615_v8 = vadd.f32 %v1614_v1, %v1389_v7 }
 0x177   : > { %v2006_v55 = vadd.f32 %v3417_v20, %v1970_v53 }
 0x179   : > { %v2038_v0 = vmax.f32 %v2006_v55, 0.0 }
 0x17a   : > { %v3494_v46 = vpop.f32.mrf.mxu3  ;;  %v1870_v45 = vpop.f32.mrf.mxu2 }
 0x17b   : > { %v2070_v36 = vpack.c.bf16 %v2038_v0, %v2038_v0  ;;  %v1935_v48 = vadd.f32 %v1870_v45, %v1610_v60 }
 0x17d   : > { %v1391_v17 = vpop.f32.mrf.mxu0  ;;  %2103 = vst.msk [vmem:[%s3428_s10 + $0x24] sm:$0xf] %vm2093_vm11, %v2070_v36  ;;  %v1971_v27 = vmul.f32 %v3410_v57, %v1935_v48 }
 0x17e   : > { %v1621_v2 = vpop.f32.mrf.mxu1  ;;  %v1617_v6 = vadd.f32 %v1616_v10, %v1391_v17 }
 0x17f   : > { %v2007_v29 = vadd.f32 %v3417_v20, %v1971_v27 }
 0x181   : > { %v2039_v42 = vmax.f32 %v2007_v29, 0.0 }
 0x182   : > { %v3500_v44 = vpop.f32.mrf.mxu3  ;;  %v1872_v34 = vpop.f32.mrf.mxu2 }
 0x183   : > { %v2071_v39 = vpack.c.bf16 %v2039_v42, %v2039_v42  ;;  %v1936_v31 = vadd.f32 %v1872_v34, %v1612_v33 }
 0x185   : > { %v1394_v15 = vpop.f32.mrf.mxu0  ;;  %2104 = vst.msk [vmem:[%s3428_s10 + $0x28] sm:$0xf] %vm2093_vm11, %v2071_v39  ;;  %v1972_v41 = vmul.f32 %v3410_v57, %v1936_v31 }
 0x186   : > { %v1620_v62 = vadd.f32 %v1619_v58, %v1394_v15  ;;  %v1624_v12 = vpop.f32.mrf.mxu1  ;;  %v1645_v58 = vadd.f32 %v3488_v5, %v3430_v56  ;;  %v1647_v5 = vadd.f32 %v3494_v46, %v3439_v19 }
 0x187   : > { %v2008_v49 = vadd.f32 %v3417_v20, %v1972_v41 }
 0x189   : > { %v2040_v50 = vmax.f32 %v2008_v49, 0.0 }
 0x18a   : > { %v3506_v43 = vpop.f32.mrf.mxu3  ;;  %v1875_v3 = vpop.f32.mrf.mxu2 }
 0x18b   : > { %v2072_v40 = vpack.c.bf16 %v2040_v50, %v2040_v50  ;;  %v1937_v52 = vadd.f32 %v1875_v3, %v1615_v8 }
 0x18d   : > { %2105 = vst.msk [vmem:[%s3428_s10 + $0x2c] sm:$0xf] %vm2093_vm11, %v2072_v40  ;;  %v1973_v35 = vmul.f32 %v3410_v57, %v1937_v52  ;;  %v1396_v47 = vpop.f32.mrf.mxu0 }
 0x18e   : > { %v1622_v32 = vadd.f32 %v1621_v2, %v1396_v47  ;;  %v1626_v60 = vpop.f32.mrf.mxu1 }
 0x18f   : > { %v2009_v4 = vadd.f32 %v3417_v20, %v1973_v35 }
 0x191   : > { %v2041_v9 = vmax.f32 %v2009_v4, 0.0 }
 0x192   : > { %v3512_v21 = vpop.f32.mrf.mxu3  ;;  %v1877_v63 = vpop.f32.mrf.mxu2 }
 0x193   : > { %v2073_v11 = vpack.c.bf16 %v2041_v9, %v2041_v9  ;;  %v1938_v26 = vadd.f32 %v1877_v63, %v1617_v6 }
 0x195   : > { %2106 = vst.msk [vmem:[%s3428_s10 + $0x30] sm:$0xf] %vm2093_vm11, %v2073_v11  ;;  %v1974_v37 = vmul.f32 %v3410_v57, %v1938_v26  ;;  %v1399_v16 = vpop.f32.mrf.mxu0 }
 0x196   : > { %v1625_v48 = vadd.f32 %v1624_v12, %v1399_v16  ;;  %v1629_v39 = vpop.f32.mrf.mxu1 }
 0x197   : > { %v2010_v61 = vadd.f32 %v3417_v20, %v1974_v37 }
 0x199   : > { %v2042_v18 = vmax.f32 %v2010_v61, 0.0 }
 0x19a   : > { %v3518_v54 = vpop.f32.mrf.mxu3  ;;  %v1880_v23 = vpop.f32.mrf.mxu2 }
 0x19b   : > { %v2074_v25 = vpack.c.bf16 %v2042_v18, %v2042_v18  ;;  %v1939_v1 = vadd.f32 %v1880_v23, %v1620_v62 }
 0x19d   : > { %2107 = vst.msk [vmem:[%s3428_s10 + $0x34] sm:$0xf] %vm2093_vm11, %v2074_v25  ;;  %v1975_v14 = vmul.f32 %v3410_v57, %v1939_v1  ;;  %v1401_v7 = vpop.f32.mrf.mxu0  ;;  %v1650_v1 = vadd.f32 %v3500_v44, %v3446_v24 }
 0x19e   : > { %v1627_v41 = vadd.f32 %v1626_v60, %v1401_v7  ;;  %v1631_v4 = vpop.f32.mrf.mxu1 }
 0x19f   : > { %v2011_v28 = vadd.f32 %v3417_v20, %v1975_v14 }
 0x1a1   : > { %v2043_v59 = vmax.f32 %v2011_v28, 0.0 }
 0x1a2   : > { %v3524_v53 = vpop.f32.mrf.mxu3  ;;  %v1882_v55 = vpop.f32.mrf.mxu2 }
 0x1a3   : > { %v2075_v0 = vpack.c.bf16 %v2043_v59, %v2043_v59  ;;  %v1940_v45 = vadd.f32 %v1882_v55, %v1622_v32 }
 0x1a5   : > { %2108 = vst.msk [vmem:[%s3428_s10 + $0x38] sm:$0xf] %vm2093_vm11, %v2075_v0  ;;  %v1976_v10 = vmul.f32 %v3410_v57, %v1940_v45  ;;  %v1404_v42 = vpop.f32.mrf.mxu0 }
 0x1a6   : > { %v1630_v9 = vadd.f32 %v1629_v39, %v1404_v42  ;;  %v1634_v14 = vpop.f32.mrf.mxu1 }
 0x1a7   : > { %v2012_v36 = vadd.f32 %v3417_v20, %v1976_v10 }
 0x1a9   : > { %v2044_v17 = vmax.f32 %v2012_v36, 0.0 }
 0x1aa   : > { %v3530_v27 = vpop.f32.mrf.mxu3  ;;  %v1885_v29 = vpop.f32.mrf.mxu2 }
 0x1ab   : > { %v2076_v33 = vpack.c.bf16 %v2044_v17, %v2044_v17  ;;  %v1941_v34 = vadd.f32 %v1885_v29, %v1625_v48  ;;  %v1652_v17 = vadd.f32 %v3506_v43, %v3454_v38 }
 0x1ad   : > { %2109 = vst.msk [vmem:[%s3428_s10 + $0x3c] sm:$0xf] %vm2093_vm11, %v2076_v33  ;;  %v1977_v31 = vmul.f32 %v3410_v57, %v1941_v34  ;;  %v1406_v35 = vpop.f32.mrf.mxu0 }
 0x1ae   : > { %v1632_v28 = vadd.f32 %v1631_v4, %v1406_v35 }
 0x1af   : > { %v2013_v15 = vadd.f32 %v3417_v20, %v1977_v31 }
 0x1b1   : > { %v2045_v49 = vmax.f32 %v2013_v15, 0.0 }
 0x1b2   : > { %v1887_v8 = vpop.f32.mrf.mxu2  ;;  %v1905_v50 = vpop.f32.mrf.mxu3 }
 0x1b3   : > { %v2077_v3 = vpack.c.bf16 %v2045_v49, %v2045_v49  ;;  %v1942_v40 = vadd.f32 %v1887_v8, %v1627_v41  ;;  %v1949_v52 = vadd.f32 %v1905_v50, %v1645_v58  ;;  %v1636_v8 = vpop.f32.mrf.mxu1 }
 0x1b5   : > { %2110 = vst.msk [vmem:[%s3428_s10 + $0x40] sm:$0xf] %vm2093_vm11, %v2077_v3  ;;  %v1978_v47 = vmul.f32 %v3410_v57, %v1942_v40  ;;  %v1985_v2 = vmul.f32 %v3410_v57, %v1949_v52  ;;  %v1409_v25 = vpop.f32.mrf.mxu0  ;;  %v1655_v40 = vadd.f32 %v3512_v21, %v3462_v30 }
 0x1b6   : > { %v1635_v29 = vadd.f32 %v1634_v14, %v1409_v25 }
 0x1b7   : > { %v2014_v6 = vadd.f32 %v3417_v20, %v1978_v47  ;;  %v2021_v56 = vadd.f32 %v3417_v20, %v1985_v2 }
 0x1b9   : > { %v2046_v63 = vmax.f32 %v2014_v6, 0.0  ;;  %v2053_v11 = vmax.f32 %v2021_v56, 0.0 }
 0x1ba   : > { %v1890_v26 = vpop.f32.mrf.mxu2  ;;  %v1907_v37 = vpop.f32.mrf.mxu3 }
 0x1bb   : > { %v2078_v61 = vpack.c.bf16 %v2046_v63, %v2046_v63  ;;  %v2085_v16 = vpack.c.bf16 %v2053_v11, %v2053_v11  ;;  %v1943_v62 = vadd.f32 %v1890_v26, %v1630_v9  ;;  %v1950_v12 = vadd.f32 %v1907_v37, %v1647_v5  ;;  %v1639_v37 = vpop.f32.mrf.mxu1 }
 0x1bd   : > { %2111 = vst.msk [vmem:[%s3428_s10 + $0x44] sm:$0xf] %vm2093_vm11, %v2078_v61  ;;  %v1979_v18 = vmul.f32 %v3410_v57, %v1943_v62  ;;  %v1986_v23 = vmul.f32 %v3410_v57, %v1950_v12  ;;  %v1411_v33 = vpop.f32.mrf.mxu0  ;;  %v1657_v61 = vadd.f32 %v3518_v54, %v3469_v51 }
 0x1be   : > { %2118 = vst.msk [vmem:[%s3428_s10 + $0x60] sm:$0xf] %vm2093_vm11, %v2085_v16  ;;  %v1637_v52 = vadd.f32 %v1636_v8, %v1411_v33  ;;  %v1662_v33 = vadd.f32 %v3530_v27, %v3482_v22 }
 0x1bf   : > { %v2015_v19 = vadd.f32 %v3417_v20, %v1979_v18  ;;  %v2022_v46 = vadd.f32 %v3417_v20, %v1986_v23 }
 0x1c1   : > { %v2047_v32 = vmax.f32 %v2015_v19, 0.0  ;;  %v2054_v59 = vmax.f32 %v2022_v46, 0.0 }
 0x1c2   : > { %v1892_v7 = vpop.f32.mrf.mxu2  ;;  %v1910_v55 = vpop.f32.mrf.mxu3 }
 0x1c3   : > { %v2079_v60 = vpack.c.bf16 %v2047_v32, %v2047_v32  ;;  %v2086_v0 = vpack.c.bf16 %v2054_v59, %v2054_v59  ;;  %v1944_v45 = vadd.f32 %v1892_v7, %v1632_v28  ;;  %v1951_v10 = vadd.f32 %v1910_v55, %v1650_v1  ;;  %v1641_v59 = vpop.f32.mrf.mxu1 }
 0x1c4   : > { %v1660_v7 = vadd.f32 %v3524_v53, %v3476_v13 }
 0x1c5   : > { %2112 = vst.msk [vmem:[%s3428_s10 + $0x48] sm:$0xf] %vm2093_vm11, %v2079_v60  ;;  %v1980_v36 = vmul.f32 %v3410_v57, %v1944_v45  ;;  %v1987_v48 = vmul.f32 %v3410_v57, %v1951_v10  ;;  %v1414_v63 = vpop.f32.mrf.mxu0 }
 0x1c6   : > { %2119 = vst.msk [vmem:[%s3428_s10 + $0x64] sm:$0xf] %vm2093_vm11, %v2086_v0  ;;  %v1640_v16 = vadd.f32 %v1639_v37, %v1414_v63 }
 0x1c7   : > { %v2016_v24 = vadd.f32 %v3417_v20, %v1980_v36  ;;  %v2023_v44 = vadd.f32 %v3417_v20, %v1987_v48 }
 0x1c9   : > { %v2048_v42 = vmax.f32 %v2016_v24, 0.0  ;;  %v2055_v34 = vmax.f32 %v2023_v44, 0.0 }
 0x1ca   : > { %v1895_v39 = vpop.f32.mrf.mxu2  ;;  %v1912_v31 = vpop.f32.mrf.mxu3 }
 0x1cb   : > { %v2080_v15 = vpack.c.bf16 %v2048_v42, %v2048_v42  ;;  %v2087_v58 = vpack.c.bf16 %v2055_v34, %v2055_v34  ;;  %v1945_v41 = vadd.f32 %v1895_v39, %v1635_v29  ;;  %v1952_v49 = vadd.f32 %v1912_v31, %v1652_v17 }
 0x1cd   : > { %2113 = vst.msk [vmem:[%s3428_s10 + $0x4c] sm:$0xf] %vm2093_vm11, %v2080_v15  ;;  %v1981_v50 = vmul.f32 %v3410_v57, %v1945_v41  ;;  %v1988_v3 = vmul.f32 %v3410_v57, %v1952_v49  ;;  %v1416_v32 = vpop.f32.mrf.mxu0 }
 0x1ce   : > { %2120 = vst.msk [vmem:[%s3428_s10 + $0x68] sm:$0xf] %vm2093_vm11, %v2087_v58  ;;  %v1642_v55 = vadd.f32 %v1641_v59, %v1416_v32 }
 0x1cf   : > { %v2017_v38 = vadd.f32 %v3417_v20, %v1981_v50  ;;  %v2024_v43 = vadd.f32 %v3417_v20, %v1988_v3 }
 0x1d1   : > { %v2049_v35 = vmax.f32 %v2017_v38, 0.0  ;;  %v2056_v47 = vmax.f32 %v2024_v43, 0.0 }
 0x1d2   : > { %v1897_v2 = vpop.f32.mrf.mxu2  ;;  %v1915_v4 = vpop.f32.mrf.mxu3 }
 0x1d3   : > { %v2081_v6 = vpack.c.bf16 %v2049_v35, %v2049_v35  ;;  %v2088_v56 = vpack.c.bf16 %v2056_v47, %v2056_v47  ;;  %v1946_v5 = vadd.f32 %v1897_v2, %v1637_v52  ;;  %v1953_v9 = vadd.f32 %v1915_v4, %v1655_v40 }
 0x1d5   : > { %2114 = vst.msk [vmem:[%s3428_s10 + $0x50] sm:$0xf] %vm2093_vm11, %v2081_v6  ;;  %v1982_v11 = vmul.f32 %v3410_v57, %v1946_v5  ;;  %v1989_v26 = vmul.f32 %v3410_v57, %v1953_v9 }
 0x1d6   : > { %2121 = vst.msk [vmem:[%s3428_s10 + $0x6c] sm:$0xf] %vm2093_vm11, %v2088_v56 }
 0x1d7   : > { %v2018_v30 = vadd.f32 %v3417_v20, %v1982_v11  ;;  %v2025_v21 = vadd.f32 %v3417_v20, %v1989_v26 }
 0x1d9   : > { %v2050_v62 = vmax.f32 %v2018_v30, 0.0  ;;  %v2057_v12 = vmax.f32 %v2025_v21, 0.0 }
 0x1da   : > { %v1900_v18 = vpop.f32.mrf.mxu2  ;;  %v1917_v23 = vpop.f32.mrf.mxu3 }
 0x1db   : > { %v2082_v25 = vpack.c.bf16 %v2050_v62, %v2050_v62  ;;  %v2089_v19 = vpack.c.bf16 %v2057_v12, %v2057_v12  ;;  %v1947_v46 = vadd.f32 %v1900_v18, %v1640_v16  ;;  %v1954_v1 = vadd.f32 %v1917_v23, %v1657_v61 }
 0x1dd   : > { %2115 = vst.msk [vmem:[%s3428_s10 + $0x54] sm:$0xf] %vm2093_vm11, %v2082_v25  ;;  %v1983_v14 = vmul.f32 %v3410_v57, %v1947_v46  ;;  %v1990_v28 = vmul.f32 %v3410_v57, %v1954_v1 }
 0x1de   : > { %2122 = vst.msk [vmem:[%s3428_s10 + $0x70] sm:$0xf] %vm2093_vm11, %v2089_v19 }
 0x1df   : > { %v2019_v51 = vadd.f32 %v3417_v20, %v1983_v14  ;;  %v2026_v54 = vadd.f32 %v3417_v20, %v1990_v28 }
 0x1e1   : > { %v2051_v60 = vmax.f32 %v2019_v51, 0.0  ;;  %v2058_v0 = vmax.f32 %v2026_v54, 0.0 }
 0x1e2   : > { %v1902_v45 = vpop.f32.mrf.mxu2  ;;  %v1920_v10 = vpop.f32.mrf.mxu3 }
 0x1e3   : > { %v2083_v36 = vpack.c.bf16 %v2051_v60, %v2051_v60  ;;  %v2090_v48 = vpack.c.bf16 %v2058_v0, %v2058_v0  ;;  %v1948_v24 = vadd.f32 %v1902_v45, %v1642_v55  ;;  %v1955_v44 = vadd.f32 %v1920_v10, %v1660_v7 }
 0x1e5   : > { %2116 = vst.msk [vmem:[%s3428_s10 + $0x58] sm:$0xf] %vm2093_vm11, %v2083_v36  ;;  %v1984_v17 = vmul.f32 %v3410_v57, %v1948_v24  ;;  %v1991_v29 = vmul.f32 %v3410_v57, %v1955_v44 }
 0x1e6   : > { %2123 = vst.msk [vmem:[%s3428_s10 + $0x74] sm:$0xf] %vm2093_vm11, %v2090_v48 }
 0x1e7   : > { %v2020_v13 = vadd.f32 %v3417_v20, %v1984_v17  ;;  %v2027_v53 = vadd.f32 %v3417_v20, %v1991_v29 }
 0x1e9   : > { %v2052_v42 = vmax.f32 %v2020_v13, 0.0  ;;  %v2059_v34 = vmax.f32 %v2027_v53, 0.0 }
 0x1ea   : > { %v1922_v39 = vpop.f32.mrf.mxu3 }
 0x1eb   : > { %v2084_v31 = vpack.c.bf16 %v2052_v42, %v2052_v42  ;;  %v2091_v15 = vpack.c.bf16 %v2059_v34, %v2059_v34  ;;  %v1956_v58 = vadd.f32 %v1922_v39, %v1662_v33 }
 0x1ed   : > { %2117 = vst.msk [vmem:[%s3428_s10 + $0x5c] sm:$0xf] %vm2093_vm11, %v2084_v31  ;;  %v1992_v41 = vmul.f32 %v3410_v57, %v1956_v58 }
 0x1ee   : > { %2124 = vst.msk [vmem:[%s3428_s10 + $0x78] sm:$0xf] %vm2093_vm11, %v2091_v15 }
 0x1ef   : > { %v2028_v49 = vadd.f32 %v3417_v20, %v1992_v41 }
 0x1f1   : > { %v2060_v8 = vmax.f32 %v2028_v49, 0.0 }
 0x1f3   : > { %v2092_v50 = vpack.c.bf16 %v2060_v8, %v2060_v8 }
 0x1f5   : > { %2125 = vst.msk [vmem:[%s3428_s10 + $0x7c] sm:$0xf] %vm2093_vm11, %v2092_v50 }
 0x1f6 PF: > { %s15_s22 = sadd.s32 1, %s2841_s22   ;;  %s3639_s18 = smov %s2833_s20 }
 0x1f7   : > { %p12_p7 = scmp.ge.s32.totalorder %s15_s22, 6   ;;  %s3640_s19 = smov %s2837_s21 }
 0x1f8   : > { %s3641_s20 = smov %s3644_s23  ;;  %s3642_s21 = smov %s3648_s24 }
 0x1f9   :  { %14 = sbr.rel (!%p12_p7) target bundleno = 3 (0x3), region = 87 }

// kernel: gfm_forward.5
= control target key start
LH: loop header
LB: loop body
LE: loop exit
PB: predicated region body
PF: predicated region fallthrough
CT: control target
= control target key end

     0   :  { %s3264_s24 = smov 0   ;;  %s4036_s0 = inlined_call_operand.vmem [shape: bf16[2,2,16,16,4], index: 0, kind: input, shape index: {}, may-alias: {0,2}]   ;;  %s4037_s1 = inlined_call_operand.vmem [shape: bf16[2,2,16,16,4], index: 1, kind: input, shape index: {}]   ;;  %s4038_s2 = inlined_call_operand.vmem [shape: bf16[2,2,16,16,4], index: 2, kind: input, shape index: {}, may-alias: {0,2}]   ;;  %s4039_s3 = inlined_call_operand.vmem [shape: bf16[2,16,16,4], index: 3, kind: input, shape index: {}]   ;;  %s4040_s4 = inlined_call_operand.vmem [shape: bf16[3,12,4], index: 4, kind: input, shape index: {}]   ;;  %s4041_s5 = inlined_call_operand.vmem [shape: f32[1,4], index: 5, kind: input, shape index: {}]   ;;  %s4042_s6 = inlined_call_operand.vmem [shape: f32[1,4], index: 6, kind: input, shape index: {}]   ;;  %s4043_s7 = inlined_call_operand.vmem [shape: f32[2,16,16,4], index: 7, kind: output, shape index: {}]  }
   0x1 LB: > { %s2486_s25 = sadd.s32 4294967295, %s3219_s24   ;;  %p2490_p0 = scmp.ge.s32.totalorder %s3219_s24, 1  ;;  %s3219_s24 = sphi %s3264_s24, %s17_s24  }
   0x2   : > { %p269_p1 = scmp.lt.s32.totalorder %s3219_s24, 3 }
   0x4   : > { %p270_p2 = pnand %p2490_p0, %p269_p1 }
   0x5   : > { %p318_p3 = scmp.lt.s32.totalorder (!%p270_p2), %s2486_s25, 1  ;;  %s3221_s10 = smov (!%p270_p2), 4  }
   0x6   : > { %273 = sbr.rel (%p270_p2) target bundleno = 505 (0x1f9), region = 48  ;;  %s3222_s11 = smov (!%p270_p2), 8  }
   0xb   : > { %s4049_s25 = smov (!%p318_p3, %s2486_s25), 1  ;;  %vm915_vm0 = vcmask 1047552   ;;  %vm916_vm1 = vsmask.f32 7424  ;;  %vm1444_vm3 = vcmask 1045504   ;;  %vm634_vm4 = vcmask 93184  }
   0xc   : > { %s3275_s26 = sshll.u32 %s4049_s25, 7  ;;  %vm3317_vm2 = vmand %vm915_vm0, %vm916_vm1  ;;  %vm1395_vm5 = vcmask 97280   ;;  %vm848_vm6 = vcmask 1040384   ;;  %vm849_vm7 = vsmask.f32 256  ;;  %vm1014_vm9 = vcmask 31744  }
   0xd   : > { %s3281_s29 = scalar_lea.vmem %s4036_s0, %s3275_s26  ;;  %s3287_s9 = scalar_lea.vmem %s4037_s1, %s3275_s26  ;;  %vm3531_vm8 = vmand %vm848_vm6, %vm849_vm7  ;;  %vm1063_vm10 = vcmask 64512  }
   0xe   : > { %v3135_v0 = vld [vmem:[%s3281_s29 + $0x8] sm:$0xff]   ;;  %v2880_v2 = vld [vmem:[%s3281_s29] sm:$0xff]   ;;  %v3136_v14 = vld [vmem:[%s3281_s29 + $0x10] sm:$0xff]  }
   0xf   : > { %v3151_v1 = vld [vmem:[%s3287_s9 + $0x108] sm:$0xff]   ;;  %v2885_v3 = vunpack.c.l.bf16 %v3135_v0  ;;  %v2886_v4 = vunpack.c.h.bf16 %v3135_v0  ;;  %v3150_v7 = vld [vmem:[%s3287_s9 + $0x100] sm:$0xff]   ;;  %v2881_v10 = vunpack.c.l.bf16 %v2880_v2  ;;  %v2882_v11 = vunpack.c.h.bf16 %v2880_v2  ;;  %v3152_v23 = vld [vmem:[%s3287_s9 + $0x110] sm:$0xff]  }
  0x10   : > { %v2949_v5 = vunpack.c.l.bf16 %v3151_v1  ;;  %v2950_v6 = vunpack.c.h.bf16 %v3151_v1  ;;  %v3146_v8 = vld [vmem:[%s3281_s29 + $0x60] sm:$0xff]   ;;  %v2945_v12 = vunpack.c.l.bf16 %v3150_v7  ;;  %v2946_v13 = vunpack.c.h.bf16 %v3150_v7 }
  0x11   : > { %v3162_v9 = vld [vmem:[%s3287_s9 + $0x160] sm:$0xff]   ;;  %v2929_v17 = vunpack.c.l.bf16 %v3146_v8  ;;  %v2930_v18 = vunpack.c.h.bf16 %v3146_v8  ;;  %v2889_v26 = vunpack.c.l.bf16 %v3136_v14  ;;  %v2890_v27 = vunpack.c.h.bf16 %v3136_v14 }
  0x12   : > { %v444_v15 = vsub.f32 1.0, %v2949_v5  ;;  %v445_v16 = vsub.f32 1.0, %v2950_v6  ;;  %v442_v19 = vsub.f32 1.0, %v2945_v12  ;;  %v443_v20 = vsub.f32 1.0, %v2946_v13 }
  0x13   : > { %v2993_v21 = vunpack.c.l.bf16 %v3162_v9  ;;  %v2994_v22 = vunpack.c.h.bf16 %v3162_v9  ;;  %v2953_v34 = vunpack.c.l.bf16 %v3152_v23  ;;  %v2954_v35 = vunpack.c.h.bf16 %v3152_v23 }
  0x14   : > { %v476_v24 = vpack.c.bf16 %v444_v15, %v444_v15  ;;  %v477_v25 = vpack.c.bf16 %v445_v16, %v445_v16  ;;  %v474_v28 = vpack.c.bf16 %v442_v19, %v442_v19  ;;  %v475_v29 = vpack.c.bf16 %v443_v20, %v443_v20 }
  0x15   : > { %v466_v30 = vsub.f32 1.0, %v2993_v21  ;;  %v467_v31 = vsub.f32 1.0, %v2994_v22  ;;  %v446_v42 = vsub.f32 1.0, %v2953_v34  ;;  %v447_v43 = vsub.f32 1.0, %v2954_v35 }
  0x16   : > { %v540_v32 = vunpack.c.l.bf16 %v476_v24  ;;  %v541_v33 = vunpack.c.l.bf16 %v477_v25  ;;  %v538_v36 = vunpack.c.l.bf16 %v474_v28  ;;  %v539_v37 = vunpack.c.l.bf16 %v475_v29 }
  0x17   : > { %v498_v38 = vpack.c.bf16 %v466_v30, %v466_v30  ;;  %v499_v39 = vpack.c.bf16 %v467_v31, %v467_v31  ;;  %v478_v50 = vpack.c.bf16 %v446_v42, %v446_v42  ;;  %v479_v51 = vpack.c.bf16 %v447_v43, %v447_v43 }
  0x18   : > { %v572_v40 = vmul.f32 %v2885_v3, %v540_v32  ;;  %v573_v41 = vmul.f32 %v2886_v4, %v541_v33  ;;  %v570_v44 = vmul.f32 %v2881_v10, %v538_v36  ;;  %v571_v45 = vmul.f32 %v2882_v11, %v539_v37  ;;  %v3163_v3 = vld [vmem:[%s3287_s9 + $0x168] sm:$0xff]   ;;  %v3148_v36 = vld [vmem:[%s3281_s29 + $0x70] sm:$0xff]  }
  0x19   : > { %v562_v46 = vunpack.c.l.bf16 %v498_v38  ;;  %v563_v47 = vunpack.c.l.bf16 %v499_v39  ;;  %v542_v58 = vunpack.c.l.bf16 %v478_v50  ;;  %v543_v59 = vunpack.c.l.bf16 %v479_v51  ;;  %v3164_v37 = vld [vmem:[%s3287_s9 + $0x170] sm:$0xff]  }
  0x1a   : > { %v604_v48 = vpack.c.bf16 %v572_v40, %v572_v40  ;;  %v605_v49 = vpack.c.bf16 %v573_v41, %v573_v41  ;;  %v602_v52 = vpack.c.bf16 %v570_v44, %v570_v44  ;;  %v603_v53 = vpack.c.bf16 %v571_v45, %v571_v45 }
  0x1b   : > { %v594_v54 = vmul.f32 %v2929_v17, %v562_v46  ;;  %v595_v55 = vmul.f32 %v2930_v18, %v563_v47  ;;  %v574_v1 = vmul.f32 %v2889_v26, %v542_v58  ;;  %v575_v2 = vmul.f32 %v2890_v27, %v543_v59  ;;  %v3147_v18 = vld [vmem:[%s3281_s29 + $0x68] sm:$0xff]   ;;  %v3137_v26 = vld [vmem:[%s3281_s29 + $0x18] sm:$0xff]  }
  0x1c   : > { %v674_v56 = vunpack.c.l.b16 %v604_v48  ;;  %v675_v57 = vunpack.c.l.b16 %v605_v49  ;;  %v672_v60 = vunpack.c.l.b16 %v602_v52  ;;  %v673_v61 = vunpack.c.l.b16 %v603_v53  ;;  %v3153_v27 = vld [vmem:[%s3287_s9 + $0x118] sm:$0xff]  }
  0x1d   : > { %v626_v62 = vpack.c.bf16 %v594_v54, %v594_v54  ;;  %v627_v63 = vpack.c.bf16 %v595_v55, %v595_v55  ;;  %v606_v9 = vpack.c.bf16 %v574_v1, %v574_v1  ;;  %v607_v10 = vpack.c.bf16 %v575_v2, %v575_v2 }
  0x1e   : > { %v3297_v0 = vpack.c.b16 %v675_v57, %v674_v56  ;;  %v3300_v4 = vpack.c.b16 %v673_v61, %v672_v60  ;;  %v2997_v14 = vunpack.c.l.bf16 %v3163_v3  ;;  %v2998_v24 = vunpack.c.h.bf16 %v3163_v3  ;;  %v3154_v3 = vld [vmem:[%s3287_s9 + $0x120] sm:$0xff]  }
  0x1f   : > { %v696_v5 = vunpack.c.l.b16 %v626_v62  ;;  %v697_v6 = vunpack.c.l.b16 %v627_v63  ;;  %v676_v16 = vunpack.c.l.b16 %v606_v9  ;;  %v677_v17 = vunpack.c.l.b16 %v607_v10 }
  0x20   : > { %936 = vrot.lane.b32.xlu0 %v3297_v0, %s3221_s10  ;;  %v728_v7 = vshrl.u32 %v3297_v0, 16  ;;  %v731_v8 = vshll.u32 %v3297_v0, 16  ;;  %934 = vrot.lane.b32.xlu2 %v3300_v4, %s3221_s10  ;;  %v721_v12 = vshrl.u32 %v3300_v4, 16  ;;  %v724_v13 = vshll.u32 %v3300_v4, 16 }
  0x21   : > { %v3308_v11 = vpack.c.b16 %v697_v6, %v696_v5  ;;  %v468_v25 = vsub.f32 1.0, %v2997_v14  ;;  %v2933_v30 = vunpack.c.l.bf16 %v3147_v18  ;;  %v2934_v31 = vunpack.c.h.bf16 %v3147_v18 }
  0x22   : > { %v869_v15 = vrot.slane %v731_v8, 1  ;;  %v867_v21 = vrot.slane %v724_v13, 1  ;;  %v3335_v33 = vpack.c.b16 %v677_v17, %v676_v16  ;;  %v469_v34 = vsub.f32 1.0, %v2998_v24 }
  0x23   : > { %v808_v20 = vshll.u32 %v3308_v11, 16  ;;  %v805_v23 = vshrl.u32 %v3308_v11, 16  ;;  %v500_v35 = vpack.c.bf16 %v468_v25, %v468_v25  ;;  %v2893_v39 = vunpack.c.l.bf16 %v3137_v26 }
  0x24   : > { %v870_v22 = vor.u32 %v869_v15, %v728_v7  ;;  %v868_v29 = vor.u32 %v867_v21, %v721_v12  ;;  %v2957_v40 = vunpack.c.l.bf16 %v3153_v27  ;;  %v2958_v41 = vunpack.c.h.bf16 %v3153_v27 }
  0x25   : > { %v891_v28 = vrot.slane %v808_v20, 1  ;;  %v501_v43 = vpack.c.bf16 %v469_v34, %v469_v34  ;;  %v564_v44 = vunpack.c.l.bf16 %v500_v35  ;;  %v2894_v45 = vunpack.c.h.bf16 %v3137_v26 }
  0x26   : > { %v919_v32 = vsel %vm3317_vm2, %v870_v22, 0  ;;  %v918_v38 = vsel %vm3317_vm2, %v868_v29, 0  ;;  %v448_v46 = vsub.f32 1.0, %v2957_v40  ;;  %v449_v47 = vsub.f32 1.0, %v2958_v41  ;;  %v3165_v41 = vld [vmem:[%s3287_s9 + $0x178] sm:$0xff]  }
  0x27   : > { %984 = vrot.lane.b32.xlu1 %v919_v32, %s3222_s11  ;;  %v892_v42 = vor.u32 %v891_v28, %v805_v23  ;;  %v2937_v48 = vunpack.c.l.bf16 %v3148_v36  ;;  %v3001_v49 = vunpack.c.l.bf16 %v3164_v37  ;;  %v565_v50 = vunpack.c.l.bf16 %v501_v43 }
  0x28   : > { %958 = vrot.lane.b32.xlu0 %v3308_v11, %s3221_s10  ;;  %982 = vrot.lane.b32.xlu2 %v918_v38, %s3222_s11  ;;  %v596_v51 = vmul.f32 %v2933_v30, %v564_v44  ;;  %v3002_v52 = vunpack.c.h.bf16 %v3164_v37  ;;  %v735_v53 = vshrl.u32 %v3335_v33, 16  ;;  %v480_v54 = vpack.c.bf16 %v448_v46, %v448_v46  ;;  %v3138_v30 = vld [vmem:[%s3281_s29 + $0x20] sm:$0xff]  }
  0x29   : > { %v481_v55 = vpack.c.bf16 %v449_v47, %v449_v47  ;;  %v470_v56 = vsub.f32 1.0, %v3001_v49  ;;  %v738_v57 = vshll.u32 %v3335_v33, 16  ;;  %v930_v58 = vsel %vm3317_vm2, %v892_v42, 0 }
  0x2a   : > { %v597_v59 = vmul.f32 %v2934_v31, %v565_v50  ;;  %v628_v60 = vpack.c.bf16 %v596_v51, %v596_v51  ;;  %v471_v61 = vsub.f32 1.0, %v3002_v52  ;;  %v544_v62 = vunpack.c.l.bf16 %v480_v54 }
  0x2b   : > { %v545_v63 = vunpack.c.l.bf16 %v481_v55  ;;  %v502_v1 = vpack.c.bf16 %v470_v56, %v470_v56  ;;  %v871_v2 = vrot.slane %v738_v57, 1  ;;  %v2938_v9 = vunpack.c.h.bf16 %v3148_v36 }
  0x2c   : > { %v629_v5 = vpack.c.bf16 %v597_v59, %v597_v59  ;;  %v698_v6 = vunpack.c.l.b16 %v628_v60  ;;  %v503_v10 = vpack.c.bf16 %v471_v61, %v471_v61  ;;  %v576_v14 = vmul.f32 %v2893_v39, %v544_v62  ;;  %v3149_v59 = vld [vmem:[%s3281_s29 + $0x78] sm:$0xff]  }
  0x2d   : > { %v577_v15 = vmul.f32 %v2894_v45, %v545_v63  ;;  %v566_v16 = vunpack.c.l.bf16 %v502_v1  ;;  %v872_v17 = vor.u32 %v871_v2, %v735_v53  ;;  %v2961_v22 = vunpack.c.l.bf16 %v3154_v3 }
  0x2e   : > { %v699_v18 = vunpack.c.l.b16 %v629_v5  ;;  %v567_v21 = vunpack.c.l.bf16 %v503_v10  ;;  %v608_v24 = vpack.c.bf16 %v576_v14, %v576_v14  ;;  %v2962_v31 = vunpack.c.h.bf16 %v3154_v3 }
  0x2f   : > { %1006 = vrot.lane.b32.xlu1 %v930_v58, %s3222_s11  ;;  %v609_v25 = vpack.c.bf16 %v577_v15, %v577_v15  ;;  %v598_v26 = vmul.f32 %v2937_v48, %v566_v16  ;;  %v920_v27 = vsel %vm3317_vm2, %v872_v17, 0  ;;  %v450_v32 = vsub.f32 1.0, %v2961_v22  ;;  %v3155_v15 = vld [vmem:[%s3287_s9 + $0x128] sm:$0xff]  }
  0x30   : > { %938 = vrot.lane.b32.xlu0 %v3335_v33, %s3221_s10  ;;  %v3361_v28 = vpack.c.b16 %v699_v18, %v698_v6  ;;  %v599_v29 = vmul.f32 %v2938_v9, %v567_v21  ;;  %986 = vrot.lane.b32.xlu2 %v920_v27, %s3222_s11  ;;  %v678_v34 = vunpack.c.l.b16 %v608_v24  ;;  %v451_v40 = vsub.f32 1.0, %v2962_v31  ;;  %v3139_v21 = vld [vmem:[%s3281_s29 + $0x28] sm:$0xff]   ;;  %v3161_v31 = vld [vmem:[%s3287_s9 + $0x158] sm:$0xff]  }
  0x31   : > { %v679_v35 = vunpack.c.l.b16 %v609_v25  ;;  %v630_v36 = vpack.c.bf16 %v598_v26, %v598_v26  ;;  %v2897_v44 = vunpack.c.l.bf16 %v3138_v30  ;;  %v482_v45 = vpack.c.bf16 %v450_v32, %v450_v32 }
  0x32   : > { %v812_v37 = vshrl.u32 %v3361_v28, 16  ;;  %v815_v38 = vshll.u32 %v3361_v28, 16  ;;  %v631_v39 = vpack.c.bf16 %v599_v29, %v599_v29  ;;  %v2898_v48 = vunpack.c.h.bf16 %v3138_v30 }
  0x33   : > { %v3368_v42 = vpack.c.b16 %v679_v35, %v678_v34  ;;  %v700_v43 = vunpack.c.l.b16 %v630_v36  ;;  %v483_v49 = vpack.c.bf16 %v451_v40, %v451_v40  ;;  %v546_v52 = vunpack.c.l.bf16 %v482_v45 }
  0x34   : > { %v893_v46 = vrot.slane %v815_v38, 1  ;;  %v701_v47 = vunpack.c.l.b16 %v631_v39  ;;  %v3005_v54 = vunpack.c.l.bf16 %v3165_v41  ;;  %v3006_v60 = vunpack.c.h.bf16 %v3165_v41 }
  0x35   : > { %v742_v50 = vshrl.u32 %v3368_v42, 16  ;;  %v745_v51 = vshll.u32 %v3368_v42, 16  ;;  %v547_v58 = vunpack.c.l.bf16 %v483_v49  ;;  %v578_v62 = vmul.f32 %v2897_v44, %v546_v52 }
  0x36   : > { %v894_v55 = vor.u32 %v893_v46, %v812_v37  ;;  %v3378_v56 = vpack.c.b16 %v701_v47, %v700_v43  ;;  %v472_v63 = vsub.f32 1.0, %v3005_v54  ;;  %v2941_v9 = vunpack.c.l.bf16 %v3149_v59  ;;  %v3145_v54 = vld [vmem:[%s3281_s29 + $0x58] sm:$0xff]  }
  0x37   : > { %960 = vrot.lane.b32.xlu1 %v3361_v28, %s3221_s10  ;;  %v873_v61 = vrot.slane %v745_v51, 1  ;;  %v579_v5 = vmul.f32 %v2898_v48, %v547_v58  ;;  %v610_v6 = vpack.c.bf16 %v578_v62, %v578_v62  ;;  %v473_v10 = vsub.f32 1.0, %v3006_v60  ;;  %v3140_v62 = vld [vmem:[%s3281_s29 + $0x30] sm:$0xff]  }
  0x38   : > { %v931_v1 = vsel %vm3317_vm2, %v894_v55, 0  ;;  %v819_v2 = vshrl.u32 %v3378_v56, 16  ;;  %v822_v3 = vshll.u32 %v3378_v56, 16  ;;  %962 = vrot.lane.b32.xlu2 %v3378_v56, %s3221_s10  ;;  %v504_v14 = vpack.c.bf16 %v472_v63, %v472_v63 }
  0x39   : > { %1008 = vrot.lane.b32.xlu0 %v931_v1, %s3222_s11  ;;  %v874_v16 = vor.u32 %v873_v61, %v742_v50  ;;  %v611_v18 = vpack.c.bf16 %v579_v5, %v579_v5  ;;  %v680_v22 = vunpack.c.l.b16 %v610_v6  ;;  %v2942_v24 = vunpack.c.h.bf16 %v3149_v59 }
  0x3a   : > { %v895_v17 = vrot.slane %v822_v3, 1  ;;  %v505_v25 = vpack.c.bf16 %v473_v10, %v473_v10  ;;  %v568_v26 = vunpack.c.l.bf16 %v504_v14  ;;  %v2965_v30 = vunpack.c.l.bf16 %v3155_v15 }
  0x3b   : > { %v681_v29 = vunpack.c.l.b16 %v611_v18  ;;  %v2901_v35 = vunpack.c.l.bf16 %v3139_v21  ;;  %v2966_v36 = vunpack.c.h.bf16 %v3155_v15  ;;  %v921_v39 = vsel %vm3317_vm2, %v874_v16, 0 }
  0x3c   : > { %v896_v27 = vor.u32 %v895_v17, %v819_v2  ;;  %v569_v32 = vunpack.c.l.bf16 %v505_v25  ;;  %v600_v34 = vmul.f32 %v2941_v9, %v568_v26  ;;  %v2902_v41 = vunpack.c.h.bf16 %v3139_v21  ;;  %v3156_v9 = vld [vmem:[%s3287_s9 + $0x130] sm:$0xff]  }
  0x3d   : > { %v3403_v40 = vpack.c.b16 %v681_v29, %v680_v22  ;;  %v452_v43 = vsub.f32 1.0, %v2965_v30  ;;  %v453_v46 = vsub.f32 1.0, %v2966_v36  ;;  %v2989_v47 = vunpack.c.l.bf16 %v3161_v31 }
  0x3e   : > { %v601_v44 = vmul.f32 %v2942_v24, %v569_v32  ;;  %v632_v45 = vpack.c.bf16 %v600_v34, %v600_v34  ;;  %v932_v48 = vsel %vm3317_vm2, %v896_v27, 0  ;;  %v2990_v55 = vunpack.c.h.bf16 %v3161_v31 }
  0x3f   : > { %940 = vrot.lane.b32.xlu1 %v3368_v42, %s3221_s10  ;;  %v752_v49 = vshll.u32 %v3403_v40, 16  ;;  %v484_v52 = vpack.c.bf16 %v452_v43, %v452_v43  ;;  %v485_v60 = vpack.c.bf16 %v453_v46, %v453_v46  ;;  %v464_v61 = vsub.f32 1.0, %v2989_v47 }
  0x40   : > { %942 = vrot.lane.b32.xlu2 %v3403_v40, %s3221_s10  ;;  %v633_v58 = vpack.c.bf16 %v601_v44, %v601_v44  ;;  %v702_v59 = vunpack.c.l.b16 %v632_v45  ;;  %v749_v63 = vshrl.u32 %v3403_v40, 16  ;;  %v465_v6 = vsub.f32 1.0, %v2990_v55 }
  0x41   : > { %988 = vrot.lane.b32.xlu0 %v921_v39, %s3222_s11  ;;  %v875_v1 = vrot.slane %v752_v49, 1  ;;  %v548_v5 = vunpack.c.l.bf16 %v484_v52  ;;  %v549_v14 = vunpack.c.l.bf16 %v485_v60  ;;  %v2925_v15 = vunpack.c.l.bf16 %v3145_v54 }
  0x42   : > { %v703_v10 = vunpack.c.l.b16 %v633_v58  ;;  %v496_v16 = vpack.c.bf16 %v464_v61, %v464_v61  ;;  %v2926_v18 = vunpack.c.h.bf16 %v3145_v54  ;;  %v497_v21 = vpack.c.bf16 %v465_v6, %v465_v6 }
  0x43   : > { %v580_v17 = vmul.f32 %v2901_v35, %v548_v5  ;;  %v2905_v22 = vunpack.c.l.bf16 %v3140_v62  ;;  %v581_v25 = vmul.f32 %v2902_v41, %v549_v14  ;;  %v2969_v27 = vunpack.c.l.bf16 %v3156_v9 }
  0x44   : > { %v3418_v24 = vpack.c.b16 %v703_v10, %v702_v59  ;;  %v560_v26 = vunpack.c.l.bf16 %v496_v16  ;;  %v876_v29 = vor.u32 %v875_v1, %v749_v63  ;;  %v561_v31 = vunpack.c.l.bf16 %v497_v21 }
  0x45   : > { %v612_v30 = vpack.c.bf16 %v580_v17, %v580_v17  ;;  %v2970_v32 = vunpack.c.h.bf16 %v3156_v9  ;;  %v613_v34 = vpack.c.bf16 %v581_v25, %v581_v25  ;;  %v454_v39 = vsub.f32 1.0, %v2969_v27 }
  0x46   : > { %v592_v36 = vmul.f32 %v2925_v15, %v560_v26  ;;  %v826_v35 = vshrl.u32 %v3418_v24, 16  ;;  %v593_v44 = vmul.f32 %v2926_v18, %v561_v31  ;;  %v829_v46 = vshll.u32 %v3418_v24, 16  ;;  %v3157_v15 = vld [vmem:[%s3287_s9 + $0x138] sm:$0xff]  }
  0x47   : > { %1010 = vrot.lane.b32.xlu1 %v932_v48, %s3222_s11  ;;  %v682_v43 = vunpack.c.l.b16 %v612_v30  ;;  %v455_v45 = vsub.f32 1.0, %v2970_v32  ;;  %v683_v41 = vunpack.c.l.b16 %v613_v34  ;;  %v2906_v48 = vunpack.c.h.bf16 %v3140_v62 }
  0x48   : > { %v624_v47 = vpack.c.bf16 %v592_v36, %v592_v36  ;;  %v486_v52 = vpack.c.bf16 %v454_v39, %v454_v39  ;;  %v922_v54 = vsel %vm3317_vm2, %v876_v29, 0  ;;  %v625_v55 = vpack.c.bf16 %v593_v44, %v593_v44  ;;  %v3141_v44 = vld [vmem:[%s3281_s29 + $0x38] sm:$0xff]  }
  0x49   : > { %964 = vrot.lane.b32.xlu0 %v3418_v24, %s3221_s10  ;;  %v487_v58 = vpack.c.bf16 %v455_v45, %v455_v45  ;;  %v897_v59 = vrot.slane %v829_v46, 1  ;;  %v3430_v60 = vpack.c.b16 %v683_v41, %v682_v43  ;;  %v2973_v21 = vunpack.c.l.bf16 %v3157_v15 }
  0x4a   : > { %v694_v61 = vunpack.c.l.b16 %v624_v47  ;;  %v550_v1 = vunpack.c.l.bf16 %v486_v52  ;;  %v695_v5 = vunpack.c.l.b16 %v625_v55  ;;  %v2974_v26 = vunpack.c.h.bf16 %v3157_v15  ;;  %v2685_v15 = vld [vmem:[%s4040_s4] sm:$0xf] }
  0x4b   : > { %v551_v6 = vunpack.c.l.bf16 %v487_v58  ;;  %v898_v9 = vor.u32 %v897_v59, %v826_v35  ;;  %v756_v10 = vshrl.u32 %v3430_v60, 16  ;;  %v759_v14 = vshll.u32 %v3430_v60, 16 }
  0x4c   : > { %v582_v62 = vmul.f32 %v2905_v22, %v550_v1  ;;  %v3438_v16 = vpack.c.b16 %v695_v5, %v694_v61  ;;  %v456_v29 = vsub.f32 1.0, %v2973_v21  ;;  %v457_v34 = vsub.f32 1.0, %v2974_v26 }
  0x4d   : > { %v583_v17 = vmul.f32 %v2906_v48, %v551_v6  ;;  %v933_v18 = vsel %vm3317_vm2, %v898_v9, 0  ;;  %v877_v25 = vrot.slane %v759_v14, 1  ;;  %v723_v43 = vrot.slane %v721_v12, 7 }
  0x4e   : > { %1012 = vrot.lane.b32.xlu2 %v933_v18, %s3222_s11  ;;  %v798_v22 = vshrl.u32 %v3438_v16, 16  ;;  %v801_v27 = vshll.u32 %v3438_v16, 16  ;;  %v614_v30 = vpack.c.bf16 %v582_v62, %v582_v62  ;;  %v488_v39 = vpack.c.bf16 %v456_v29, %v456_v29  ;;  %v3158_v29 = vld [vmem:[%s3287_s9 + $0x140] sm:$0xff]  }
  0x4f   : > { %990 = vrot.lane.b32.xlu1 %v922_v54, %s3222_s11  ;;  %v615_v31 = vpack.c.bf16 %v583_v17, %v583_v17  ;;  %v878_v32 = vor.u32 %v877_v25, %v756_v10  ;;  %v489_v45 = vpack.c.bf16 %v457_v34, %v457_v34  ;;  %v2909_v48 = vunpack.c.l.bf16 %v3141_v44  ;;  %v2844_v17 = vld [vmem:[%s4040_s4] sm:$0x30] }
  0x50   : > { %v889_v36 = vrot.slane %v801_v27, 1  ;;  %v2910_v52 = vunpack.c.h.bf16 %v3141_v44  ;;  %v684_v54 = vunpack.c.l.b16 %v614_v30  ;;  %v552_v58 = vunpack.c.l.bf16 %v488_v39 }
  0x51   : > { %944 = vrot.lane.b32.xlu0 %v3430_v60, %s3221_s10  ;;  %v923_v47 = vsel %vm3317_vm2, %v878_v32, 0  ;;  %v685_v55 = vunpack.c.l.b16 %v615_v31  ;;  %v553_v59 = vunpack.c.l.bf16 %v489_v45  ;;  %v3470_v6 = vor.u32 %v724_v13, %v723_v43 }
  0x52   : > { %v890_v41 = vor.u32 %v889_v36, %v798_v22  ;;  %v584_v61 = vmul.f32 %v2909_v48, %v552_v58  ;;  %v2686_v18 = vor.u32 %v2844_v17, %v2685_v15  ;;  %v3223_v26 = vmov 0   ;;  %v2601_v15 = vld [vmem:[%s4040_s4 + $0x8] sm:$0xf]  ;;  %v2861_v17 = vld [vmem:[%s4040_s4 + $0x8] sm:$0x30] }
  0x53   : > { %v585_v1 = vmul.f32 %v2910_v52, %v553_v59  ;;  %v3466_v5 = vpack.c.b16 %v685_v55, %v684_v54  ;;  %635 = vst.msk [vmem:[#allocation2] sm:$0xf] %vm634_vm4, %v3223_v26  ;;  %v2977_v30 = vunpack.c.l.bf16 %v3158_v29  ;;  %v2978_v31 = vunpack.c.h.bf16 %v3158_v29 }
  0x54   : > { %v929_v12 = vsel %vm3317_vm2, %v890_v41, 0  ;;  %v616_v9 = vpack.c.bf16 %v584_v61, %v584_v61  ;;  %v1671_v4 = vsel %vm1444_vm3, %v2686_v18, 0  ;;  %636 = vst.msk [vmem:[#allocation2 + $0x4] sm:$0xf] %vm634_vm4, %v3223_v26  ;;  %v828_v42 = vrot.slane %v826_v35, 7 }
  0x55   : > { %v617_v62 = vpack.c.bf16 %v585_v1, %v585_v1  ;;  %1680 = vmatpush.bf16.msra.mxu1 %v1671_v4  ;;  %638 = vst.msk [vmem:[#allocation2 + $0x88] sm:$0xf] %vm634_vm4, %v3223_v26  ;;  %v458_v36 = vsub.f32 1.0, %v2977_v30  ;;  %v459_v39 = vsub.f32 1.0, %v2978_v31 }
  0x56   : > { %992 = vrot.lane.b32.xlu2 %v923_v47, %s3222_s11  ;;  %v686_v21 = vunpack.c.l.b16 %v616_v9  ;;  %639 = vst.msk [vmem:[#allocation2 + $0x8c] sm:$0xf] %vm634_vm4, %v3223_v26  ;;  %v3142_v47 = vld [vmem:[%s3281_s29 + $0x40] sm:$0xff]   ;;  %v763_v9 = vshrl.u32 %v3466_v5, 16 }
  0x57   : > { %956 = vrot.lane.b32.xlu1 %v3438_v16, %s3221_s10  ;;  %v687_v25 = vunpack.c.l.b16 %v617_v62  ;;  %v490_v44 = vpack.c.bf16 %v458_v36, %v458_v36  ;;  %v491_v45 = vpack.c.bf16 %v459_v39, %v459_v39  ;;  %v2913_v48 = vunpack.c.l.bf16 %v3142_v47 }
  0x58   : > { %v2914_v52 = vunpack.c.h.bf16 %v3142_v47 }
  0x59   : > { %1004 = vrot.lane.b32.xlu0 %v929_v12, %s3222_s11  ;;  %v3481_v13 = vpack.c.b16 %v687_v25, %v686_v21  ;;  %v554_v54 = vunpack.c.l.bf16 %v490_v44  ;;  %v555_v55 = vunpack.c.l.bf16 %v491_v45  ;;  %v766_v12 = vshll.u32 %v3466_v5, 16 }
  0x5a   : > { %v2602_v25 = vor.u32 %v2861_v17, %v2601_v15 }
  0x5b   : > { %v770_v32 = vshrl.u32 %v3481_v13, 16  ;;  %v773_v34 = vshll.u32 %v3481_v13, 16  ;;  %v2828_v59 = vld [vmem:[#allocation2] sm:$0xff]  ;;  %v586_v61 = vmul.f32 %v2913_v48, %v554_v54  ;;  %v587_v1 = vmul.f32 %v2914_v52, %v555_v55  ;;  %v3159_v48 = vld [vmem:[%s3287_s9 + $0x148] sm:$0xff]  }
  0x5c   : > { %2687 = vmatmul.msk.bf16.vlgmr.msra.gmra.mxu1 %vm1395_vm5, %v2828_v59  ;;  %v879_v62 = vrot.slane %v766_v12, 1  ;;  %v1446_v31 = vsel %vm1444_vm3, %v2602_v25, 0  ;;  %v2981_v52 = vunpack.c.l.bf16 %v3159_v48  ;;  %v2982_v54 = vunpack.c.h.bf16 %v3159_v48 }
  0x5d   : > { %v881_v43 = vrot.slane %v773_v34, 1  ;;  %v618_v18 = vpack.c.bf16 %v586_v61, %v586_v61  ;;  %v619_v21 = vpack.c.bf16 %v587_v1, %v587_v1  ;;  %1455 = vmatpush.bf16.msra.mxu0 %v1446_v31  ;;  %3197 = vmatpush.bf16.msra.mxu3 %v1446_v31  ;;  %v851_v25 = vsel %vm3531_vm8, 0, %v3470_v6 }
  0x5e   : > { %v880_v26 = vor.u32 %v879_v62, %v763_v9  ;;  %v461_v55 = vsub.f32 1.0, %v2982_v54  ;;  %v3143_v62 = vld [vmem:[%s3281_s29 + $0x48] sm:$0xff]  }
  0x5f   : > { %946 = vrot.lane.b32.xlu1 %v3466_v5, %s3221_s10  ;;  %v882_v41 = vor.u32 %v881_v43, %v770_v32  ;;  %v688_v29 = vunpack.c.l.b16 %v618_v18  ;;  %v689_v30 = vunpack.c.l.b16 %v619_v21  ;;  %v2917_v15 = vunpack.c.l.bf16 %v3143_v62 }
  0x60   : > { %v924_v36 = vsel %vm3317_vm2, %v880_v26, 0  ;;  %v493_v1 = vpack.c.bf16 %v461_v55, %v461_v55  ;;  %v2918_v17 = vunpack.c.h.bf16 %v3143_v62 }
  0x61   : > { %948 = vrot.lane.b32.xlu0 %v3481_v13, %s3221_s10  ;;  %v925_v58 = vsel %vm3317_vm2, %v882_v41, 0  ;;  %v3516_v39 = vpack.c.b16 %v689_v30, %v688_v29  ;;  %994 = vrot.lane.b32.xlu2 %v924_v36, %s3222_s11 }
  0x62   : > { %3198 = vmatpush.bf16.msrb.mxu3 %v1671_v4  ;;  %v460_v4 = vsub.f32 1.0, %v2981_v52  ;;  %v557_v21 = vunpack.c.l.bf16 %v493_v1 }
  0x63   : > { %v777_v43 = vshrl.u32 %v3516_v39, 16  ;;  %v780_v44 = vshll.u32 %v3516_v39, 16 }
  0x64   : > { %v492_v61 = vpack.c.bf16 %v460_v4, %v460_v4  ;;  %v589_v29 = vmul.f32 %v2918_v17, %v557_v21 }
  0x65   : > { %v883_v45 = vrot.slane %v780_v44, 1 }
  0x66   : > { %v556_v18 = vunpack.c.l.bf16 %v492_v61  ;;  %v621_v36 = vpack.c.bf16 %v589_v29, %v589_v29 }
  0x67   : > { %996 = vrot.lane.b32.xlu1 %v925_v58, %s3222_s11  ;;  %v884_v41 = vor.u32 %v883_v45, %v777_v43  ;;  %v3160_v45 = vld [vmem:[%s3287_s9 + $0x150] sm:$0xff]  }
  0x68   : > { %v588_v26 = vmul.f32 %v2917_v15, %v556_v18  ;;  %v2985_v48 = vunpack.c.l.bf16 %v3160_v45  ;;  %v2986_v52 = vunpack.c.h.bf16 %v3160_v45  ;;  %v691_v55 = vunpack.c.l.b16 %v621_v36 }
  0x69   : > { %v926_v47 = vsel %vm3317_vm2, %v884_v41, 0  ;;  %950 = vrot.lane.b32.xlu2 %v3516_v39, %s3221_s10  ;;  %v2771_v41 = vld [vmem:[%s4040_s4 + $0x10] sm:$0xf] }
  0x6a   : > { %998 = vrot.lane.b32.xlu0 %v926_v47, %s3222_s11  ;;  %v620_v31 = vpack.c.bf16 %v588_v26, %v588_v26  ;;  %v2878_v47 = vld [vmem:[%s4040_s4 + $0x10] sm:$0x30]  ;;  %v462_v61 = vsub.f32 1.0, %v2985_v48  ;;  %v463_v1 = vsub.f32 1.0, %v2986_v52  ;;  %v730_v52 = vrot.slane %v728_v7, 7 }
  0x6b   : > { %v2772_v6 = vor.u32 %v2878_v47, %v2771_v41  ;;  %v807_v7 = vrot.slane %v805_v23, 7 }
  0x6c   : > { %v690_v4 = vunpack.c.l.b16 %v620_v31  ;;  %v494_v21 = vpack.c.bf16 %v462_v61, %v462_v61  ;;  %v3144_v31 = vld [vmem:[%s3281_s29 + $0x50] sm:$0xff]   ;;  %s3777_s29 = scalar_lea.vmem %s4038_s2, %s3275_s26 }
  0x6d   : > { %v3549_v17 = vsel %vm1444_vm3, %v2772_v6, 0  ;;  %v2922_v36 = vunpack.c.h.bf16 %v3144_v31 }
  0x6e   : > { %v3551_v18 = vpack.c.b16 %v691_v55, %v690_v4  ;;  %1941 = vmatpush.bf16.msra.mxu2 %v3549_v17  ;;  %v558_v45 = vunpack.c.l.bf16 %v494_v21 }
  0x70   : > { %952 = vrot.lane.b32.xlu1 %v3551_v18, %s3221_s10 }
  0x7a   : > { %v935_v59 = vpop.permute.xlu2 %934 }
  0x7b   : > { %v1017_v30 = vsel %vm1014_vm9, %v851_v25, %v935_v59  ;;  %v495_v25 = vpack.c.bf16 %v463_v1, %v463_v1 }
  0x7d   : > { %v559_v41 = vunpack.c.l.bf16 %v495_v25 }
  0x7f   : > { %v591_v48 = vmul.f32 %v2922_v36, %v559_v41 }
  0x81   : > { %v623_v6 = vpack.c.bf16 %v591_v48, %v591_v48 }
  0x82   : > { %v983_v54 = vpop.permute.xlu2 %982 }
  0x83   : > { %v1065_v59 = vsel %vm1063_vm10, %v1017_v30, %v983_v54  ;;  %v2921_v30 = vunpack.c.l.bf16 %v3144_v31  ;;  %v693_v55 = vunpack.c.l.b16 %v623_v6  ;;  %v737_v31 = vrot.slane %v735_v53, 7 }
  0x84   : > { %v1112_v62 = vunpack.c.l.b16 %v1065_v59  ;;  %v1113_v15 = vunpack.c.h.b16 %v1065_v59  ;;  %v733_v59 = vor.u32 %v731_v8, %v730_v52 }
  0x85   : > { %v590_v47 = vmul.f32 %v2921_v30, %v558_v45  ;;  %v810_v30 = vor.u32 %v808_v20, %v807_v7  ;;  %v740_v11 = vor.u32 %v738_v57, %v737_v31  ;;  %v784_v20 = vshrl.u32 %v3551_v18, 16 }
  0x86   : > { %v1144_v26 = vpack.c.b16 %v1112_v62, %v1112_v62  ;;  %v1145_v29 = vpack.c.b16 %v1113_v15, %v1113_v15  ;;  %v852_v0 = vsel %vm3531_vm8, 0, %v733_v59 }
  0x87   : > { %v622_v54 = vpack.c.bf16 %v590_v47, %v590_v47  ;;  %v787_v47 = vshll.u32 %v3551_v18, 16  ;;  %v853_v33 = vsel %vm3531_vm8, 0, %v740_v11 }
  0x88   : > { %1209 = vst.msk [vmem:[#allocation2 + $0x8] sm:$0xf] %vm634_vm4, %v1144_v26 }
  0x89   : > { %1210 = vst.msk [vmem:[#allocation2 + $0xc] sm:$0xf] %vm634_vm4, %v1145_v29  ;;  %v692_v4 = vunpack.c.l.b16 %v622_v54  ;;  %v863_v54 = vsel %vm3531_vm8, 0, %v810_v30  ;;  %v885_v53 = vrot.slane %v787_v47, 1 }
  0x8b   : > { %v3563_v61 = vpack.c.b16 %v693_v55, %v692_v4  ;;  %v987_v55 = vpop.permute.xlu2 %986  ;;  %v886_v59 = vor.u32 %v885_v53, %v784_v20  ;;  %v744_v53 = vrot.slane %v742_v50, 7  ;;  %v821_v50 = vrot.slane %v819_v2, 7 }
  0x8d   : > { %954 = vrot.lane.b32.xlu0 %v3563_v61, %s3221_s10  ;;  %v794_v21 = vshll.u32 %v3563_v61, 16  ;;  %v791_v8 = vshrl.u32 %v3563_v61, 16  ;;  %v927_v57 = vsel %vm3317_vm2, %v886_v59, 0 }
  0x8e   : > { %1000 = vrot.lane.b32.xlu2 %v927_v57, %s3222_s11 }
  0x8f   : > { %v887_v25 = vrot.slane %v794_v21, 1 }
  0x90   : > { %v2845_v1 = vld [vmem:[#allocation2 + $0x8] sm:$0xff] }
  0x91   : > { %v2829_v62 = vld [vmem:[#allocation2 + $0x8] sm:$0xff]  ;;  %2603 = vmatmul.msk.bf16.vlgmr.msra.gmra.mxu0 %vm1395_vm5, %v2845_v1  ;;  %v888_v26 = vor.u32 %v887_v25, %v791_v8 }
  0x92   : > { %v937_v15 = vpop.permute.xlu0 %936  ;;  %2688 = vmatmul.msk.bf16.gmra.mxu1 %vm1395_vm5, %v2829_v62  ;;  %v814_v62 = vrot.slane %v812_v37, 7 }
  0x93   : > { %v1020_v29 = vsel %vm1014_vm9, %v852_v0, %v937_v15  ;;  %v928_v23 = vsel %vm3317_vm2, %v888_v26, 0 }
  0x94   : > { %1002 = vrot.lane.b32.xlu1 %v928_v23, %s3222_s11  ;;  %v817_v31 = vor.u32 %v815_v38, %v814_v62  ;;  %s3788_s11 = scalar_lea.vmem %s4039_s3, %s3275_s26  ;;  %s2827_s26 = sshll.u32 %s4049_s25, 8 }
  0x95   : > { %s3808_s16 = scalar_lea.vmem %s4043_s7, %s2827_s26 }
  0x96   : > { %v864_v28 = vsel %vm3531_vm8, 0, %v817_v31 }
  0x99   : > { %v985_v36 = vpop.permute.xlu1 %984 }
  0x9a   : > { %v1067_v45 = vsel %vm1063_vm10, %v1020_v29, %v985_v36  ;;  %v959_v41 = vpop.permute.xlu0 %958 }
  0x9b   : > { %v1114_v48 = vunpack.c.l.b16 %v1067_v45  ;;  %v1115_v52 = vunpack.c.h.b16 %v1067_v45  ;;  %v1053_v1 = vsel %vm1014_vm9, %v863_v54, %v959_v41  ;;  %v963_v45 = vpop.permute.xlu2 %962 }
  0x9d   : > { %v1146_v6 = vpack.c.b16 %v1114_v48, %v1114_v48  ;;  %v1147_v4 = vpack.c.b16 %v1115_v52, %v1115_v52 }
  0x9f   : > { %1211 = vst.msk [vmem:[#allocation2 + $0x10] sm:$0xf] %vm634_vm4, %v1146_v6 }
  0xa0   : > { %1212 = vst.msk [vmem:[#allocation2 + $0x14] sm:$0xf] %vm634_vm4, %v1147_v4  ;;  %v747_v4 = vor.u32 %v745_v51, %v744_v53 }
  0xa1   : > { %v1007_v15 = vpop.permute.xlu1 %1006 }
  0xa2   : > { %v1089_v7 = vsel %vm1063_vm10, %v1053_v1, %v1007_v15  ;;  %v939_v0 = vpop.permute.xlu0 %938  ;;  %v854_v57 = vsel %vm3531_vm8, 0, %v747_v4  ;;  %v824_v15 = vor.u32 %v822_v3, %v821_v50 }
  0xa3   : > { %v1136_v25 = vunpack.c.l.b16 %v1089_v7  ;;  %v1137_v26 = vunpack.c.h.b16 %v1089_v7  ;;  %v1023_v29 = vsel %vm1014_vm9, %v853_v33, %v939_v0  ;;  %v943_v7 = vpop.permute.xlu2 %942 }
  0xa4   : > { %v1069_v37 = vsel %vm1063_vm10, %v1023_v29, %v987_v55  ;;  %v865_v56 = vsel %vm3531_vm8, 0, %v824_v15 }
  0xa5   : > { %v1168_v30 = vpack.c.b16 %v1136_v25, %v1136_v25  ;;  %v1169_v23 = vpack.c.b16 %v1137_v26, %v1137_v26  ;;  %v1116_v36 = vunpack.c.l.b16 %v1069_v37  ;;  %v1117_v19 = vunpack.c.h.b16 %v1069_v37 }
  0xa6   : > { %v751_v26 = vrot.slane %v749_v63, 7 }
  0xa7   : > { %1233 = vst.msk [vmem:[#allocation2 + $0x68] sm:$0xf] %vm634_vm4, %v1168_v30  ;;  %v2862_v41 = vld [vmem:[#allocation2 + $0x10] sm:$0xff]  ;;  %v1148_v48 = vpack.c.b16 %v1116_v36, %v1116_v36  ;;  %v1149_v52 = vpack.c.b16 %v1117_v19, %v1117_v19  ;;  %v831_v36 = vor.u32 %v829_v46, %v828_v42 }
  0xa8   : > { %v2846_v54 = vld [vmem:[#allocation2 + $0x10] sm:$0xff]  ;;  %1234 = vst.msk [vmem:[#allocation2 + $0x6c] sm:$0xf] %vm634_vm4, %v1169_v23  ;;  %2773 = vmatmul.msk.bf16.vlgmr.msra.gmra.mxu2 %vm1395_vm5, %v2862_v41  ;;  %v1059_v23 = vsel %vm1014_vm9, %v865_v56, %v963_v45  ;;  %v754_v63 = vor.u32 %v752_v49, %v751_v26  ;;  %v758_v45 = vrot.slane %v756_v10, 7 }
  0xa9   : > { %v2830_v11 = vld [vmem:[#allocation2 + $0x10] sm:$0xff]  ;;  %1213 = vst.msk [vmem:[#allocation2 + $0x18] sm:$0xf] %vm634_vm4, %v1148_v48  ;;  %2604 = vmatmul.msk.bf16.gmra.mxu0 %vm1395_vm5, %v2846_v54  ;;  %v961_v38 = vpop.permute.xlu1 %960  ;;  %v866_v49 = vsel %vm3531_vm8, 0, %v831_v36  ;;  %v772_v36 = vrot.slane %v770_v32, 7 }
  0xaa   : > { %1214 = vst.msk [vmem:[#allocation2 + $0x1c] sm:$0xf] %vm634_vm4, %v1149_v52  ;;  %2689 = vmatmul.msk.bf16.gmra.mxu1 %vm1395_vm5, %v2830_v11  ;;  %v1056_v6 = vsel %vm1014_vm9, %v864_v28, %v961_v38  ;;  %v855_v46 = vsel %vm3531_vm8, 0, %v754_v63  ;;  %v761_v4 = vor.u32 %v759_v14, %v758_v45 }
  0xab   : > { %v1009_v55 = vpop.permute.xlu0 %1008  ;;  %v1013_v54 = vpop.permute.xlu2 %1012  ;;  %v1029_v10 = vsel %vm1014_vm9, %v855_v46, %v943_v7  ;;  %v775_v32 = vor.u32 %v773_v34, %v772_v36 }
  0xac   : > { %v1091_v59 = vsel %vm1063_vm10, %v1056_v6, %v1009_v55  ;;  %v800_v55 = vrot.slane %v798_v22, 7  ;;  %v856_v60 = vsel %vm3531_vm8, 0, %v761_v4 }
  0xad   : > { %v1138_v1 = vunpack.c.l.b16 %v1091_v59  ;;  %v1139_v62 = vunpack.c.h.b16 %v1091_v59 }
  0xae   : > { %v803_v22 = vor.u32 %v801_v27, %v800_v55 }
  0xaf   : > { %v2857_v33 = vld [vmem:[#allocation2 + $0x68] sm:$0xff]  ;;  %v1170_v0 = vpack.c.b16 %v1138_v1, %v1138_v1  ;;  %v1171_v25 = vpack.c.b16 %v1139_v62, %v1139_v62 }
  0xb0   : > { %2615 = vmatmul.msk.bf16.vlgmr.msra.gmra.mxu3 %vm1395_vm5, %v2857_v33 }
  0xb1   : > { %v941_v2 = vpop.permute.xlu1 %940  ;;  %3199 = vmatpush.bf16.msra.mxu3 %v3549_v17  ;;  %1235 = vst.msk [vmem:[#allocation2 + $0x70] sm:$0xf] %vm634_vm4, %v1170_v0  ;;  %v2847_v29 = vld [vmem:[#allocation2 + $0x18] sm:$0xff] }
  0xb2   : > { %v1026_v51 = vsel %vm1014_vm9, %v854_v57, %v941_v2  ;;  %1236 = vst.msk [vmem:[#allocation2 + $0x74] sm:$0xf] %vm634_vm4, %v1171_v25  ;;  %v2863_v37 = vld [vmem:[#allocation2 + $0x18] sm:$0xff] }
  0xb3   : > { %v989_v3 = vpop.permute.xlu0 %988  ;;  %v2831_v31 = vld [vmem:[#allocation2 + $0x18] sm:$0xff]  ;;  %v993_v14 = vpop.permute.xlu2 %992 }
  0xb4   : > { %v1071_v17 = vsel %vm1063_vm10, %v1026_v51, %v989_v3 }
  0xb5   : > { %v1118_v30 = vunpack.c.l.b16 %v1071_v17  ;;  %v1119_v35 = vunpack.c.h.b16 %v1071_v17  ;;  %v862_v17 = vsel %vm3531_vm8, 0, %v803_v22 }
  0xb7   : > { %v1150_v19 = vpack.c.b16 %v1118_v30, %v1118_v30  ;;  %v1151_v41 = vpack.c.b16 %v1119_v35, %v1119_v35 }
  0xb8   : > { %2774 = vmatmul.msk.bf16.gmra.mxu2 %vm1395_vm5, %v2863_v37 }
  0xb9   : > { %2605 = vmatmul.msk.bf16.gmra.mxu0 %vm1395_vm5, %v2847_v29  ;;  %v1011_v48 = vpop.permute.xlu1 %1010  ;;  %1215 = vst.msk [vmem:[#allocation2 + $0x20] sm:$0xf] %vm634_vm4, %v1150_v19  ;;  %v2858_v11 = vld [vmem:[#allocation2 + $0x70] sm:$0xff]  ;;  %v765_v29 = vrot.slane %v763_v9, 7 }
  0xba   : > { %2690 = vmatmul.msk.bf16.gmra.mxu1 %vm1395_vm5, %v2831_v31  ;;  %v1093_v52 = vsel %vm1063_vm10, %v1059_v23, %v1011_v48  ;;  %1216 = vst.msk [vmem:[#allocation2 + $0x24] sm:$0xf] %vm634_vm4, %v1151_v41  ;;  %v2842_v61 = vld [vmem:[#allocation2 + $0x70] sm:$0xff] }
  0xbb   : > { %v1140_v24 = vunpack.c.l.b16 %v1093_v52  ;;  %v1141_v40 = vunpack.c.h.b16 %v1093_v52  ;;  %v965_v38 = vpop.permute.xlu0 %964  ;;  %v768_v23 = vor.u32 %v766_v12, %v765_v29  ;;  %v995_v45 = vpop.permute.xlu2 %994 }
  0xbc   : > { %v1062_v6 = vsel %vm1014_vm9, %v866_v49, %v965_v38  ;;  %v858_v38 = vsel %vm3531_vm8, 0, %v775_v32 }
  0xbd   : > { %v1172_v53 = vpack.c.b16 %v1140_v24, %v1140_v24  ;;  %v1173_v28 = vpack.c.b16 %v1141_v40, %v1141_v40  ;;  %v1095_v50 = vsel %vm1063_vm10, %v1062_v6, %v1013_v54  ;;  %v857_v54 = vsel %vm3531_vm8, 0, %v768_v23 }
  0xbe   : > { %v1142_v59 = vunpack.c.l.b16 %v1095_v50  ;;  %v1143_v1 = vunpack.c.h.b16 %v1095_v50 }
  0xbf   : > { %1237 = vst.msk [vmem:[#allocation2 + $0x78] sm:$0xf] %vm634_vm4, %v1172_v53 }
  0xc0   : > { %1238 = vst.msk [vmem:[#allocation2 + $0x7c] sm:$0xf] %vm634_vm4, %v1173_v28  ;;  %2616 = vmatmul.msk.bf16.gmra.mxu3 %vm1395_vm5, %v2858_v11  ;;  %v1174_v57 = vpack.c.b16 %v1142_v59, %v1142_v59  ;;  %v1175_v15 = vpack.c.b16 %v1143_v1, %v1143_v1 }
  0xc1   : > { %v991_v62 = vpop.permute.xlu1 %990  ;;  %v2848_v42 = vld [vmem:[#allocation2 + $0x20] sm:$0xff] }
  0xc2   : > { %v1073_v33 = vsel %vm1063_vm10, %v1029_v10, %v991_v62  ;;  %1239 = vst.msk [vmem:[#allocation2 + $0x80] sm:$0xf] %vm634_vm4, %v1174_v57  ;;  %v2864_v51 = vld [vmem:[#allocation2 + $0x20] sm:$0xff]  ;;  %v779_v62 = vrot.slane %v777_v43, 7 }
  0xc3   : > { %v1120_v7 = vunpack.c.l.b16 %v1073_v33  ;;  %v1121_v0 = vunpack.c.h.b16 %v1073_v33  ;;  %1240 = vst.msk [vmem:[#allocation2 + $0x84] sm:$0xf] %vm634_vm4, %v1175_v15  ;;  %v945_v26 = vpop.permute.xlu0 %944  ;;  %v2832_v56 = vld [vmem:[#allocation2 + $0x20] sm:$0xff] }
  0xc4   : > { %v1032_v3 = vsel %vm1014_vm9, %v856_v60, %v945_v26  ;;  %v951_v60 = vpop.permute.xlu2 %950 }
  0xc5   : > { %v1152_v25 = vpack.c.b16 %v1120_v7, %v1120_v7  ;;  %v1153_v2 = vpack.c.b16 %v1121_v0, %v1121_v0  ;;  %v1075_v37 = vsel %vm1063_vm10, %v1032_v3, %v993_v14  ;;  %v782_v7 = vor.u32 %v780_v44, %v779_v62  ;;  %v3782_v62 = vld [vmem:[%s4041_s5] ss:$0 sm:$0xff] }
  0xc6   : > { %v1122_v16 = vunpack.c.l.b16 %v1075_v37  ;;  %v1123_v27 = vunpack.c.h.b16 %v1075_v37  ;;  %v786_v3 = vrot.slane %v784_v20, 7 }
  0xc7   : > { %1217 = vst.msk [vmem:[#allocation2 + $0x28] sm:$0xf] %vm634_vm4, %v1152_v25  ;;  %v2859_v63 = vld [vmem:[#allocation2 + $0x78] sm:$0xff]  ;;  %v859_v0 = vsel %vm3531_vm8, 0, %v782_v7  ;;  %v3166_v7 = vld [vmem:[%s3777_s29 + $0x100] sm:$0xff]  }
  0xc8   : > { %1218 = vst.msk [vmem:[#allocation2 + $0x2c] sm:$0xf] %vm634_vm4, %v1153_v2  ;;  %2775 = vmatmul.msk.bf16.gmra.mxu2 %vm1395_vm5, %v2864_v51  ;;  %v1154_v30 = vpack.c.b16 %v1122_v16, %v1122_v16  ;;  %v1155_v9 = vpack.c.b16 %v1123_v27, %v1123_v27  ;;  %v1041_v43 = vsel %vm1014_vm9, %v859_v0, %v951_v60 }
  0xc9   : > { %2606 = vmatmul.msk.bf16.gmra.mxu0 %vm1395_vm5, %v2848_v42  ;;  %v957_v31 = vpop.permute.xlu1 %956  ;;  %v789_v29 = vor.u32 %v787_v47, %v786_v3 }
  0xca   : > { %2691 = vmatmul.msk.bf16.gmra.mxu1 %vm1395_vm5, %v2832_v56  ;;  %v1050_v35 = vsel %vm1014_vm9, %v862_v17, %v957_v31  ;;  %1219 = vst.msk [vmem:[#allocation2 + $0x30] sm:$0xf] %vm634_vm4, %v1154_v30  ;;  %v2860_v33 = vld [vmem:[#allocation2 + $0x80] sm:$0xff] }
  0xcb   : > { %1220 = vst.msk [vmem:[#allocation2 + $0x34] sm:$0xf] %vm634_vm4, %v1155_v9  ;;  %v1005_v19 = vpop.permute.xlu0 %1004  ;;  %v860_v17 = vsel %vm3531_vm8, 0, %v789_v29 }
  0xcc   : > { %v1087_v41 = vsel %vm1063_vm10, %v1050_v35, %v1005_v19  ;;  %v2841_v35 = vld [vmem:[#allocation2 + $0x68] sm:$0xff]  ;;  %v793_v19 = vrot.slane %v791_v8, 7 }
  0xcd   : > { %v1134_v48 = vunpack.c.l.b16 %v1087_v41  ;;  %v1135_v52 = vunpack.c.h.b16 %v1087_v41 }
  0xcf   : > { %v1166_v5 = vpack.c.b16 %v1134_v48, %v1134_v48  ;;  %v1167_v12 = vpack.c.b16 %v1135_v52, %v1135_v52  ;;  %v2865_v53 = vld [vmem:[#allocation2 + $0x28] sm:$0xff] }
  0xd0   : > { %2617 = vmatmul.msk.bf16.gmra.mxu3 %vm1395_vm5, %v2859_v63  ;;  %v2849_v28 = vld [vmem:[#allocation2 + $0x28] sm:$0xff] }
  0xd1   : > { %v947_v24 = vpop.permute.xlu1 %946  ;;  %1231 = vst.msk [vmem:[#allocation2 + $0x60] sm:$0xf] %vm634_vm4, %v1166_v5  ;;  %v2833_v10 = vld [vmem:[#allocation2 + $0x28] sm:$0xff] }
  0xd2   : > { %v1035_v40 = vsel %vm1014_vm9, %v857_v54, %v947_v24  ;;  %1232 = vst.msk [vmem:[#allocation2 + $0x64] sm:$0xf] %vm634_vm4, %v1167_v12  ;;  %v2866_v14 = vld [vmem:[#allocation2 + $0x30] sm:$0xff]  ;;  %v796_v54 = vor.u32 %v794_v21, %v793_v19 }
  0xd3   : > { %v1077_v49 = vsel %vm1063_vm10, %v1035_v40, %v995_v45  ;;  %v949_v6 = vpop.permute.xlu0 %948  ;;  %v2850_v22 = vld [vmem:[#allocation2 + $0x30] sm:$0xff] }
  0xd4   : > { %v1124_v46 = vunpack.c.l.b16 %v1077_v49  ;;  %v1125_v11 = vunpack.c.h.b16 %v1077_v49  ;;  %v1038_v34 = vsel %vm1014_vm9, %v858_v38, %v949_v6  ;;  %v2834_v25 = vld [vmem:[#allocation2 + $0x30] sm:$0xff]  ;;  %v861_v12 = vsel %vm3531_vm8, 0, %v796_v54 }
  0xd6   : > { %v1156_v50 = vpack.c.b16 %v1124_v46, %v1124_v46  ;;  %v1157_v13 = vpack.c.b16 %v1125_v11, %v1125_v11 }
  0xd8   : > { %1221 = vst.msk [vmem:[#allocation2 + $0x38] sm:$0xf] %vm634_vm4, %v1156_v50  ;;  %2776 = vmatmul.msk.bf16.gmra.mxu2 %vm1395_vm5, %v2865_v53  ;;  %v2843_v50 = vld [vmem:[#allocation2 + $0x78] sm:$0xff] }
  0xd9   : > { %2607 = vmatmul.msk.bf16.gmra.mxu0 %vm1395_vm5, %v2849_v28  ;;  %1222 = vst.msk [vmem:[#allocation2 + $0x3c] sm:$0xf] %vm634_vm4, %v1157_v13  ;;  %v997_v4 = vpop.permute.xlu1 %996  ;;  %v2840_v51 = vld [vmem:[#allocation2 + $0x60] sm:$0xff]  ;;  %v1682_v23 = vpop.f32.mrf.mxu1 }
  0xda   : > { %2692 = vmatmul.msk.bf16.gmra.mxu1 %vm1395_vm5, %v2833_v10  ;;  %v1079_v55 = vsel %vm1063_vm10, %v1038_v34, %v997_v4 }
  0xdb   : > { %v1126_v59 = vunpack.c.l.b16 %v1079_v55  ;;  %v1127_v1 = vunpack.c.h.b16 %v1079_v55 }
  0xdc   : > { %v999_v2 = vpop.permute.xlu0 %998 }
  0xdd   : > { %v1158_v57 = vpack.c.b16 %v1126_v59, %v1126_v59  ;;  %v1159_v15 = vpack.c.b16 %v1127_v1, %v1127_v1  ;;  %v1081_v42 = vsel %vm1063_vm10, %v1041_v43, %v999_v2  ;;  %v3009_v2 = vunpack.c.l.bf16 %v3166_v7 }
  0xde   : > { %v1128_v39 = vunpack.c.l.b16 %v1081_v42  ;;  %v1129_v44 = vunpack.c.h.b16 %v1081_v42 }
  0xdf   : > { %1223 = vst.msk [vmem:[#allocation2 + $0x40] sm:$0xf] %vm634_vm4, %v1158_v57 }
  0xe0   : > { %2618 = vmatmul.msk.bf16.gmra.mxu3 %vm1395_vm5, %v2860_v33  ;;  %1224 = vst.msk [vmem:[#allocation2 + $0x44] sm:$0xf] %vm634_vm4, %v1159_v15  ;;  %v1160_v26 = vpack.c.b16 %v1128_v39, %v1128_v39  ;;  %v1161_v56 = vpack.c.b16 %v1129_v44, %v1129_v44  ;;  %v2851_v37 = vld [vmem:[#allocation2 + $0x38] sm:$0xff]  ;;  %v3793_v15 = vld [vmem:[%s4042_s6] ss:$0 sm:$0xff] }
  0xe1   : > { %v2867_v16 = vld [vmem:[#allocation2 + $0x38] sm:$0xff]  ;;  %v1684_v5 = vpop.f32.mrf.mxu1 }
  0xe2   : > { %1225 = vst.msk [vmem:[#allocation2 + $0x48] sm:$0xf] %vm634_vm4, %v1160_v26  ;;  %v2835_v27 = vld [vmem:[#allocation2 + $0x38] sm:$0xff]  ;;  %v953_v20 = vpop.permute.xlu1 %952 }
  0xe3   : > { %1226 = vst.msk [vmem:[#allocation2 + $0x4c] sm:$0xf] %vm634_vm4, %v1161_v56  ;;  %v1044_v31 = vsel %vm1014_vm9, %v860_v17, %v953_v20 }
  0xe7   : > { %v2852_v41 = vld [vmem:[#allocation2 + $0x40] sm:$0xff] }
  0xe8   : > { %2777 = vmatmul.msk.bf16.gmra.mxu2 %vm1395_vm5, %v2866_v14  ;;  %v1001_v30 = vpop.permute.xlu2 %1000  ;;  %v2868_v48 = vld [vmem:[#allocation2 + $0x40] sm:$0xff] }
  0xe9   : > { %2608 = vmatmul.msk.bf16.gmra.mxu0 %vm1395_vm5, %v2850_v22  ;;  %v1083_v9 = vsel %vm1063_vm10, %v1044_v31, %v1001_v30  ;;  %v2836_v52 = vld [vmem:[#allocation2 + $0x40] sm:$0xff]  ;;  %v2874_v22 = vld [vmem:[#allocation2 + $0x70] sm:$0xff] }
  0xea   : > { %2693 = vmatmul.msk.bf16.gmra.mxu1 %vm1395_vm5, %v2834_v25  ;;  %v1130_v18 = vunpack.c.l.b16 %v1083_v9  ;;  %v1131_v47 = vunpack.c.h.b16 %v1083_v9  ;;  %v2869_v53 = vld [vmem:[#allocation2 + $0x48] sm:$0xff]  ;;  %v3072_v25 = vld [vmem:[%s3788_s11] sm:$0xff]   ;;  %v3010_v9 = vunpack.c.h.bf16 %v3166_v7 }
  0xeb   : > { %v2853_v28 = vld [vmem:[#allocation2 + $0x48] sm:$0xff]  ;;  %v3073_v44 = vunpack.c.l.bf16 %v3072_v25 }
  0xec   : > { %v1162_v36 = vpack.c.b16 %v1130_v18, %v1130_v18  ;;  %v1163_v63 = vpack.c.b16 %v1131_v47, %v1131_v47  ;;  %v2837_v38 = vld [vmem:[#allocation2 + $0x48] sm:$0xff] }
  0xee   : > { %1227 = vst.msk [vmem:[#allocation2 + $0x50] sm:$0xf] %vm634_vm4, %v1162_v36 }
  0xef   : > { %1228 = vst.msk [vmem:[#allocation2 + $0x54] sm:$0xf] %vm634_vm4, %v1163_v63 }
  0xf0   : > { %2699 = vmatmul.msk.bf16.vlgmr.msrb.gmra.mxu3 %vm1395_vm5, %v2840_v51 }
  0xf6   : > { %v2854_v13 = vld [vmem:[#allocation2 + $0x50] sm:$0xff] }
  0xf7   : > { %v2870_v34 = vld [vmem:[#allocation2 + $0x50] sm:$0xff] }
  0xf8   : > { %2778 = vmatmul.msk.bf16.gmra.mxu2 %vm1395_vm5, %v2867_v16  ;;  %v2838_v55 = vld [vmem:[#allocation2 + $0x50] sm:$0xff] }
  0xf9   : > { %2609 = vmatmul.msk.bf16.gmra.mxu0 %vm1395_vm5, %v2851_v37 }
  0xfa   : > { %2694 = vmatmul.msk.bf16.gmra.mxu1 %vm1395_vm5, %v2835_v27 }
  0xff   : > { %v955_v45 = vpop.permute.xlu0 %954 }
 0x100   : > { %2700 = vmatmul.msk.bf16.gmra.mxu3 %vm1395_vm5, %v2841_v35  ;;  %v1047_v24 = vsel %vm1014_vm9, %v861_v12, %v955_v45  ;;  %v3074_v35 = vunpack.c.h.bf16 %v3072_v25  ;;  %v2875_v45 = vld [vmem:[#allocation2 + $0x78] sm:$0xff] }
 0x106   : > { %v1003_v8 = vpop.permute.xlu1 %1002 }
 0x107   : > { %v1085_v32 = vsel %vm1063_vm10, %v1047_v24, %v1003_v8 }
 0x108   : > { %2779 = vmatmul.msk.bf16.gmra.mxu2 %vm1395_vm5, %v2868_v48  ;;  %v1132_v40 = vunpack.c.l.b16 %v1085_v32  ;;  %v1133_v49 = vunpack.c.h.b16 %v1085_v32 }
 0x109   : > { %2610 = vmatmul.msk.bf16.gmra.mxu0 %vm1395_vm5, %v2852_v41  ;;  %v3167_v41 = vld [vmem:[%s3777_s29 + $0x108] sm:$0xff]  }
 0x10a   : > { %2695 = vmatmul.msk.bf16.gmra.mxu1 %vm1395_vm5, %v2836_v52  ;;  %v1164_v21 = vpack.c.b16 %v1132_v40, %v1132_v40  ;;  %v1165_v46 = vpack.c.b16 %v1133_v49, %v1133_v49  ;;  %v3013_v24 = vunpack.c.l.bf16 %v3167_v41 }
 0x10c   : > { %1229 = vst.msk [vmem:[#allocation2 + $0x58] sm:$0xf] %vm634_vm4, %v1164_v21 }
 0x10d   : > { %1230 = vst.msk [vmem:[#allocation2 + $0x5c] sm:$0xf] %vm634_vm4, %v1165_v46 }
 0x10e   : > { %v1457_v11 = vpop.f32.mrf.mxu0 }
 0x10f   : > { %v1687_v58 = vpop.f32.mrf.mxu1  ;;  %v1683_v1 = vadd.f32 %v1682_v23, %v1457_v11 }
 0x110   : > { %2701 = vmatmul.msk.bf16.gmra.mxu3 %vm1395_vm5, %v2842_v61 }
 0x114   : > { %v2855_v29 = vld [vmem:[#allocation2 + $0x58] sm:$0xff] }
 0x115   : > { %v2871_v37 = vld [vmem:[#allocation2 + $0x58] sm:$0xff] }
 0x116   : > { %v1459_v6 = vpop.f32.mrf.mxu0  ;;  %v2839_v27 = vld [vmem:[#allocation2 + $0x58] sm:$0xff] }
 0x117   : > { %v3765_v10 = vpop.f32.mrf.mxu1  ;;  %v1685_v42 = vadd.f32 %v1684_v5, %v1459_v6  ;;  %v3182_v5 = vld [vmem:[%s3788_s11 + $0x8] sm:$0xff]   ;;  %v2872_v6 = vld [vmem:[#allocation2 + $0x60] sm:$0xff] }
 0x118   : > { %2780 = vmatmul.msk.bf16.gmra.mxu2 %vm1395_vm5, %v2869_v53  ;;  %v3077_v49 = vunpack.c.l.bf16 %v3182_v5 }
 0x119   : > { %2611 = vmatmul.msk.bf16.gmra.mxu0 %vm1395_vm5, %v2853_v28 }
 0x11a   : > { %2696 = vmatmul.msk.bf16.gmra.mxu1 %vm1395_vm5, %v2837_v38  ;;  %v2856_v38 = vld [vmem:[#allocation2 + $0x60] sm:$0xff] }
 0x120   : > { %2702 = vmatmul.msk.bf16.gmra.mxu3 %vm1395_vm5, %v2843_v50 }
 0x126   : > { %v1462_v4 = vpop.f32.mrf.mxu0 }
 0x127   : > { %v3768_v59 = vpop.f32.mrf.mxu1  ;;  %v1688_v18 = vadd.f32 %v1687_v58, %v1462_v4  ;;  %v3078_v4 = vunpack.c.h.bf16 %v3182_v5 }
 0x128   : > { %2781 = vmatmul.msk.bf16.gmra.mxu2 %vm1395_vm5, %v2870_v34 }
 0x129   : > { %2612 = vmatmul.msk.bf16.gmra.mxu0 %vm1395_vm5, %v2854_v13  ;;  %v3014_v13 = vunpack.c.h.bf16 %v3167_v41 }
 0x12a   : > { %2697 = vmatmul.msk.bf16.gmra.mxu1 %vm1395_vm5, %v2838_v55 }
 0x12b   : > { %v1943_v33 = vpop.f32.mrf.mxu2 }
 0x12c   : > { %v2023_v57 = vadd.f32 %v1943_v33, %v1683_v1 }
 0x12e   : > { %v1464_v0 = vpop.f32.mrf.mxu0  ;;  %v2059_v60 = vmul.f32 %v3782_v62, %v2023_v57 }
 0x12f   : > { %v3797_v14 = vpop.f32.mrf.mxu1  ;;  %v1690_v32 = vadd.f32 %v3765_v10, %v1464_v0  ;;  %v3168_v0 = vld [vmem:[%s3777_s29 + $0x110] sm:$0xff]  }
 0x130   : > { %v2095_v43 = vadd.f32 %v3793_v15, %v2059_v60  ;;  %2785 = vmatmul.msk.bf16.vlgmr.msra.gmra.mxu3 %vm1395_vm5, %v2874_v22 }
 0x132   : > { %v2127_v39 = vmax.f32 %v2095_v43, 0.0  ;;  %v2876_v43 = vld [vmem:[#allocation2 + $0x80] sm:$0xff] }
 0x133   : > { %v3803_v51 = vpop.f32.mrf.mxu3  ;;  %v1945_v26 = vpop.f32.mrf.mxu2 }
 0x134   : > { %v2223_v56 = vadd.f32 %v3009_v2, %v2127_v39  ;;  %v2024_v3 = vadd.f32 %v1945_v26, %v1685_v42  ;;  %v3183_v2 = vld [vmem:[%s3788_s11 + $0x10] sm:$0xff]   ;;  %v3017_v42 = vunpack.c.l.bf16 %v3168_v0 }
 0x135   : > { %v3081_v26 = vunpack.c.l.bf16 %v3183_v2 }
 0x136   : > { %v1467_v16 = vpop.f32.mrf.mxu0  ;;  %v2319_v17 = vadd.f32 %v3073_v44, %v2223_v56  ;;  %v2060_v20 = vmul.f32 %v3782_v62, %v2024_v3 }
 0x137   : > { %v3811_v31 = vpop.f32.mrf.mxu1  ;;  %v1693_v10 = vadd.f32 %v3768_v59, %v1467_v16 }
 0x138   : > { %2351 = vst.msk [vmem:[%s3808_s16] sm:$0xff] %vm1014_vm9, %v2319_v17  ;;  %v2096_v30 = vadd.f32 %v3793_v15, %v2060_v20  ;;  %2782 = vmatmul.msk.bf16.gmra.mxu2 %vm1395_vm5, %v2871_v37 }
 0x139   : > { %2613 = vmatmul.msk.bf16.gmra.mxu0 %vm1395_vm5, %v2855_v29 }
 0x13a   : > { %2698 = vmatmul.msk.bf16.gmra.mxu1 %vm1395_vm5, %v2839_v27  ;;  %v2128_v47 = vmax.f32 %v2096_v30, 0.0  ;;  %v2873_v30 = vld [vmem:[#allocation2 + $0x68] sm:$0xff] }
 0x13b   : > { %v3819_v23 = vpop.f32.mrf.mxu3  ;;  %v1948_v36 = vpop.f32.mrf.mxu2 }
 0x13c   : > { %v2224_v63 = vadd.f32 %v3010_v9, %v2128_v47  ;;  %v2025_v19 = vadd.f32 %v1948_v36, %v1688_v18 }
 0x13e   : > { %v1469_v48 = vpop.f32.mrf.mxu0  ;;  %v2320_v52 = vadd.f32 %v3074_v35, %v2224_v63  ;;  %v2061_v54 = vmul.f32 %v3782_v62, %v2025_v19  ;;  %v3082_v35 = vunpack.c.h.bf16 %v3183_v2  ;;  %v3185_v2 = vld [vmem:[%s3788_s11 + $0x20] sm:$0xff]  }
 0x13f   : > { %v3827_v8 = vpop.f32.mrf.mxu1  ;;  %v1695_v39 = vadd.f32 %v3797_v14, %v1469_v48  ;;  %v3018_v14 = vunpack.c.h.bf16 %v3168_v0  ;;  %v2877_v48 = vld [vmem:[#allocation2 + $0x88] sm:$0xff] }
 0x140   : > { %2352 = vst.msk [vmem:[%s3808_s16 + $0x8] sm:$0xff] %vm1014_vm9, %v2320_v52  ;;  %v2097_v12 = vadd.f32 %v3793_v15, %v2061_v54  ;;  %2786 = vmatmul.msk.bf16.gmra.mxu3 %vm1395_vm5, %v2875_v45  ;;  %v3169_v52 = vld [vmem:[%s3777_s29 + $0x118] sm:$0xff]  }
 0x142   : > { %v2129_v40 = vmax.f32 %v2097_v12, 0.0 }
 0x143   : > { %v3831_v61 = vpop.f32.mrf.mxu3  ;;  %v1950_v21 = vpop.f32.mrf.mxu2 }
 0x144   : > { %v2225_v46 = vadd.f32 %v3013_v24, %v2129_v40  ;;  %v2026_v11 = vadd.f32 %v1950_v21, %v1690_v32  ;;  %v3184_v24 = vld [vmem:[%s3788_s11 + $0x18] sm:$0xff]   ;;  %v3021_v32 = vunpack.c.l.bf16 %v3169_v52 }
 0x145   : > { %v3085_v21 = vunpack.c.l.bf16 %v3184_v24 }
 0x146   : > { %v1472_v58 = vpop.f32.mrf.mxu0  ;;  %v2321_v53 = vadd.f32 %v3077_v49, %v2225_v46  ;;  %v2062_v28 = vmul.f32 %v3782_v62, %v2026_v11 }
 0x147   : > { %v3840_v55 = vpop.f32.mrf.mxu1  ;;  %v1698_v18 = vadd.f32 %v3811_v31, %v1472_v58 }
 0x148   : > { %2353 = vst.msk [vmem:[%s3808_s16 + $0x10] sm:$0xff] %vm1014_vm9, %v2321_v53  ;;  %v2098_v50 = vadd.f32 %v3793_v15, %v2062_v28  ;;  %2783 = vmatmul.msk.bf16.gmra.mxu2 %vm1395_vm5, %v2872_v6 }
 0x149   : > { %2614 = vmatmul.msk.bf16.gmra.mxu0 %vm1395_vm5, %v2856_v38 }
 0x14a   : > { %v2130_v34 = vmax.f32 %v2098_v50, 0.0 }
 0x14b   : > { %v3842_v1 = vpop.f32.mrf.mxu3  ;;  %v1953_v33 = vpop.f32.mrf.mxu2 }
 0x14c   : > { %v2226_v57 = vadd.f32 %v3014_v13, %v2130_v34  ;;  %v2027_v7 = vadd.f32 %v1953_v33, %v1693_v10 }
 0x14e   : > { %v1474_v60 = vpop.f32.mrf.mxu0  ;;  %v2322_v22 = vadd.f32 %v3078_v4, %v2226_v57  ;;  %v2063_v25 = vmul.f32 %v3782_v62, %v2027_v7  ;;  %v3086_v4 = vunpack.c.h.bf16 %v3184_v24  ;;  %v3186_v24 = vld [vmem:[%s3788_s11 + $0x28] sm:$0xff]  }
 0x14f   : > { %v1704_v37 = vpop.f32.mrf.mxu1  ;;  %v1700_v40 = vadd.f32 %v3827_v8, %v1474_v60  ;;  %v3022_v8 = vunpack.c.h.bf16 %v3169_v52  ;;  %v3170_v60 = vld [vmem:[%s3777_s29 + $0x120] sm:$0xff]   ;;  %v3171_v52 = vld [vmem:[%s3777_s29 + $0x128] sm:$0xff]  }
 0x150   : > { %2354 = vst.msk [vmem:[%s3808_s16 + $0x18] sm:$0xff] %vm1014_vm9, %v2322_v22  ;;  %v2099_v59 = vadd.f32 %v3793_v15, %v2063_v25  ;;  %2787 = vmatmul.msk.bf16.gmra.mxu3 %vm1395_vm5, %v2876_v43 }
 0x152   : > { %v2131_v44 = vmax.f32 %v2099_v59, 0.0 }
 0x153   : > { %v3852_v56 = vpop.f32.mrf.mxu3  ;;  %v1955_v3 = vpop.f32.mrf.mxu2 }
 0x154   : > { %v2227_v29 = vadd.f32 %v3017_v42, %v2131_v44  ;;  %v2028_v16 = vadd.f32 %v1955_v3, %v1695_v39  ;;  %v3025_v42 = vunpack.c.l.bf16 %v3170_v60 }
 0x156   : > { %v1477_v27 = vpop.f32.mrf.mxu0  ;;  %v2323_v17 = vadd.f32 %v3081_v26, %v2227_v29  ;;  %v2064_v20 = vmul.f32 %v3782_v62, %v2028_v16  ;;  %v3089_v26 = vunpack.c.l.bf16 %v3185_v2 }
 0x157   : > { %v1707_v5 = vpop.f32.mrf.mxu1  ;;  %v1703_v10 = vadd.f32 %v3840_v55, %v1477_v27 }
 0x158   : > { %2355 = vst.msk [vmem:[%s3808_s16 + $0x20] sm:$0xff] %vm1014_vm9, %v2323_v17  ;;  %v2100_v9 = vadd.f32 %v3793_v15, %v2064_v20  ;;  %2784 = vmatmul.msk.bf16.gmra.mxu2 %vm1395_vm5, %v2873_v30 }
 0x15a   : > { %v2132_v47 = vmax.f32 %v2100_v9, 0.0 }
 0x15b   : > { %v3860_v36 = vpop.f32.mrf.mxu3  ;;  %v1958_v63 = vpop.f32.mrf.mxu2 }
 0x15c   : > { %v2228_v19 = vadd.f32 %v3018_v14, %v2132_v47  ;;  %v2029_v41 = vadd.f32 %v1958_v63, %v1698_v18  ;;  %v3090_v47 = vunpack.c.h.bf16 %v3185_v2 }
 0x15e   : > { %v1479_v54 = vpop.f32.mrf.mxu0  ;;  %v2324_v45 = vadd.f32 %v3082_v35, %v2228_v19  ;;  %v2065_v12 = vmul.f32 %v3782_v62, %v2029_v41 }
 0x15f   : > { %v1709_v50 = vpop.f32.mrf.mxu1  ;;  %v1705_v55 = vadd.f32 %v1704_v37, %v1479_v54  ;;  %v3026_v37 = vunpack.c.h.bf16 %v3170_v60 }
 0x160   : > { %2356 = vst.msk [vmem:[%s3808_s16 + $0x28] sm:$0xff] %vm1014_vm9, %v2324_v45  ;;  %v2101_v31 = vadd.f32 %v3793_v15, %v2065_v12  ;;  %2788 = vmatmul.msk.bf16.gmra.mxu3 %vm1395_vm5, %v2877_v48 }
 0x162   : > { %v2133_v49 = vmax.f32 %v2101_v31, 0.0 }
 0x163   : > { %v3870_v46 = vpop.f32.mrf.mxu3  ;;  %v1960_v11 = vpop.f32.mrf.mxu2 }
 0x164   : > { %v2229_v58 = vadd.f32 %v3021_v32, %v2133_v49  ;;  %v2030_v53 = vadd.f32 %v1960_v11, %v1700_v40  ;;  %v3093_v49 = vunpack.c.l.bf16 %v3186_v24 }
 0x166   : > { %v1482_v28 = vpop.f32.mrf.mxu0  ;;  %v2325_v38 = vadd.f32 %v3085_v21, %v2229_v58  ;;  %v2066_v6 = vmul.f32 %v3782_v62, %v2030_v53 }
 0x167   : > { %v1712_v39 = vpop.f32.mrf.mxu1  ;;  %v1708_v14 = vadd.f32 %v1707_v5, %v1482_v28  ;;  %v3029_v5 = vunpack.c.l.bf16 %v3171_v52 }
 0x168   : > { %2357 = vst.msk [vmem:[%s3808_s16 + $0x30] sm:$0xff] %vm1014_vm9, %v2325_v38  ;;  %v2102_v13 = vadd.f32 %v3793_v15, %v2066_v6 }
 0x16a   : > { %v2134_v34 = vmax.f32 %v2102_v13, 0.0 }
 0x16b   : > { %v3877_v33 = vpop.f32.mrf.mxu3  ;;  %v1963_v57 = vpop.f32.mrf.mxu2 }
 0x16c   : > { %v2230_v7 = vadd.f32 %v3022_v8, %v2134_v34  ;;  %v2031_v0 = vadd.f32 %v1963_v57, %v1703_v10 }
 0x16e   : > { %v1484_v22 = vpop.f32.mrf.mxu0  ;;  %v2326_v25 = vadd.f32 %v3086_v4, %v2230_v7  ;;  %v2067_v43 = vmul.f32 %v3782_v62, %v2031_v0  ;;  %v3094_v4 = vunpack.c.h.bf16 %v3186_v24 }
 0x16f   : > { %v1714_v19 = vpop.f32.mrf.mxu1  ;;  %v1710_v32 = vadd.f32 %v1709_v50, %v1484_v22  ;;  %v3030_v50 = vunpack.c.h.bf16 %v3171_v52  ;;  %v3172_v22 = vld [vmem:[%s3777_s29 + $0x130] sm:$0xff]  }
 0x170   : > { %2358 = vst.msk [vmem:[%s3808_s16 + $0x38] sm:$0xff] %vm1014_vm9, %v2326_v25  ;;  %v2103_v59 = vadd.f32 %v3793_v15, %v2067_v43 }
 0x172   : > { %v2135_v44 = vmax.f32 %v2103_v59, 0.0  ;;  %v3187_v59 = vld [vmem:[%s3788_s11 + $0x30] sm:$0xff]  }
 0x173   : > { %v3885_v3 = vpop.f32.mrf.mxu3  ;;  %v1965_v29 = vpop.f32.mrf.mxu2 }
 0x174   : > { %v2231_v16 = vadd.f32 %v3025_v42, %v2135_v44  ;;  %v2032_v27 = vadd.f32 %v1965_v29, %v1705_v55  ;;  %v3097_v29 = vunpack.c.l.bf16 %v3187_v59 }
 0x176   : > { %v1487_v17 = vpop.f32.mrf.mxu0  ;;  %v2327_v20 = vadd.f32 %v3089_v26, %v2231_v16  ;;  %v2068_v30 = vmul.f32 %v3782_v62, %v2032_v27 }
 0x177   : > { %v1717_v38 = vpop.f32.mrf.mxu1  ;;  %v1713_v10 = vadd.f32 %v1712_v39, %v1487_v17  ;;  %v3033_v39 = vunpack.c.l.bf16 %v3172_v22 }
 0x178   : > { %2359 = vst.msk [vmem:[%s3808_s16 + $0x40] sm:$0xff] %vm1014_vm9, %v2327_v20  ;;  %v2104_v9 = vadd.f32 %v3793_v15, %v2068_v30 }
 0x17a   : > { %v2136_v18 = vmax.f32 %v2104_v9, 0.0 }
 0x17b   : > { %v3891_v35 = vpop.f32.mrf.mxu3  ;;  %v1968_v63 = vpop.f32.mrf.mxu2 }
 0x17c   : > { %v2232_v41 = vadd.f32 %v3026_v37, %v2136_v18  ;;  %v2033_v48 = vadd.f32 %v1968_v63, %v1708_v14  ;;  %v3034_v14 = vunpack.c.h.bf16 %v3172_v22 }
 0x17e   : > { %v1489_v54 = vpop.f32.mrf.mxu0  ;;  %v2328_v45 = vadd.f32 %v3090_v47, %v2232_v41  ;;  %v2069_v12 = vmul.f32 %v3782_v62, %v2033_v48  ;;  %v3098_v41 = vunpack.c.h.bf16 %v3187_v59 }
 0x17f   : > { %v1719_v42 = vpop.f32.mrf.mxu1  ;;  %v1715_v44 = vadd.f32 %v1714_v19, %v1489_v54 }
 0x180   : > { %2360 = vst.msk [vmem:[%s3808_s16 + $0x48] sm:$0xff] %vm1014_vm9, %v2328_v45  ;;  %v2105_v31 = vadd.f32 %v3793_v15, %v2069_v12  ;;  %v3173_v12 = vld [vmem:[%s3777_s29 + $0x138] sm:$0xff]  }
 0x182   : > { %v2137_v40 = vmax.f32 %v2105_v31, 0.0 }
 0x183   : > { %v3899_v21 = vpop.f32.mrf.mxu3  ;;  %v1970_v11 = vpop.f32.mrf.mxu2 }
 0x184   : > { %v2233_v58 = vadd.f32 %v3029_v5, %v2137_v40  ;;  %v2034_v53 = vadd.f32 %v1970_v11, %v1710_v32  ;;  %v3188_v5 = vld [vmem:[%s3788_s11 + $0x38] sm:$0xff]   ;;  %v3037_v40 = vunpack.c.l.bf16 %v3173_v12 }
 0x186   : > { %v1492_v28 = vpop.f32.mrf.mxu0  ;;  %v2329_v6 = vadd.f32 %v3093_v49, %v2233_v58  ;;  %v2070_v13 = vmul.f32 %v3782_v62, %v2034_v53  ;;  %v3101_v58 = vunpack.c.l.bf16 %v3188_v5 }
 0x187   : > { %v1718_v47 = vadd.f32 %v1717_v38, %v1492_v28  ;;  %v1722_v63 = vpop.f32.mrf.mxu1 }
 0x188   : > { %2361 = vst.msk [vmem:[%s3808_s16 + $0x50] sm:$0xff] %vm1014_vm9, %v2329_v6  ;;  %v2106_v8 = vadd.f32 %v3793_v15, %v2070_v13 }
 0x18a   : > { %v2138_v34 = vmax.f32 %v2106_v8, 0.0 }
 0x18b   : > { %v3905_v57 = vpop.f32.mrf.mxu3  ;;  %v1973_v7 = vpop.f32.mrf.mxu2 }
 0x18c   : > { %v2234_v0 = vadd.f32 %v3030_v50, %v2138_v34  ;;  %v2035_v60 = vadd.f32 %v1973_v7, %v1713_v10 }
 0x18e   : > { %v2330_v25 = vadd.f32 %v3094_v4, %v2234_v0  ;;  %v2071_v43 = vmul.f32 %v3782_v62, %v2035_v60  ;;  %v1494_v2 = vpop.f32.mrf.mxu0  ;;  %v3038_v4 = vunpack.c.h.bf16 %v3173_v12  ;;  %v3102_v60 = vunpack.c.h.bf16 %v3188_v5  ;;  %v3193_v12 = vld [vmem:[%s3788_s11 + $0x60] sm:$0xff]  }
 0x18f   : > { %v1720_v49 = vadd.f32 %v1719_v42, %v1494_v2  ;;  %v1724_v6 = vpop.f32.mrf.mxu1  ;;  %v3174_v42 = vld [vmem:[%s3777_s29 + $0x140] sm:$0xff]  }
 0x190   : > { %2362 = vst.msk [vmem:[%s3808_s16 + $0x58] sm:$0xff] %vm1014_vm9, %v2330_v25  ;;  %v2107_v55 = vadd.f32 %v3793_v15, %v2071_v43 }
 0x192   : > { %v2139_v26 = vmax.f32 %v2107_v55, 0.0 }
 0x193   : > { %v3913_v16 = vpop.f32.mrf.mxu3  ;;  %v1975_v27 = vpop.f32.mrf.mxu2 }
 0x194   : > { %v2235_v17 = vadd.f32 %v3033_v39, %v2139_v26  ;;  %v2036_v20 = vadd.f32 %v1975_v27, %v1715_v44  ;;  %v3189_v26 = vld [vmem:[%s3788_s11 + $0x40] sm:$0xff]   ;;  %v3041_v27 = vunpack.c.l.bf16 %v3174_v42 }
 0x196   : > { %v2331_v30 = vadd.f32 %v3097_v29, %v2235_v17  ;;  %v2072_v9 = vmul.f32 %v3782_v62, %v2036_v20  ;;  %v1497_v18 = vpop.f32.mrf.mxu0  ;;  %v1743_v17 = vadd.f32 %v3885_v3, %v3803_v51  ;;  %v3042_v3 = vunpack.c.h.bf16 %v3174_v42 }
 0x197   : > { %v1723_v7 = vadd.f32 %v1722_v63, %v1497_v18  ;;  %v1727_v55 = vpop.f32.mrf.mxu1  ;;  %v1748_v42 = vadd.f32 %v3899_v21, %v3831_v61 }
 0x198   : > { %2363 = vst.msk [vmem:[%s3808_s16 + $0x60] sm:$0xff] %vm1014_vm9, %v2331_v30  ;;  %v2108_v37 = vadd.f32 %v3793_v15, %v2072_v9  ;;  %v3105_v9 = vunpack.c.l.bf16 %v3189_v26 }
 0x19a   : > { %v2140_v19 = vmax.f32 %v2108_v37, 0.0 }
 0x19b   : > { %v3919_v48 = vpop.f32.mrf.mxu3  ;;  %v1978_v52 = vpop.f32.mrf.mxu2 }
 0x19c   : > { %v2236_v54 = vadd.f32 %v3034_v14, %v2140_v19  ;;  %v2037_v45 = vadd.f32 %v1978_v52, %v1718_v47  ;;  %v3178_v19 = vld [vmem:[%s3777_s29 + $0x160] sm:$0xff]  }
 0x19d   : > { %v3057_v5 = vunpack.c.l.bf16 %v3178_v19 }
 0x19e   : > { %v2332_v24 = vadd.f32 %v3098_v41, %v2236_v54  ;;  %v2073_v31 = vmul.f32 %v3782_v62, %v2037_v45  ;;  %v1499_v53 = vpop.f32.mrf.mxu0 }
 0x19f   : > { %v1725_v20 = vadd.f32 %v1724_v6, %v1499_v53  ;;  %v3121_v53 = vunpack.c.l.bf16 %v3193_v12 }
 0x1a0   : > { %2364 = vst.msk [vmem:[%s3808_s16 + $0x68] sm:$0xff] %vm1014_vm9, %v2332_v24  ;;  %v2109_v32 = vadd.f32 %v3793_v15, %v2073_v31  ;;  %v1729_v24 = vpop.f32.mrf.mxu1 }
 0x1a2   : > { %v2141_v11 = vmax.f32 %v2109_v32, 0.0  ;;  %v1745_v32 = vadd.f32 %v3891_v35, %v3819_v23  ;;  %v3190_v23 = vld [vmem:[%s3788_s11 + $0x48] sm:$0xff]  }
 0x1a3   : > { %v3927_v28 = vpop.f32.mrf.mxu3  ;;  %v1980_v38 = vpop.f32.mrf.mxu2 }
 0x1a4   : > { %v2237_v13 = vadd.f32 %v3037_v40, %v2141_v11  ;;  %v2038_v8 = vadd.f32 %v1980_v38, %v1720_v49  ;;  %v3106_v40 = vunpack.c.h.bf16 %v3189_v26 }
 0x1a6   : > { %v2333_v50 = vadd.f32 %v3101_v58, %v2237_v13  ;;  %v2074_v10 = vmul.f32 %v3782_v62, %v2038_v8  ;;  %v1502_v2 = vpop.f32.mrf.mxu0 }
 0x1a7   : > { %v1728_v49 = vadd.f32 %v1727_v55, %v1502_v2  ;;  %v3109_v55 = vunpack.c.l.bf16 %v3190_v23 }
 0x1a8   : > { %2365 = vst.msk [vmem:[%s3808_s16 + $0x70] sm:$0xff] %vm1014_vm9, %v2333_v50  ;;  %v2110_v34 = vadd.f32 %v3793_v15, %v2074_v10 }
 0x1aa   : > { %v2142_v0 = vmax.f32 %v2110_v34, 0.0  ;;  %v3175_v34 = vld [vmem:[%s3777_s29 + $0x148] sm:$0xff]  }
 0x1ab   : > { %v3933_v22 = vpop.f32.mrf.mxu3  ;;  %v1983_v25 = vpop.f32.mrf.mxu2 }
 0x1ac   : > { %v2238_v43 = vadd.f32 %v3038_v4, %v2142_v0  ;;  %v2039_v59 = vadd.f32 %v1983_v25, %v1723_v7 }
 0x1ae   : > { %v2334_v39 = vadd.f32 %v3102_v60, %v2238_v43  ;;  %v2075_v44 = vmul.f32 %v3782_v62, %v2039_v59  ;;  %v1504_v52 = vpop.f32.mrf.mxu0  ;;  %v3045_v43 = vunpack.c.l.bf16 %v3175_v34  ;;  %v3058_v59 = vunpack.c.h.bf16 %v3178_v19  ;;  %v3194_v19 = vld [vmem:[%s3788_s11 + $0x68] sm:$0xff]  }
 0x1b0   : > { %2366 = vst.msk [vmem:[%s3808_s16 + $0x78] sm:$0xff] %vm1014_vm9, %v2334_v39  ;;  %v2111_v29 = vadd.f32 %v3793_v15, %v2075_v44  ;;  %v1732_v39 = vpop.f32.mrf.mxu1  ;;  %v1730_v44 = vadd.f32 %v1729_v24, %v1504_v52  ;;  %v3046_v52 = vunpack.c.h.bf16 %v3175_v34  ;;  %v3110_v24 = vunpack.c.h.bf16 %v3190_v23 }
 0x1b1   : > { %v1753_v23 = vadd.f32 %v3913_v16, %v3852_v56 }
 0x1b2   : > { %v2143_v30 = vmax.f32 %v2111_v29, 0.0 }
 0x1b3   : > { %v1985_v37 = vpop.f32.mrf.mxu2  ;;  %v2003_v14 = vpop.f32.mrf.mxu3 }
 0x1b4   : > { %v2239_v18 = vadd.f32 %v3041_v27, %v2143_v30  ;;  %v2040_v47 = vadd.f32 %v1985_v37, %v1725_v20  ;;  %v2047_v63 = vadd.f32 %v2003_v14, %v1743_v17  ;;  %v3122_v27 = vunpack.c.h.bf16 %v3193_v12 }
 0x1b5   : > { %v1750_v12 = vadd.f32 %v3905_v57, %v3842_v1 }
 0x1b6   : > { %v2335_v41 = vadd.f32 %v3105_v9, %v2239_v18  ;;  %v2076_v54 = vmul.f32 %v3782_v62, %v2040_v47  ;;  %v2083_v45 = vmul.f32 %v3782_v62, %v2047_v63  ;;  %v1507_v60 = vpop.f32.mrf.mxu0  ;;  %v3179_v18 = vld [vmem:[%s3777_s29 + $0x168] sm:$0xff]  }
 0x1b8   : > { %2367 = vst.msk [vmem:[%s3808_s16 + $0x80] sm:$0xff] %vm1014_vm9, %v2335_v41  ;;  %v2112_v51 = vadd.f32 %v3793_v15, %v2076_v54  ;;  %v2119_v31 = vadd.f32 %v3793_v15, %v2083_v45  ;;  %v3061_v45 = vunpack.c.l.bf16 %v3179_v18 }
 0x1ba   : > { %v2144_v11 = vmax.f32 %v2112_v51, 0.0  ;;  %v2151_v58 = vmax.f32 %v2119_v31, 0.0  ;;  %v1733_v51 = vadd.f32 %v1732_v39, %v1507_v60 }
 0x1bb   : > { %v1988_v38 = vpop.f32.mrf.mxu2  ;;  %v2005_v6 = vpop.f32.mrf.mxu3 }
 0x1bc   : > { %v2240_v13 = vadd.f32 %v3042_v3, %v2144_v11  ;;  %v2247_v8 = vadd.f32 %v3057_v5, %v2151_v58  ;;  %v2041_v50 = vadd.f32 %v1988_v38, %v1728_v49  ;;  %v2048_v10 = vadd.f32 %v2005_v6, %v1745_v32  ;;  %v1734_v6 = vpop.f32.mrf.mxu1 }
 0x1bd   : > { %v3125_v32 = vunpack.c.l.bf16 %v3194_v19 }
 0x1be   : > { %v2336_v4 = vadd.f32 %v3106_v40, %v2240_v13  ;;  %v2343_v7 = vadd.f32 %v3121_v53, %v2247_v8  ;;  %v2077_v0 = vmul.f32 %v3782_v62, %v2041_v50  ;;  %v2084_v35 = vmul.f32 %v3782_v62, %v2048_v10  ;;  %v1509_v3 = vpop.f32.mrf.mxu0  ;;  %v3176_v13 = vld [vmem:[%s3777_s29 + $0x150] sm:$0xff]  }
 0x1bf   : > { %v3191_v50 = vld [vmem:[%s3788_s11 + $0x50] sm:$0xff]   ;;  %v1735_v60 = vadd.f32 %v1734_v6, %v1509_v3  ;;  %v1758_v6 = vadd.f32 %v3927_v28, %v3870_v46 }
 0x1c0   : > { %2368 = vst.msk [vmem:[%s3808_s16 + $0x88] sm:$0xff] %vm1014_vm9, %v2336_v4  ;;  %v2113_v25 = vadd.f32 %v3793_v15, %v2077_v0  ;;  %v2120_v2 = vadd.f32 %v3793_v15, %v2084_v35  ;;  %v3049_v4 = vunpack.c.l.bf16 %v3176_v13  ;;  %v3062_v0 = vunpack.c.h.bf16 %v3179_v18 }
 0x1c1   : > { %2375 = vst.msk [vmem:[%s3808_s16 + $0xc0] sm:$0xff] %vm1014_vm9, %v2343_v7  ;;  %v3113_v35 = vunpack.c.l.bf16 %v3191_v50 }
 0x1c2   : > { %v2145_v26 = vmax.f32 %v2113_v25, 0.0  ;;  %v2152_v29 = vmax.f32 %v2120_v2, 0.0  ;;  %v3126_v2 = vunpack.c.h.bf16 %v3194_v19 }
 0x1c3   : > { %v1990_v17 = vpop.f32.mrf.mxu2  ;;  %v2008_v20 = vpop.f32.mrf.mxu3 }
 0x1c4   : > { %v2241_v30 = vadd.f32 %v3045_v43, %v2145_v26  ;;  %v2248_v9 = vadd.f32 %v3058_v59, %v2152_v29  ;;  %v2042_v37 = vadd.f32 %v1990_v17, %v1730_v44  ;;  %v2049_v14 = vadd.f32 %v2008_v20, %v1748_v42 }
 0x1c6   : > { %v2337_v47 = vadd.f32 %v3109_v55, %v2241_v30  ;;  %v2344_v61 = vadd.f32 %v3122_v27, %v2248_v9  ;;  %v2078_v21 = vmul.f32 %v3782_v62, %v2042_v37  ;;  %v2085_v63 = vmul.f32 %v3782_v62, %v2049_v14  ;;  %v1512_v29 = vpop.f32.mrf.mxu0  ;;  %v3180_v27 = vld [vmem:[%s3777_s29 + $0x170] sm:$0xff]   ;;  %v1737_v30 = vpop.f32.mrf.mxu1 }
 0x1c7   : > { %v3195_v9 = vld [vmem:[%s3788_s11 + $0x70] sm:$0xff]   ;;  %v3050_v14 = vunpack.c.h.bf16 %v3176_v13 }
 0x1c8   : > { %2369 = vst.msk [vmem:[%s3808_s16 + $0x90] sm:$0xff] %vm1014_vm9, %v2337_v47  ;;  %v2114_v41 = vadd.f32 %v3793_v15, %v2078_v21  ;;  %v2121_v54 = vadd.f32 %v3793_v15, %v2085_v63  ;;  %v3065_v47 = vunpack.c.l.bf16 %v3180_v27  ;;  %v3114_v21 = vunpack.c.h.bf16 %v3191_v50 }
 0x1c9   : > { %2376 = vst.msk [vmem:[%s3808_s16 + $0xc8] sm:$0xff] %vm1014_vm9, %v2344_v61  ;;  %v1755_v61 = vadd.f32 %v3919_v48, %v3860_v36  ;;  %v1738_v63 = vadd.f32 %v1737_v30, %v1512_v29  ;;  %v3192_v48 = vld [vmem:[%s3788_s11 + $0x58] sm:$0xff]  }
 0x1ca   : > { %v2146_v31 = vmax.f32 %v2114_v41, 0.0  ;;  %v2153_v5 = vmax.f32 %v2121_v54, 0.0  ;;  %v3118_v29 = vunpack.c.h.bf16 %v3192_v48 }
 0x1cb   : > { %v1993_v40 = vpop.f32.mrf.mxu2  ;;  %v2010_v49 = vpop.f32.mrf.mxu3 }
 0x1cc   : > { %v2242_v11 = vadd.f32 %v3046_v52, %v2146_v31  ;;  %v2249_v58 = vadd.f32 %v3061_v45, %v2153_v5  ;;  %v2043_v53 = vadd.f32 %v1993_v40, %v1733_v51  ;;  %v2050_v38 = vadd.f32 %v2010_v49, %v1750_v12  ;;  %v3177_v31 = vld [vmem:[%s3777_s29 + $0x158] sm:$0xff]  }
 0x1cd   : > { %v3129_v52 = vunpack.c.l.bf16 %v3195_v9 }
 0x1ce   : > { %v2338_v1 = vadd.f32 %v3110_v24, %v2242_v11  ;;  %v2345_v57 = vadd.f32 %v3125_v32, %v2249_v58  ;;  %v2079_v8 = vmul.f32 %v3782_v62, %v2043_v53  ;;  %v2086_v10 = vmul.f32 %v3782_v62, %v2050_v38  ;;  %v1514_v49 = vpop.f32.mrf.mxu0  ;;  %v1739_v13 = vpop.f32.mrf.mxu1 }
 0x1cf   : > { %v3053_v58 = vunpack.c.l.bf16 %v3177_v31  ;;  %v3066_v38 = vunpack.c.h.bf16 %v3180_v27 }
 0x1d0   : > { %2370 = vst.msk [vmem:[%s3808_s16 + $0x98] sm:$0xff] %vm1014_vm9, %v2338_v1  ;;  %v2115_v34 = vadd.f32 %v3793_v15, %v2079_v8  ;;  %v2122_v7 = vadd.f32 %v3793_v15, %v2086_v10  ;;  %v3117_v1 = vunpack.c.l.bf16 %v3192_v48  ;;  %v3130_v10 = vunpack.c.h.bf16 %v3195_v9 }
 0x1d1   : > { %2377 = vst.msk [vmem:[%s3808_s16 + $0xd0] sm:$0xff] %vm1014_vm9, %v2345_v57  ;;  %v1740_v57 = vadd.f32 %v1739_v13, %v1514_v49 }
 0x1d2   : > { %v2147_v25 = vmax.f32 %v2115_v34, 0.0  ;;  %v2154_v43 = vmax.f32 %v2122_v7, 0.0 }
 0x1d3   : > { %v1995_v59 = vpop.f32.mrf.mxu2  ;;  %v2013_v42 = vpop.f32.mrf.mxu3 }
 0x1d4   : > { %v2243_v55 = vadd.f32 %v3049_v4, %v2147_v25  ;;  %v2250_v39 = vadd.f32 %v3062_v0, %v2154_v43  ;;  %v2044_v44 = vadd.f32 %v1995_v59, %v1735_v60  ;;  %v2051_v26 = vadd.f32 %v2013_v42, %v1753_v23  ;;  %v3181_v60 = vld [vmem:[%s3777_s29 + $0x178] sm:$0xff]  }
 0x1d5   : > { %v3054_v42 = vunpack.c.h.bf16 %v3177_v31 }
 0x1d6   : > { %v2339_v17 = vadd.f32 %v3113_v35, %v2243_v55  ;;  %v2346_v56 = vadd.f32 %v3126_v2, %v2250_v39  ;;  %v2080_v16 = vmul.f32 %v3782_v62, %v2044_v44  ;;  %v2087_v20 = vmul.f32 %v3782_v62, %v2051_v26  ;;  %v3196_v2 = vld [vmem:[%s3788_s11 + $0x78] sm:$0xff]  }
 0x1d7   : > { %v3069_v39 = vunpack.c.l.bf16 %v3181_v60  ;;  %v1760_v44 = vadd.f32 %v3933_v22, %v3877_v33  ;;  %v3070_v22 = vunpack.c.h.bf16 %v3181_v60 }
 0x1d8   : > { %2371 = vst.msk [vmem:[%s3808_s16 + $0xa0] sm:$0xff] %vm1014_vm9, %v2339_v17  ;;  %v2116_v37 = vadd.f32 %v3793_v15, %v2080_v16  ;;  %v2123_v18 = vadd.f32 %v3793_v15, %v2087_v20  ;;  %v3133_v17 = vunpack.c.l.bf16 %v3196_v2 }
 0x1d9   : > { %2378 = vst.msk [vmem:[%s3808_s16 + $0xd8] sm:$0xff] %vm1014_vm9, %v2346_v56 }
 0x1da   : > { %v2148_v19 = vmax.f32 %v2116_v37, 0.0  ;;  %v2155_v41 = vmax.f32 %v2123_v18, 0.0 }
 0x1db   : > { %v1998_v54 = vpop.f32.mrf.mxu2  ;;  %v2015_v45 = vpop.f32.mrf.mxu3 }
 0x1dc   : > { %v2244_v12 = vadd.f32 %v3050_v14, %v2148_v19  ;;  %v2251_v24 = vadd.f32 %v3065_v47, %v2155_v41  ;;  %v2045_v51 = vadd.f32 %v1998_v54, %v1738_v63  ;;  %v2052_v3 = vadd.f32 %v2015_v45, %v1755_v61 }
 0x1dd   : > { %v3134_v47 = vunpack.c.h.bf16 %v3196_v2 }
 0x1de   : > { %v2340_v5 = vadd.f32 %v3114_v21, %v2244_v12  ;;  %v2347_v32 = vadd.f32 %v3129_v52, %v2251_v24  ;;  %v2081_v36 = vmul.f32 %v3782_v62, %v2045_v51  ;;  %v2088_v40 = vmul.f32 %v3782_v62, %v2052_v3 }
 0x1e0   : > { %2372 = vst.msk [vmem:[%s3808_s16 + $0xa8] sm:$0xff] %vm1014_vm9, %v2340_v5  ;;  %v2117_v11 = vadd.f32 %v3793_v15, %v2081_v36  ;;  %v2124_v53 = vadd.f32 %v3793_v15, %v2088_v40 }
 0x1e1   : > { %2379 = vst.msk [vmem:[%s3808_s16 + $0xe0] sm:$0xff] %vm1014_vm9, %v2347_v32 }
 0x1e2   : > { %v2149_v8 = vmax.f32 %v2117_v11, 0.0  ;;  %v2156_v50 = vmax.f32 %v2124_v53, 0.0 }
 0x1e3   : > { %v2000_v34 = vpop.f32.mrf.mxu2  ;;  %v2018_v4 = vpop.f32.mrf.mxu3 }
 0x1e4   : > { %v2245_v7 = vadd.f32 %v3053_v58, %v2149_v8  ;;  %v2252_v0 = vadd.f32 %v3066_v38, %v2156_v50  ;;  %v2046_v23 = vadd.f32 %v2000_v34, %v1740_v57  ;;  %v2053_v35 = vadd.f32 %v2018_v4, %v1758_v6 }
 0x1e6   : > { %v2341_v25 = vadd.f32 %v3117_v1, %v2245_v7  ;;  %v2348_v46 = vadd.f32 %v3130_v10, %v2252_v0  ;;  %v2082_v28 = vmul.f32 %v3782_v62, %v2046_v23  ;;  %v2089_v43 = vmul.f32 %v3782_v62, %v2053_v35 }
 0x1e8   : > { %2373 = vst.msk [vmem:[%s3808_s16 + $0xb0] sm:$0xff] %vm1014_vm9, %v2341_v25  ;;  %v2118_v59 = vadd.f32 %v3793_v15, %v2082_v28  ;;  %v2125_v55 = vadd.f32 %v3793_v15, %v2089_v43 }
 0x1e9   : > { %2380 = vst.msk [vmem:[%s3808_s16 + $0xe8] sm:$0xff] %vm1014_vm9, %v2348_v46 }
 0x1ea   : > { %v2150_v26 = vmax.f32 %v2118_v59, 0.0  ;;  %v2157_v27 = vmax.f32 %v2125_v55, 0.0 }
 0x1eb   : > { %v2020_v56 = vpop.f32.mrf.mxu3 }
 0x1ec   : > { %v2246_v16 = vadd.f32 %v3054_v42, %v2150_v26  ;;  %v2253_v20 = vadd.f32 %v3069_v39, %v2157_v27  ;;  %v2054_v30 = vadd.f32 %v2020_v56, %v1760_v44 }
 0x1ee   : > { %v2342_v9 = vadd.f32 %v3118_v29, %v2246_v16  ;;  %v2349_v37 = vadd.f32 %v3133_v17, %v2253_v20  ;;  %v2090_v14 = vmul.f32 %v3782_v62, %v2054_v30 }
 0x1f0   : > { %2374 = vst.msk [vmem:[%s3808_s16 + $0xb8] sm:$0xff] %vm1014_vm9, %v2342_v9  ;;  %v2126_v33 = vadd.f32 %v3793_v15, %v2090_v14 }
 0x1f1   : > { %2381 = vst.msk [vmem:[%s3808_s16 + $0xf0] sm:$0xff] %vm1014_vm9, %v2349_v37 }
 0x1f2   : > { %v2158_v18 = vmax.f32 %v2126_v33, 0.0 }
 0x1f4   : > { %v2254_v61 = vadd.f32 %v3070_v22, %v2158_v18 }
 0x1f6   : > { %v2350_v21 = vadd.f32 %v3134_v47, %v2254_v61 }
 0x1f8   : > { %2382 = vst.msk [vmem:[%s3808_s16 + $0xf8] sm:$0xff] %vm1014_vm9, %v2350_v21 }
 0x1f9 PF: > { %s17_s24 = sadd.s32 1, %s3219_s24  }
 0x1fa   : > { %p14_p4 = scmp.ge.s32.totalorder %s17_s24, 4  }
 0x1fc   :  { %16 = sbr.rel (!%p14_p4) target bundleno = 1 (0x1), region = 92 }

</bundles_post_ra>
